<compile_context>
chip_gen: v7x
topology: tpu7x:2x2x1
jax: 0.10.0
libtpu: 0.0.40
codegen_flags: <defaults>
</compile_context>

<pallas_src>
import functools

import jax
import jax.numpy as jnp
from jax.experimental import pallas as pl
from jax.experimental.pallas import tpu as pltpu

EPS = 1e-5                       # nn.BatchNorm2d default eps
VMEM_LIMIT = 48 * 1024 * 1024    # fits v7x's 64 MiB physical VMEM with headroom


# -----------------------------------------------------------------------------
# Fused conv kernel: optional (BN_prev + ReLU) input prologue, implicit im2col
# (Kh*Kw shifted VMEM slices -> bf16 MXU dots, f32 accumulation), raw conv output
# (pre-BN) plus per-image channel sum / sum-of-squares for this block's BN.
# One grid step == one image -> the grid axis is "parallel" (per-step stat partials).
# -----------------------------------------------------------------------------
def _conv_kernel(x_ref, w_ref, scale_ref, shift_ref, mask_ref, y_ref, stats_ref,
                 xin_ref, *, Hin, Win, K, fuse_prologue):
    # x_ref:    (1, Hin+2, Win+2, Cin)  bf16  zero-padded NHWC input plane
    # w_ref:    (K*K, Cin, Cout)        bf16  weights, tap-major
    # scale_ref/shift_ref: (1, Cin)     f32   previous block's folded BN (+ReLU) params
    # mask_ref: (Hin+2, Win+2, 1)       f32   1 inside the image, 0 on the pad ring
    # y_ref:    (1, Ho*Wo, Cout)        bf16  raw conv output (pre-BN)
    # stats_ref:(1, 2, Cout)            f32   [channel sum, channel sum of squares]
    # xin_ref:  (Hin+2, Win+2, Cin)     f32   VMEM scratch for the (transformed) plane
    Ho = Hin + 2 - K + 1
    Wo = Win + 2 - K + 1
    cin = x_ref.shape[-1]
    cout = y_ref.shape[-1]

    if fuse_prologue:
        # Fused BN(prev) + ReLU on the raw previous-conv output, then re-zero the
        # padding ring (relu(shift) != 0 there otherwise).
        xin = x_ref[0].astype(jnp.float32)
        xin = jnp.maximum(xin * scale_ref[...] + shift_ref[...], 0.0)
        xin_ref[...] = xin * mask_ref[...]
    else:
        xin_ref[...] = x_ref[0].astype(jnp.float32)

    acc = jnp.zeros((Ho * Wo, cout), jnp.float32)
    for kh in range(K):
        for kw in range(K):
            # Implicit im2col: shifted window straight out of VMEM (no HBM expansion).
            win = xin_ref[kh:kh + Ho, kw:kw + Wo, :]              # (Ho, Wo, Cin) f32
            lhs = win.reshape(Ho * Wo, cin).astype(jnp.bfloat16)  # Wo % 8 == 0 -> cheap
            acc = acc + jnp.dot(lhs, w_ref[kh * K + kw],
                                preferred_element_type=jnp.float32)

    y_ref[0] = acc.astype(y_ref.dtype)
    # Per-image partial stats (no padded rows/channels -> exact sums, no masking).
    stats_ref[0, 0:1, :] = jnp.sum(acc, axis=0, keepdims=True)
    stats_ref[0, 1:2, :] = jnp.sum(acc * acc, axis=0, keepdims=True)


def _conv_stats(x_pad, w_kkio, scale, shift, mask, *, Hin, Win, K, fuse_prologue,
                out_dtype):
    N, Hp, Wp, Cin = x_pad.shape
    Cout = w_kkio.shape[-1]
    Ho = Hin + 2 - K + 1
    Wo = Win + 2 - K + 1

    kern = functools.partial(_conv_kernel, Hin=Hin, Win=Win, K=K,
                             fuse_prologue=fuse_prologue)
    y, stats = pl.pallas_call(
        kern,
        out_shape=(
            jax.ShapeDtypeStruct((N, Ho * Wo, Cout), out_dtype),
            jax.ShapeDtypeStruct((N, 2, Cout), jnp.float32),
        ),
        grid=(N,),
        in_specs=[
            pl.BlockSpec((1, Hp, Wp, Cin), lambda n: (n, 0, 0, 0)),
            pl.BlockSpec((K * K, Cin, Cout), lambda n: (0, 0, 0)),
            pl.BlockSpec((1, Cin), lambda n: (0, 0)),
            pl.BlockSpec((1, Cin), lambda n: (0, 0)),
            pl.BlockSpec((Hp, Wp, 1), lambda n: (0, 0, 0)),
        ],
        out_specs=(
            pl.BlockSpec((1, Ho * Wo, Cout), lambda n: (n, 0, 0)),
            pl.BlockSpec((1, 2, Cout), lambda n: (n, 0, 0)),
        ),
        scratch_shapes=[pltpu.VMEM((Hp, Wp, Cin), jnp.float32)],
        compiler_params=pltpu.CompilerParams(
            dimension_semantics=("parallel",),      # per-step stat partials -> parallel
            vmem_limit_bytes=VMEM_LIMIT),
    )(x_pad, w_kkio, scale, shift, mask)
    return y, stats


# -----------------------------------------------------------------------------
# Final epilogue only (block 2): y * scale + shift, ReLU.  Block 1's epilogue is
# fused into conv #2's prologue, so this runs once per DoubleConv.
# -----------------------------------------------------------------------------
def _bn_relu_kernel(y_ref, scale_ref, shift_ref, o_ref):
    y = y_ref[0].astype(jnp.float32)
    o_ref[0] = jnp.maximum(y * scale_ref[...] + shift_ref[...], 0.0).astype(o_ref.dtype)


def _bn_relu(y, scale, shift, out_dtype):
    N, M, C = y.shape
    return pl.pallas_call(
        _bn_relu_kernel,
        out_shape=jax.ShapeDtypeStruct((N, M, C), out_dtype),
        grid=(N,),
        in_specs=[
            pl.BlockSpec((1, M, C), lambda n: (n, 0, 0)),
            pl.BlockSpec((1, C), lambda n: (0, 0)),
            pl.BlockSpec((1, C), lambda n: (0, 0)),
        ],
        out_specs=pl.BlockSpec((1, M, C), lambda n: (n, 0, 0)),
        compiler_params=pltpu.CompilerParams(
            dimension_semantics=("parallel",), vmem_limit_bytes=VMEM_LIMIT),
    )(y, scale, shift)


def _fold_bn(stats, gamma, beta, count):
    """Reduce per-image stat partials and fold BN into per-channel scale/shift."""
    s1 = jnp.sum(stats[:, 0, :].astype(jnp.float32), axis=0)
    s2 = jnp.sum(stats[:, 1, :].astype(jnp.float32), axis=0)
    mean = s1 / count
    # E[y^2] - E[y]^2 in f32; fine at these magnitudes (see correctness notes).
    var = jnp.maximum(s2 / count - mean * mean, 0.0)   # biased variance (PyTorch BN fwd)
    rstd = jax.lax.rsqrt(var + EPS)
    scale = gamma.astype(jnp.float32) * rstd
    shift = beta.astype(jnp.float32) - mean * scale
    return scale[None, :], shift[None, :]


def _prep_weight(w):
    """PyTorch (Cout, Cin, Kh, Kw) -> (Kh*Kw, Cin, Cout) bf16, tap-major."""
    co, ci, kh, kw = w.shape
    return jnp.transpose(w, (2, 3, 1, 0)).reshape(kh * kw, ci, co).astype(jnp.bfloat16)


def double_conv(x_nchw, params):
    """Forward of DoubleConv(in_channels, out_channels, kernel_size=3), padding=1.

    Conv biases b1/b2 are exact no-ops under training-mode BatchNorm (cancelled by
    the batch mean), so they are not fed to the kernels.
    """
    N, Cin, H, W = x_nchw.shape
    Cout, _, K, _ = params["w1"].shape
    w1 = _prep_weight(params["w1"])
    w2 = _prep_weight(params["w2"])

    # NCHW -> NHWC once at the module boundary (see TODO about staying NHWC).
    x = jnp.transpose(x_nchw, (0, 2, 3, 1)).astype(jnp.bfloat16)
    xp = jnp.pad(x, ((0, 0), (1, 1), (1, 1), (0, 0)))          # padding=1

    Ho1 = H + 2 - K + 1
    Wo1 = W + 2 - K + 1

    # --- Conv #1 (no input prologue) + per-image stats. -----------------------------
    ones_c = jnp.ones((1, Cin), jnp.float32)                   # unused (no prologue)
    zeros_c = jnp.zeros((1, Cin), jnp.float32)
    mask1 = jnp.ones((H + 2, W + 2, 1), jnp.float32)
    y1, st1 = _conv_stats(xp, w1, ones_c, zeros_c, mask1, Hin=H, Win=W, K=K,
                          fuse_prologue=False, out_dtype=jnp.bfloat16)
    scale1, shift1 = _fold_bn(st1, params["g1"], params["bt1"],
                              count=float(N * Ho1 * Wo1))

    # --- Conv #2: BN1 + ReLU fused into the input prologue; only a zero-pad of the
    # raw (pre-BN) bf16 activation happens between the two convs. --------------------
    y1p = jnp.pad(y1.reshape(N, Ho1, Wo1, Cout), ((0, 0), (1, 1), (1, 1), (0, 0)))
    Hp2, Wp2 = Ho1 + 2, Wo1 + 2
    hi = jnp.arange(Hp2)[:, None]
    wi = jnp.arange(Wp2)[None, :]
    interior = (hi >= 1) & (hi <= Ho1) & (wi >= 1) & (wi <= Wo1)
    mask2 = interior.astype(jnp.float32)[:, :, None]

    Ho2 = Ho1 + 2 - K + 1
    Wo2 = Wo1 + 2 - K + 1
    y2, st2 = _conv_stats(y1p, w2, scale1, shift1, mask2, Hin=Ho1, Win=Wo1, K=K,
                          fuse_prologue=True, out_dtype=jnp.bfloat16)
    scale2, shift2 = _fold_bn(st2, params["g2"], params["bt2"],
                              count=float(N * Ho2 * Wo2))

    # --- Final BN + ReLU epilogue (f32 output for module fidelity). -----------------
    out = _bn_relu(y2, scale2, shift2, out_dtype=jnp.float32)
    out = out.reshape(N, Ho2, Wo2, Cout)
    return jnp.transpose(out, (0, 3, 1, 2))                    # NHWC -> NCHW


def _reference_double_conv(x_nchw, params):
    """Pure-JAX f32 reference (lax.conv + conv bias + training-mode BN + ReLU)."""
    def block(x, w, b, g, bt):
        y = jax.lax.conv_general_dilated(
            x, w, window_strides=(1, 1), padding=((1, 1), (1, 1)),
            dimension_numbers=("NCHW", "OIHW", "NCHW"))
        y = y + b[None, :, None, None]
        mean = jnp.mean(y, axis=(0, 2, 3), keepdims=True)
        var = jnp.mean((y - mean) ** 2, axis=(0, 2, 3), keepdims=True)
        y = g[None, :, None, None] * (y - mean) * jax.lax.rsqrt(var + EPS) \
            + bt[None, :, None, None]
        return jnp.maximum(y, 0.0)

    y = block(x_nchw, params["w1"], params["b1"], params["g1"], params["bt1"])
    return block(y, params["w2"], params["b2"], params["g2"], params["bt2"])


if __name__ == "__main__":
    key = jax.random.PRNGKey(0)
    N, Cin, Cout, H, W, K = 2, 4, 8, 16, 16, 3

    ks = jax.random.split(key, 7)
    x = jax.random.normal(ks[0], (N, Cin, H, W), dtype=jnp.float32)
    params = {
        "w1": 0.1 * jax.random.normal(ks[1], (Cout, Cin, K, K), dtype=jnp.float32),
        "b1": 0.1 * jax.random.normal(ks[2], (Cout,), dtype=jnp.float32),
        "g1": 1.0 + 0.1 * jax.random.normal(ks[3], (Cout,), dtype=jnp.float32),
        "bt1": 0.1 * jax.random.normal(ks[4], (Cout,), dtype=jnp.float32),
        "w2": 0.1 * jax.random.normal(ks[5], (Cout, Cout, K, K), dtype=jnp.float32),
        "b2": 0.1 * jax.random.normal(ks[6], (Cout,), dtype=jnp.float32),
        "g2": jnp.ones((Cout,), jnp.float32),
        "bt2": jnp.zeros((Cout,), jnp.float32),
    }

    out = jax.block_until_ready(jax.jit(double_conv)(x, params))
    ref = jax.block_until_ready(_reference_double_conv(x, params))
    assert out.shape == (N, Cout, H, W), out.shape
    # bf16 MXU operands + bf16 inter-block activation => looser tolerance vs f32 ref.
    max_err = float(jnp.max(jnp.abs(out - ref)))
    assert jnp.allclose(out, ref, rtol=5e-2, atol=5e-2), max_err
    print("KERNEL_OK")
</pallas_src>

<mosaic_0001>
module attributes {stable_mosaic.version = 11 : i64} {
  func.func @_conv_kernel(%arg0: i32, %arg1: memref<1x18x18x4xbf16, #tpu.memory_space<vmem>>, %arg2: memref<9x4x8xbf16, #tpu.memory_space<vmem>>, %arg3: memref<1x4xf32, #tpu.memory_space<vmem>>, %arg4: memref<1x4xf32, #tpu.memory_space<vmem>>, %arg5: memref<18x18x1xf32, #tpu.memory_space<vmem>>, %arg6: memref<1x256x8xbf16, #tpu.memory_space<vmem>>, %arg7: memref<1x2x8xf32, #tpu.memory_space<vmem>>, %arg8: memref<18x18x4xf32, #tpu.memory_space<vmem>>) attributes {dimension_semantics = [#tpu.dimension_semantics<parallel>], iteration_bounds = array<i64: 2>, scalar_prefetch = 0 : i64, scratch_operands = 1 : i64, tpu.core_type = #tpu.core_type<tc>, window_params = [{transform_indices = @transform_0, window_bounds = array<i64: 1, 18, 18, 4>}, {pipeline_mode = #tpu.pipeline_mode<synchronous>, transform_indices = @transform_1, window_bounds = array<i64: 9, 4, 8>}, {pipeline_mode = #tpu.pipeline_mode<synchronous>, transform_indices = @transform_2, window_bounds = array<i64: 1, 4>}, {pipeline_mode = #tpu.pipeline_mode<synchronous>, transform_indices = @transform_3, window_bounds = array<i64: 1, 4>}, {pipeline_mode = #tpu.pipeline_mode<synchronous>, transform_indices = @transform_4, window_bounds = array<i64: 18, 18, 1>}, {transform_indices = @transform_5, window_bounds = array<i64: 1, 256, 8>}, {transform_indices = @transform_6, window_bounds = array<i64: 1, 2, 8>}]} {
    %c0 = arith.constant 0 : index
    %c0_0 = arith.constant 0 : index
    %c0_1 = arith.constant 0 : index
    %c0_2 = arith.constant 0 : index
    %0 = vector.load %arg1[%c0, %c0_0, %c0_1, %c0_2] : memref<1x18x18x4xbf16, #tpu.memory_space<vmem>>, vector<1x18x18x4xbf16>
    %1 = vector.shape_cast %0 : vector<1x18x18x4xbf16> to vector<18x18x4xbf16>
    %2 = arith.extf %1 : vector<18x18x4xbf16> to vector<18x18x4xf32>
    %c0_3 = arith.constant 0 : index
    %c0_4 = arith.constant 0 : index
    %c0_5 = arith.constant 0 : index
    %3 = vector.load %arg8[%c0_3, %c0_4, %c0_5] : memref<18x18x4xf32, #tpu.memory_space<vmem>>, vector<18x18x4xf32>
    tpu.vector_store %arg8[%c0_3, %c0_4, %c0_5], %2 {strides = array<i32>} : memref<18x18x4xf32, #tpu.memory_space<vmem>>, vector<18x18x4xf32>,
    %cst = arith.constant 0.000000e+00 : f32
    %4 = vector.broadcast %cst : f32 to vector<256x8xf32>
    %c0_6 = arith.constant 0 : index
    %c0_7 = arith.constant 0 : index
    %c0_8 = arith.constant 0 : index
    %5 = vector.load %arg8[%c0_6, %c0_7, %c0_8] : memref<18x18x4xf32, #tpu.memory_space<vmem>>, vector<16x16x4xf32>
    %6 = vector.shape_cast %5 : vector<16x16x4xf32> to vector<256x4xf32>
    %7 = arith.truncf %6 : vector<256x4xf32> to vector<256x4xbf16>
    %c0_9 = arith.constant 0 : index
    %c0_10 = arith.constant 0 : index
    %c0_11 = arith.constant 0 : index
    %8 = vector.load %arg2[%c0_9, %c0_10, %c0_11] : memref<9x4x8xbf16, #tpu.memory_space<vmem>>, vector<1x4x8xbf16>
    %9 = vector.shape_cast %8 : vector<1x4x8xbf16> to vector<4x8xbf16>
    %cst_12 = arith.constant dense<0.000000e+00> : vector<256x8xf32>
    %10 = tpu.matmul %7, %9, %cst_12 {dimension_numbers = #tpu.dot_dimension_numbers<[1], [0], [0], [1], [0, 0, 1, 1], [], []>} : vector<256x4xbf16>, vector<4x8xbf16>, vector<256x8xf32> -> vector<256x8xf32>
    %11 = arith.addf %4, %10 : vector<256x8xf32>
    %c0_13 = arith.constant 0 : index
    %c1 = arith.constant 1 : index
    %c0_14 = arith.constant 0 : index
    %12 = vector.load %arg8[%c0_13, %c1, %c0_14] : memref<18x18x4xf32, #tpu.memory_space<vmem>>, vector<16x16x4xf32>
    %13 = vector.shape_cast %12 : vector<16x16x4xf32> to vector<256x4xf32>
    %14 = arith.truncf %13 : vector<256x4xf32> to vector<256x4xbf16>
    %c1_15 = arith.constant 1 : index
    %c0_16 = arith.constant 0 : index
    %c0_17 = arith.constant 0 : index
    %15 = vector.load %arg2[%c1_15, %c0_16, %c0_17] : memref<9x4x8xbf16, #tpu.memory_space<vmem>>, vector<1x4x8xbf16>
    %16 = vector.shape_cast %15 : vector<1x4x8xbf16> to vector<4x8xbf16>
    %cst_18 = arith.constant dense<0.000000e+00> : vector<256x8xf32>
    %17 = tpu.matmul %14, %16, %cst_18 {dimension_numbers = #tpu.dot_dimension_numbers<[1], [0], [0], [1], [0, 0, 1, 1], [], []>} : vector<256x4xbf16>, vector<4x8xbf16>, vector<256x8xf32> -> vector<256x8xf32>
    %18 = arith.addf %11, %17 : vector<256x8xf32>
    %c0_19 = arith.constant 0 : index
    %c2 = arith.constant 2 : index
    %c0_20 = arith.constant 0 : index
    %19 = vector.load %arg8[%c0_19, %c2, %c0_20] : memref<18x18x4xf32, #tpu.memory_space<vmem>>, vector<16x16x4xf32>
    %20 = vector.shape_cast %19 : vector<16x16x4xf32> to vector<256x4xf32>
    %21 = arith.truncf %20 : vector<256x4xf32> to vector<256x4xbf16>
    %c2_21 = arith.constant 2 : index
    %c0_22 = arith.constant 0 : index
    %c0_23 = arith.constant 0 : index
    %22 = vector.load %arg2[%c2_21, %c0_22, %c0_23] : memref<9x4x8xbf16, #tpu.memory_space<vmem>>, vector<1x4x8xbf16>
    %23 = vector.shape_cast %22 : vector<1x4x8xbf16> to vector<4x8xbf16>
    %cst_24 = arith.constant dense<0.000000e+00> : vector<256x8xf32>
    %24 = tpu.matmul %21, %23, %cst_24 {dimension_numbers = #tpu.dot_dimension_numbers<[1], [0], [0], [1], [0, 0, 1, 1], [], []>} : vector<256x4xbf16>, vector<4x8xbf16>, vector<256x8xf32> -> vector<256x8xf32>
    %25 = arith.addf %18, %24 : vector<256x8xf32>
    %c1_25 = arith.constant 1 : index
    %c0_26 = arith.constant 0 : index
    %c0_27 = arith.constant 0 : index
    %26 = vector.load %arg8[%c1_25, %c0_26, %c0_27] : memref<18x18x4xf32, #tpu.memory_space<vmem>>, vector<16x16x4xf32>
    %27 = vector.shape_cast %26 : vector<16x16x4xf32> to vector<256x4xf32>
    %28 = arith.truncf %27 : vector<256x4xf32> to vector<256x4xbf16>
    %c3 = arith.constant 3 : index
    %c0_28 = arith.constant 0 : index
    %c0_29 = arith.constant 0 : index
    %29 = vector.load %arg2[%c3, %c0_28, %c0_29] : memref<9x4x8xbf16, #tpu.memory_space<vmem>>, vector<1x4x8xbf16>
    %30 = vector.shape_cast %29 : vector<1x4x8xbf16> to vector<4x8xbf16>
    %cst_30 = arith.constant dense<0.000000e+00> : vector<256x8xf32>
    %31 = tpu.matmul %28, %30, %cst_30 {dimension_numbers = #tpu.dot_dimension_numbers<[1], [0], [0], [1], [0, 0, 1, 1], [], []>} : vector<256x4xbf16>, vector<4x8xbf16>, vector<256x8xf32> -> vector<256x8xf32>
    %32 = arith.addf %25, %31 : vector<256x8xf32>
    %c1_31 = arith.constant 1 : index
    %c1_32 = arith.constant 1 : index
    %c0_33 = arith.constant 0 : index
    %33 = vector.load %arg8[%c1_31, %c1_32, %c0_33] : memref<18x18x4xf32, #tpu.memory_space<vmem>>, vector<16x16x4xf32>
    %34 = vector.shape_cast %33 : vector<16x16x4xf32> to vector<256x4xf32>
    %35 = arith.truncf %34 : vector<256x4xf32> to vector<256x4xbf16>
    %c4 = arith.constant 4 : index
    %c0_34 = arith.constant 0 : index
    %c0_35 = arith.constant 0 : index
    %36 = vector.load %arg2[%c4, %c0_34, %c0_35] : memref<9x4x8xbf16, #tpu.memory_space<vmem>>, vector<1x4x8xbf16>
    %37 = vector.shape_cast %36 : vector<1x4x8xbf16> to vector<4x8xbf16>
    %cst_36 = arith.constant dense<0.000000e+00> : vector<256x8xf32>
    %38 = tpu.matmul %35, %37, %cst_36 {dimension_numbers = #tpu.dot_dimension_numbers<[1], [0], [0], [1], [0, 0, 1, 1], [], []>} : vector<256x4xbf16>, vector<4x8xbf16>, vector<256x8xf32> -> vector<256x8xf32>
    %39 = arith.addf %32, %38 : vector<256x8xf32>
    %c1_37 = arith.constant 1 : index
    %c2_38 = arith.constant 2 : index
    %c0_39 = arith.constant 0 : index
    %40 = vector.load %arg8[%c1_37, %c2_38, %c0_39] : memref<18x18x4xf32, #tpu.memory_space<vmem>>, vector<16x16x4xf32>
    %41 = vector.shape_cast %40 : vector<16x16x4xf32> to vector<256x4xf32>
    %42 = arith.truncf %41 : vector<256x4xf32> to vector<256x4xbf16>
    %c5 = arith.constant 5 : index
    %c0_40 = arith.constant 0 : index
    %c0_41 = arith.constant 0 : index
    %43 = vector.load %arg2[%c5, %c0_40, %c0_41] : memref<9x4x8xbf16, #tpu.memory_space<vmem>>, vector<1x4x8xbf16>
    %44 = vector.shape_cast %43 : vector<1x4x8xbf16> to vector<4x8xbf16>
    %cst_42 = arith.constant dense<0.000000e+00> : vector<256x8xf32>
    %45 = tpu.matmul %42, %44, %cst_42 {dimension_numbers = #tpu.dot_dimension_numbers<[1], [0], [0], [1], [0, 0, 1, 1], [], []>} : vector<256x4xbf16>, vector<4x8xbf16>, vector<256x8xf32> -> vector<256x8xf32>
    %46 = arith.addf %39, %45 : vector<256x8xf32>
    %c2_43 = arith.constant 2 : index
    %c0_44 = arith.constant 0 : index
    %c0_45 = arith.constant 0 : index
    %47 = vector.load %arg8[%c2_43, %c0_44, %c0_45] : memref<18x18x4xf32, #tpu.memory_space<vmem>>, vector<16x16x4xf32>
    %48 = vector.shape_cast %47 : vector<16x16x4xf32> to vector<256x4xf32>
    %49 = arith.truncf %48 : vector<256x4xf32> to vector<256x4xbf16>
    %c6 = arith.constant 6 : index
    %c0_46 = arith.constant 0 : index
    %c0_47 = arith.constant 0 : index
    %50 = vector.load %arg2[%c6, %c0_46, %c0_47] : memref<9x4x8xbf16, #tpu.memory_space<vmem>>, vector<1x4x8xbf16>
    %51 = vector.shape_cast %50 : vector<1x4x8xbf16> to vector<4x8xbf16>
    %cst_48 = arith.constant dense<0.000000e+00> : vector<256x8xf32>
    %52 = tpu.matmul %49, %51, %cst_48 {dimension_numbers = #tpu.dot_dimension_numbers<[1], [0], [0], [1], [0, 0, 1, 1], [], []>} : vector<256x4xbf16>, vector<4x8xbf16>, vector<256x8xf32> -> vector<256x8xf32>
    %53 = arith.addf %46, %52 : vector<256x8xf32>
    %c2_49 = arith.constant 2 : index
    %c1_50 = arith.constant 1 : index
    %c0_51 = arith.constant 0 : index
    %54 = vector.load %arg8[%c2_49, %c1_50, %c0_51] : memref<18x18x4xf32, #tpu.memory_space<vmem>>, vector<16x16x4xf32>
    %55 = vector.shape_cast %54 : vector<16x16x4xf32> to vector<256x4xf32>
    %56 = arith.truncf %55 : vector<256x4xf32> to vector<256x4xbf16>
    %c7 = arith.constant 7 : index
    %c0_52 = arith.constant 0 : index
    %c0_53 = arith.constant 0 : index
    %57 = vector.load %arg2[%c7, %c0_52, %c0_53] : memref<9x4x8xbf16, #tpu.memory_space<vmem>>, vector<1x4x8xbf16>
    %58 = vector.shape_cast %57 : vector<1x4x8xbf16> to vector<4x8xbf16>
    %cst_54 = arith.constant dense<0.000000e+00> : vector<256x8xf32>
    %59 = tpu.matmul %56, %58, %cst_54 {dimension_numbers = #tpu.dot_dimension_numbers<[1], [0], [0], [1], [0, 0, 1, 1], [], []>} : vector<256x4xbf16>, vector<4x8xbf16>, vector<256x8xf32> -> vector<256x8xf32>
    %60 = arith.addf %53, %59 : vector<256x8xf32>
    %c2_55 = arith.constant 2 : index
    %c2_56 = arith.constant 2 : index
    %c0_57 = arith.constant 0 : index
    %61 = vector.load %arg8[%c2_55, %c2_56, %c0_57] : memref<18x18x4xf32, #tpu.memory_space<vmem>>, vector<16x16x4xf32>
    %62 = vector.shape_cast %61 : vector<16x16x4xf32> to vector<256x4xf32>
    %63 = arith.truncf %62 : vector<256x4xf32> to vector<256x4xbf16>
    %c8 = arith.constant 8 : index
    %c0_58 = arith.constant 0 : index
    %c0_59 = arith.constant 0 : index
    %64 = vector.load %arg2[%c8, %c0_58, %c0_59] : memref<9x4x8xbf16, #tpu.memory_space<vmem>>, vector<1x4x8xbf16>
    %65 = vector.shape_cast %64 : vector<1x4x8xbf16> to vector<4x8xbf16>
    %cst_60 = arith.constant dense<0.000000e+00> : vector<256x8xf32>
    %66 = tpu.matmul %63, %65, %cst_60 {dimension_numbers = #tpu.dot_dimension_numbers<[1], [0], [0], [1], [0, 0, 1, 1], [], []>} : vector<256x4xbf16>, vector<4x8xbf16>, vector<256x8xf32> -> vector<256x8xf32>
    %67 = arith.addf %60, %66 : vector<256x8xf32>
    %68 = arith.truncf %67 : vector<256x8xf32> to vector<256x8xbf16>
    %c0_61 = arith.constant 0 : index
    %c0_62 = arith.constant 0 : index
    %c0_63 = arith.constant 0 : index
    %69 = vector.load %arg6[%c0_61, %c0_62, %c0_63] : memref<1x256x8xbf16, #tpu.memory_space<vmem>>, vector<1x256x8xbf16>
    %70 = vector.shape_cast %69 : vector<1x256x8xbf16> to vector<256x8xbf16>
    %71 = vector.shape_cast %68 : vector<256x8xbf16> to vector<1x256x8xbf16>
    tpu.vector_store %arg6[%c0_61, %c0_62, %c0_63], %71 {strides = array<i32>} : memref<1x256x8xbf16, #tpu.memory_space<vmem>>, vector<1x256x8xbf16>,
    %cst_64 = arith.constant dense<0.000000e+00> : vector<8xf32>
    %72 = vector.multi_reduction <add>, %67, %cst_64 [0] : vector<256x8xf32> to vector<8xf32>
    %73 = vector.shape_cast %72 : vector<8xf32> to vector<1x8xf32>
    %c0_65 = arith.constant 0 : index
    %c0_66 = arith.constant 0 : index
    %c0_67 = arith.constant 0 : index
    %74 = vector.load %arg7[%c0_65, %c0_66, %c0_67] : memref<1x2x8xf32, #tpu.memory_space<vmem>>, vector<1x1x8xf32>
    %75 = vector.shape_cast %74 : vector<1x1x8xf32> to vector<1x8xf32>
    %76 = vector.shape_cast %73 : vector<1x8xf32> to vector<1x1x8xf32>
    tpu.vector_store %arg7[%c0_65, %c0_66, %c0_67], %76 {strides = array<i32>} : memref<1x2x8xf32, #tpu.memory_space<vmem>>, vector<1x1x8xf32>,
    %77 = arith.mulf %67, %67 : vector<256x8xf32>
    %cst_68 = arith.constant dense<0.000000e+00> : vector<8xf32>
    %78 = vector.multi_reduction <add>, %77, %cst_68 [0] : vector<256x8xf32> to vector<8xf32>
    %79 = vector.shape_cast %78 : vector<8xf32> to vector<1x8xf32>
    %c0_69 = arith.constant 0 : index
    %c1_70 = arith.constant 1 : index
    %c0_71 = arith.constant 0 : index
    %80 = vector.load %arg7[%c0_69, %c1_70, %c0_71] : memref<1x2x8xf32, #tpu.memory_space<vmem>>, vector<1x1x8xf32>
    %81 = vector.shape_cast %80 : vector<1x1x8xf32> to vector<1x8xf32>
    %82 = vector.shape_cast %79 : vector<1x8xf32> to vector<1x1x8xf32>
    tpu.vector_store %arg7[%c0_69, %c1_70, %c0_71], %82 {strides = array<i32>} : memref<1x2x8xf32, #tpu.memory_space<vmem>>, vector<1x1x8xf32>,
    return
  }
  func.func @transform_0(%arg0: i32) -> (i32, i32, i32, i32) {
    %c0_i32 = arith.constant 0 : i32
    %c0_i32_0 = arith.constant 0 : i32
    %c0_i32_1 = arith.constant 0 : i32
    %c0_i32_2 = arith.constant 0 : i32
    return %arg0, %c0_i32, %c0_i32_0, %c0_i32_1 : i32, i32, i32, i32
  }
  func.func @transform_1(%arg0: i32) -> (i32, i32, i32) {
    %c0_i32 = arith.constant 0 : i32
    %c0_i32_0 = arith.constant 0 : i32
    %c0_i32_1 = arith.constant 0 : i32
    %c0_i32_2 = arith.constant 0 : i32
    return %c0_i32, %c0_i32_0, %c0_i32_1 : i32, i32, i32
  }
  func.func @transform_2(%arg0: i32) -> (i32, i32) {
    %c0_i32 = arith.constant 0 : i32
    %c0_i32_0 = arith.constant 0 : i32
    %c0_i32_1 = arith.constant 0 : i32
    return %c0_i32, %c0_i32_0 : i32, i32
  }
  func.func @transform_3(%arg0: i32) -> (i32, i32) {
    %c0_i32 = arith.constant 0 : i32
    %c0_i32_0 = arith.constant 0 : i32
    %c0_i32_1 = arith.constant 0 : i32
    return %c0_i32, %c0_i32_0 : i32, i32
  }
  func.func @transform_4(%arg0: i32) -> (i32, i32, i32) {
    %c0_i32 = arith.constant 0 : i32
    %c0_i32_0 = arith.constant 0 : i32
    %c0_i32_1 = arith.constant 0 : i32
    %c0_i32_2 = arith.constant 0 : i32
    return %c0_i32, %c0_i32_0, %c0_i32_1 : i32, i32, i32
  }
  func.func @transform_5(%arg0: i32) -> (i32, i32, i32) {
    %c0_i32 = arith.constant 0 : i32
    %c0_i32_0 = arith.constant 0 : i32
    %c0_i32_1 = arith.constant 0 : i32
    return %arg0, %c0_i32, %c0_i32_0 : i32, i32, i32
  }
  func.func @transform_6(%arg0: i32) -> (i32, i32, i32) {
    %c0_i32 = arith.constant 0 : i32
    %c0_i32_0 = arith.constant 0 : i32
    %c0_i32_1 = arith.constant 0 : i32
    return %arg0, %c0_i32, %c0_i32_0 : i32, i32, i32
  }
}

module attributes {stable_mosaic.version = 11 : i64} {
  func.func @_conv_kernel(%arg0: i32, %arg1: memref<1x18x18x8xbf16, #tpu.memory_space<vmem>>, %arg2: memref<9x8x8xbf16, #tpu.memory_space<vmem>>, %arg3: memref<1x8xf32, #tpu.memory_space<vmem>>, %arg4: memref<1x8xf32, #tpu.memory_space<vmem>>, %arg5: memref<18x18x1xf32, #tpu.memory_space<vmem>>, %arg6: memref<1x256x8xbf16, #tpu.memory_space<vmem>>, %arg7: memref<1x2x8xf32, #tpu.memory_space<vmem>>, %arg8: memref<18x18x8xf32, #tpu.memory_space<vmem>>) attributes {dimension_semantics = [#tpu.dimension_semantics<parallel>], iteration_bounds = array<i64: 2>, scalar_prefetch = 0 : i64, scratch_operands = 1 : i64, tpu.core_type = #tpu.core_type<tc>, window_params = [{transform_indices = @transform_0, window_bounds = array<i64: 1, 18, 18, 8>}, {pipeline_mode = #tpu.pipeline_mode<synchronous>, transform_indices = @transform_1, window_bounds = array<i64: 9, 8, 8>}, {pipeline_mode = #tpu.pipeline_mode<synchronous>, transform_indices = @transform_2, window_bounds = array<i64: 1, 8>}, {pipeline_mode = #tpu.pipeline_mode<synchronous>, transform_indices = @transform_3, window_bounds = array<i64: 1, 8>}, {pipeline_mode = #tpu.pipeline_mode<synchronous>, transform_indices = @transform_4, window_bounds = array<i64: 18, 18, 1>}, {transform_indices = @transform_5, window_bounds = array<i64: 1, 256, 8>}, {transform_indices = @transform_6, window_bounds = array<i64: 1, 2, 8>}]} {
    %c0 = arith.constant 0 : index
    %c0_0 = arith.constant 0 : index
    %c0_1 = arith.constant 0 : index
    %c0_2 = arith.constant 0 : index
    %0 = vector.load %arg1[%c0, %c0_0, %c0_1, %c0_2] : memref<1x18x18x8xbf16, #tpu.memory_space<vmem>>, vector<1x18x18x8xbf16>
    %1 = vector.shape_cast %0 : vector<1x18x18x8xbf16> to vector<18x18x8xbf16>
    %2 = arith.extf %1 : vector<18x18x8xbf16> to vector<18x18x8xf32>
    %c0_3 = arith.constant 0 : index
    %c0_4 = arith.constant 0 : index
    %3 = vector.load %arg3[%c0_3, %c0_4] : memref<1x8xf32, #tpu.memory_space<vmem>>, vector<1x8xf32>
    %4 = vector.shape_cast %3 : vector<1x8xf32> to vector<1x1x8xf32>
    %5 = vector.broadcast %4 : vector<1x1x8xf32> to vector<18x18x8xf32>
    %6 = arith.mulf %2, %5 : vector<18x18x8xf32>
    %c0_5 = arith.constant 0 : index
    %c0_6 = arith.constant 0 : index
    %7 = vector.load %arg4[%c0_5, %c0_6] : memref<1x8xf32, #tpu.memory_space<vmem>>, vector<1x8xf32>
    %8 = vector.shape_cast %7 : vector<1x8xf32> to vector<1x1x8xf32>
    %9 = vector.broadcast %8 : vector<1x1x8xf32> to vector<18x18x8xf32>
    %10 = arith.addf %6, %9 : vector<18x18x8xf32>
    %cst = arith.constant 0.000000e+00 : f32
    %11 = vector.broadcast %cst : f32 to vector<18x18x8xf32>
    %12 = arith.maximumf %10, %11 : vector<18x18x8xf32>
    %c0_7 = arith.constant 0 : index
    %c0_8 = arith.constant 0 : index
    %c0_9 = arith.constant 0 : index
    %13 = vector.load %arg5[%c0_7, %c0_8, %c0_9] : memref<18x18x1xf32, #tpu.memory_space<vmem>>, vector<18x18x1xf32>
    %14 = vector.broadcast %13 : vector<18x18x1xf32> to vector<18x18x8xf32>
    %15 = arith.mulf %12, %14 : vector<18x18x8xf32>
    %c0_10 = arith.constant 0 : index
    %c0_11 = arith.constant 0 : index
    %c0_12 = arith.constant 0 : index
    %16 = vector.load %arg8[%c0_10, %c0_11, %c0_12] : memref<18x18x8xf32, #tpu.memory_space<vmem>>, vector<18x18x8xf32>
    tpu.vector_store %arg8[%c0_10, %c0_11, %c0_12], %15 {strides = array<i32>} : memref<18x18x8xf32, #tpu.memory_space<vmem>>, vector<18x18x8xf32>,
    %cst_13 = arith.constant 0.000000e+00 : f32
    %17 = vector.broadcast %cst_13 : f32 to vector<256x8xf32>
    %c0_14 = arith.constant 0 : index
    %c0_15 = arith.constant 0 : index
    %c0_16 = arith.constant 0 : index
    %18 = vector.load %arg8[%c0_14, %c0_15, %c0_16] : memref<18x18x8xf32, #tpu.memory_space<vmem>>, vector<16x16x8xf32>
    %19 = vector.shape_cast %18 : vector<16x16x8xf32> to vector<256x8xf32>
    %20 = arith.truncf %19 : vector<256x8xf32> to vector<256x8xbf16>
    %c0_17 = arith.constant 0 : index
    %c0_18 = arith.constant 0 : index
    %c0_19 = arith.constant 0 : index
    %21 = vector.load %arg2[%c0_17, %c0_18, %c0_19] : memref<9x8x8xbf16, #tpu.memory_space<vmem>>, vector<1x8x8xbf16>
    %22 = vector.shape_cast %21 : vector<1x8x8xbf16> to vector<8x8xbf16>
    %cst_20 = arith.constant dense<0.000000e+00> : vector<256x8xf32>
    %23 = tpu.matmul %20, %22, %cst_20 {dimension_numbers = #tpu.dot_dimension_numbers<[1], [0], [0], [1], [0, 0, 1, 1], [], []>} : vector<256x8xbf16>, vector<8x8xbf16>, vector<256x8xf32> -> vector<256x8xf32>
    %24 = arith.addf %17, %23 : vector<256x8xf32>
    %c0_21 = arith.constant 0 : index
    %c1 = arith.constant 1 : index
    %c0_22 = arith.constant 0 : index
    %25 = vector.load %arg8[%c0_21, %c1, %c0_22] : memref<18x18x8xf32, #tpu.memory_space<vmem>>, vector<16x16x8xf32>
    %26 = vector.shape_cast %25 : vector<16x16x8xf32> to vector<256x8xf32>
    %27 = arith.truncf %26 : vector<256x8xf32> to vector<256x8xbf16>
    %c1_23 = arith.constant 1 : index
    %c0_24 = arith.constant 0 : index
    %c0_25 = arith.constant 0 : index
    %28 = vector.load %arg2[%c1_23, %c0_24, %c0_25] : memref<9x8x8xbf16, #tpu.memory_space<vmem>>, vector<1x8x8xbf16>
    %29 = vector.shape_cast %28 : vector<1x8x8xbf16> to vector<8x8xbf16>
    %cst_26 = arith.constant dense<0.000000e+00> : vector<256x8xf32>
    %30 = tpu.matmul %27, %29, %cst_26 {dimension_numbers = #tpu.dot_dimension_numbers<[1], [0], [0], [1], [0, 0, 1, 1], [], []>} : vector<256x8xbf16>, vector<8x8xbf16>, vector<256x8xf32> -> vector<256x8xf32>
    %31 = arith.addf %24, %30 : vector<256x8xf32>
    %c0_27 = arith.constant 0 : index
    %c2 = arith.constant 2 : index
    %c0_28 = arith.constant 0 : index
    %32 = vector.load %arg8[%c0_27, %c2, %c0_28] : memref<18x18x8xf32, #tpu.memory_space<vmem>>, vector<16x16x8xf32>
    %33 = vector.shape_cast %32 : vector<16x16x8xf32> to vector<256x8xf32>
    %34 = arith.truncf %33 : vector<256x8xf32> to vector<256x8xbf16>
    %c2_29 = arith.constant 2 : index
    %c0_30 = arith.constant 0 : index
    %c0_31 = arith.constant 0 : index
    %35 = vector.load %arg2[%c2_29, %c0_30, %c0_31] : memref<9x8x8xbf16, #tpu.memory_space<vmem>>, vector<1x8x8xbf16>
    %36 = vector.shape_cast %35 : vector<1x8x8xbf16> to vector<8x8xbf16>
    %cst_32 = arith.constant dense<0.000000e+00> : vector<256x8xf32>
    %37 = tpu.matmul %34, %36, %cst_32 {dimension_numbers = #tpu.dot_dimension_numbers<[1], [0], [0], [1], [0, 0, 1, 1], [], []>} : vector<256x8xbf16>, vector<8x8xbf16>, vector<256x8xf32> -> vector<256x8xf32>
    %38 = arith.addf %31, %37 : vector<256x8xf32>
    %c1_33 = arith.constant 1 : index
    %c0_34 = arith.constant 0 : index
    %c0_35 = arith.constant 0 : index
    %39 = vector.load %arg8[%c1_33, %c0_34, %c0_35] : memref<18x18x8xf32, #tpu.memory_space<vmem>>, vector<16x16x8xf32>
    %40 = vector.shape_cast %39 : vector<16x16x8xf32> to vector<256x8xf32>
    %41 = arith.truncf %40 : vector<256x8xf32> to vector<256x8xbf16>
    %c3 = arith.constant 3 : index
    %c0_36 = arith.constant 0 : index
    %c0_37 = arith.constant 0 : index
    %42 = vector.load %arg2[%c3, %c0_36, %c0_37] : memref<9x8x8xbf16, #tpu.memory_space<vmem>>, vector<1x8x8xbf16>
    %43 = vector.shape_cast %42 : vector<1x8x8xbf16> to vector<8x8xbf16>
    %cst_38 = arith.constant dense<0.000000e+00> : vector<256x8xf32>
    %44 = tpu.matmul %41, %43, %cst_38 {dimension_numbers = #tpu.dot_dimension_numbers<[1], [0], [0], [1], [0, 0, 1, 1], [], []>} : vector<256x8xbf16>, vector<8x8xbf16>, vector<256x8xf32> -> vector<256x8xf32>
    %45 = arith.addf %38, %44 : vector<256x8xf32>
    %c1_39 = arith.constant 1 : index
    %c1_40 = arith.constant 1 : index
    %c0_41 = arith.constant 0 : index
    %46 = vector.load %arg8[%c1_39, %c1_40, %c0_41] : memref<18x18x8xf32, #tpu.memory_space<vmem>>, vector<16x16x8xf32>
    %47 = vector.shape_cast %46 : vector<16x16x8xf32> to vector<256x8xf32>
    %48 = arith.truncf %47 : vector<256x8xf32> to vector<256x8xbf16>
    %c4 = arith.constant 4 : index
    %c0_42 = arith.constant 0 : index
    %c0_43 = arith.constant 0 : index
    %49 = vector.load %arg2[%c4, %c0_42, %c0_43] : memref<9x8x8xbf16, #tpu.memory_space<vmem>>, vector<1x8x8xbf16>
    %50 = vector.shape_cast %49 : vector<1x8x8xbf16> to vector<8x8xbf16>
    %cst_44 = arith.constant dense<0.000000e+00> : vector<256x8xf32>
    %51 = tpu.matmul %48, %50, %cst_44 {dimension_numbers = #tpu.dot_dimension_numbers<[1], [0], [0], [1], [0, 0, 1, 1], [], []>} : vector<256x8xbf16>, vector<8x8xbf16>, vector<256x8xf32> -> vector<256x8xf32>
    %52 = arith.addf %45, %51 : vector<256x8xf32>
    %c1_45 = arith.constant 1 : index
    %c2_46 = arith.constant 2 : index
    %c0_47 = arith.constant 0 : index
    %53 = vector.load %arg8[%c1_45, %c2_46, %c0_47] : memref<18x18x8xf32, #tpu.memory_space<vmem>>, vector<16x16x8xf32>
    %54 = vector.shape_cast %53 : vector<16x16x8xf32> to vector<256x8xf32>
    %55 = arith.truncf %54 : vector<256x8xf32> to vector<256x8xbf16>
    %c5 = arith.constant 5 : index
    %c0_48 = arith.constant 0 : index
    %c0_49 = arith.constant 0 : index
    %56 = vector.load %arg2[%c5, %c0_48, %c0_49] : memref<9x8x8xbf16, #tpu.memory_space<vmem>>, vector<1x8x8xbf16>
    %57 = vector.shape_cast %56 : vector<1x8x8xbf16> to vector<8x8xbf16>
    %cst_50 = arith.constant dense<0.000000e+00> : vector<256x8xf32>
    %58 = tpu.matmul %55, %57, %cst_50 {dimension_numbers = #tpu.dot_dimension_numbers<[1], [0], [0], [1], [0, 0, 1, 1], [], []>} : vector<256x8xbf16>, vector<8x8xbf16>, vector<256x8xf32> -> vector<256x8xf32>
    %59 = arith.addf %52, %58 : vector<256x8xf32>
    %c2_51 = arith.constant 2 : index
    %c0_52 = arith.constant 0 : index
    %c0_53 = arith.constant 0 : index
    %60 = vector.load %arg8[%c2_51, %c0_52, %c0_53] : memref<18x18x8xf32, #tpu.memory_space<vmem>>, vector<16x16x8xf32>
    %61 = vector.shape_cast %60 : vector<16x16x8xf32> to vector<256x8xf32>
    %62 = arith.truncf %61 : vector<256x8xf32> to vector<256x8xbf16>
    %c6 = arith.constant 6 : index
    %c0_54 = arith.constant 0 : index
    %c0_55 = arith.constant 0 : index
    %63 = vector.load %arg2[%c6, %c0_54, %c0_55] : memref<9x8x8xbf16, #tpu.memory_space<vmem>>, vector<1x8x8xbf16>
    %64 = vector.shape_cast %63 : vector<1x8x8xbf16> to vector<8x8xbf16>
    %cst_56 = arith.constant dense<0.000000e+00> : vector<256x8xf32>
    %65 = tpu.matmul %62, %64, %cst_56 {dimension_numbers = #tpu.dot_dimension_numbers<[1], [0], [0], [1], [0, 0, 1, 1], [], []>} : vector<256x8xbf16>, vector<8x8xbf16>, vector<256x8xf32> -> vector<256x8xf32>
    %66 = arith.addf %59, %65 : vector<256x8xf32>
    %c2_57 = arith.constant 2 : index
    %c1_58 = arith.constant 1 : index
    %c0_59 = arith.constant 0 : index
    %67 = vector.load %arg8[%c2_57, %c1_58, %c0_59] : memref<18x18x8xf32, #tpu.memory_space<vmem>>, vector<16x16x8xf32>
    %68 = vector.shape_cast %67 : vector<16x16x8xf32> to vector<256x8xf32>
    %69 = arith.truncf %68 : vector<256x8xf32> to vector<256x8xbf16>
    %c7 = arith.constant 7 : index
    %c0_60 = arith.constant 0 : index
    %c0_61 = arith.constant 0 : index
    %70 = vector.load %arg2[%c7, %c0_60, %c0_61] : memref<9x8x8xbf16, #tpu.memory_space<vmem>>, vector<1x8x8xbf16>
    %71 = vector.shape_cast %70 : vector<1x8x8xbf16> to vector<8x8xbf16>
    %cst_62 = arith.constant dense<0.000000e+00> : vector<256x8xf32>
    %72 = tpu.matmul %69, %71, %cst_62 {dimension_numbers = #tpu.dot_dimension_numbers<[1], [0], [0], [1], [0, 0, 1, 1], [], []>} : vector<256x8xbf16>, vector<8x8xbf16>, vector<256x8xf32> -> vector<256x8xf32>
    %73 = arith.addf %66, %72 : vector<256x8xf32>
    %c2_63 = arith.constant 2 : index
    %c2_64 = arith.constant 2 : index
    %c0_65 = arith.constant 0 : index
    %74 = vector.load %arg8[%c2_63, %c2_64, %c0_65] : memref<18x18x8xf32, #tpu.memory_space<vmem>>, vector<16x16x8xf32>
    %75 = vector.shape_cast %74 : vector<16x16x8xf32> to vector<256x8xf32>
    %76 = arith.truncf %75 : vector<256x8xf32> to vector<256x8xbf16>
    %c8 = arith.constant 8 : index
    %c0_66 = arith.constant 0 : index
    %c0_67 = arith.constant 0 : index
    %77 = vector.load %arg2[%c8, %c0_66, %c0_67] : memref<9x8x8xbf16, #tpu.memory_space<vmem>>, vector<1x8x8xbf16>
    %78 = vector.shape_cast %77 : vector<1x8x8xbf16> to vector<8x8xbf16>
    %cst_68 = arith.constant dense<0.000000e+00> : vector<256x8xf32>
    %79 = tpu.matmul %76, %78, %cst_68 {dimension_numbers = #tpu.dot_dimension_numbers<[1], [0], [0], [1], [0, 0, 1, 1], [], []>} : vector<256x8xbf16>, vector<8x8xbf16>, vector<256x8xf32> -> vector<256x8xf32>
    %80 = arith.addf %73, %79 : vector<256x8xf32>
    %81 = arith.truncf %80 : vector<256x8xf32> to vector<256x8xbf16>
    %c0_69 = arith.constant 0 : index
    %c0_70 = arith.constant 0 : index
    %c0_71 = arith.constant 0 : index
    %82 = vector.load %arg6[%c0_69, %c0_70, %c0_71] : memref<1x256x8xbf16, #tpu.memory_space<vmem>>, vector<1x256x8xbf16>
    %83 = vector.shape_cast %82 : vector<1x256x8xbf16> to vector<256x8xbf16>
    %84 = vector.shape_cast %81 : vector<256x8xbf16> to vector<1x256x8xbf16>
    tpu.vector_store %arg6[%c0_69, %c0_70, %c0_71], %84 {strides = array<i32>} : memref<1x256x8xbf16, #tpu.memory_space<vmem>>, vector<1x256x8xbf16>,
    %cst_72 = arith.constant dense<0.000000e+00> : vector<8xf32>
    %85 = vector.multi_reduction <add>, %80, %cst_72 [0] : vector<256x8xf32> to vector<8xf32>
    %86 = vector.shape_cast %85 : vector<8xf32> to vector<1x8xf32>
    %c0_73 = arith.constant 0 : index
    %c0_74 = arith.constant 0 : index
    %c0_75 = arith.constant 0 : index
    %87 = vector.load %arg7[%c0_73, %c0_74, %c0_75] : memref<1x2x8xf32, #tpu.memory_space<vmem>>, vector<1x1x8xf32>
    %88 = vector.shape_cast %87 : vector<1x1x8xf32> to vector<1x8xf32>
    %89 = vector.shape_cast %86 : vector<1x8xf32> to vector<1x1x8xf32>
    tpu.vector_store %arg7[%c0_73, %c0_74, %c0_75], %89 {strides = array<i32>} : memref<1x2x8xf32, #tpu.memory_space<vmem>>, vector<1x1x8xf32>,
    %90 = arith.mulf %80, %80 : vector<256x8xf32>
    %cst_76 = arith.constant dense<0.000000e+00> : vector<8xf32>
    %91 = vector.multi_reduction <add>, %90, %cst_76 [0] : vector<256x8xf32> to vector<8xf32>
    %92 = vector.shape_cast %91 : vector<8xf32> to vector<1x8xf32>
    %c0_77 = arith.constant 0 : index
    %c1_78 = arith.constant 1 : index
    %c0_79 = arith.constant 0 : index
    %93 = vector.load %arg7[%c0_77, %c1_78, %c0_79] : memref<1x2x8xf32, #tpu.memory_space<vmem>>, vector<1x1x8xf32>
    %94 = vector.shape_cast %93 : vector<1x1x8xf32> to vector<1x8xf32>
    %95 = vector.shape_cast %92 : vector<1x8xf32> to vector<1x1x8xf32>
    tpu.vector_store %arg7[%c0_77, %c1_78, %c0_79], %95 {strides = array<i32>} : memref<1x2x8xf32, #tpu.memory_space<vmem>>, vector<1x1x8xf32>,
    return
  }
  func.func @transform_0(%arg0: i32) -> (i32, i32, i32, i32) {
    %c0_i32 = arith.constant 0 : i32
    %c0_i32_0 = arith.constant 0 : i32
    %c0_i32_1 = arith.constant 0 : i32
    %c0_i32_2 = arith.constant 0 : i32
    return %arg0, %c0_i32, %c0_i32_0, %c0_i32_1 : i32, i32, i32, i32
  }
  func.func @transform_1(%arg0: i32) -> (i32, i32, i32) {
    %c0_i32 = arith.constant 0 : i32
    %c0_i32_0 = arith.constant 0 : i32
    %c0_i32_1 = arith.constant 0 : i32
    %c0_i32_2 = arith.constant 0 : i32
    return %c0_i32, %c0_i32_0, %c0_i32_1 : i32, i32, i32
  }
  func.func @transform_2(%arg0: i32) -> (i32, i32) {
    %c0_i32 = arith.constant 0 : i32
    %c0_i32_0 = arith.constant 0 : i32
    %c0_i32_1 = arith.constant 0 : i32
    return %c0_i32, %c0_i32_0 : i32, i32
  }
  func.func @transform_3(%arg0: i32) -> (i32, i32) {
    %c0_i32 = arith.constant 0 : i32
    %c0_i32_0 = arith.constant 0 : i32
    %c0_i32_1 = arith.constant 0 : i32
    return %c0_i32, %c0_i32_0 : i32, i32
  }
  func.func @transform_4(%arg0: i32) -> (i32, i32, i32) {
    %c0_i32 = arith.constant 0 : i32
    %c0_i32_0 = arith.constant 0 : i32
    %c0_i32_1 = arith.constant 0 : i32
    %c0_i32_2 = arith.constant 0 : i32
    return %c0_i32, %c0_i32_0, %c0_i32_1 : i32, i32, i32
  }
  func.func @transform_5(%arg0: i32) -> (i32, i32, i32) {
    %c0_i32 = arith.constant 0 : i32
    %c0_i32_0 = arith.constant 0 : i32
    %c0_i32_1 = arith.constant 0 : i32
    return %arg0, %c0_i32, %c0_i32_0 : i32, i32, i32
  }
  func.func @transform_6(%arg0: i32) -> (i32, i32, i32) {
    %c0_i32 = arith.constant 0 : i32
    %c0_i32_0 = arith.constant 0 : i32
    %c0_i32_1 = arith.constant 0 : i32
    return %arg0, %c0_i32, %c0_i32_0 : i32, i32, i32
  }
}

module attributes {stable_mosaic.version = 11 : i64} {
  func.func @_bn_relu_kernel(%arg0: i32, %arg1: memref<1x256x8xbf16, #tpu.memory_space<vmem>>, %arg2: memref<1x8xf32, #tpu.memory_space<vmem>>, %arg3: memref<1x8xf32, #tpu.memory_space<vmem>>, %arg4: memref<1x256x8xf32, #tpu.memory_space<vmem>>) attributes {dimension_semantics = [#tpu.dimension_semantics<parallel>], iteration_bounds = array<i64: 2>, scalar_prefetch = 0 : i64, scratch_operands = 0 : i64, tpu.core_type = #tpu.core_type<tc>, window_params = [{transform_indices = @transform_0, window_bounds = array<i64: 1, 256, 8>}, {pipeline_mode = #tpu.pipeline_mode<synchronous>, transform_indices = @transform_1, window_bounds = array<i64: 1, 8>}, {pipeline_mode = #tpu.pipeline_mode<synchronous>, transform_indices = @transform_2, window_bounds = array<i64: 1, 8>}, {transform_indices = @transform_3, window_bounds = array<i64: 1, 256, 8>}]} {
    %c0 = arith.constant 0 : index
    %c0_0 = arith.constant 0 : index
    %c0_1 = arith.constant 0 : index
    %0 = vector.load %arg1[%c0, %c0_0, %c0_1] : memref<1x256x8xbf16, #tpu.memory_space<vmem>>, vector<1x256x8xbf16>
    %1 = vector.shape_cast %0 : vector<1x256x8xbf16> to vector<256x8xbf16>
    %2 = arith.extf %1 : vector<256x8xbf16> to vector<256x8xf32>
    %c0_2 = arith.constant 0 : index
    %c0_3 = arith.constant 0 : index
    %3 = vector.load %arg2[%c0_2, %c0_3] : memref<1x8xf32, #tpu.memory_space<vmem>>, vector<1x8xf32>
    %4 = vector.broadcast %3 : vector<1x8xf32> to vector<256x8xf32>
    %5 = arith.mulf %2, %4 : vector<256x8xf32>
    %c0_4 = arith.constant 0 : index
    %c0_5 = arith.constant 0 : index
    %6 = vector.load %arg3[%c0_4, %c0_5] : memref<1x8xf32, #tpu.memory_space<vmem>>, vector<1x8xf32>
    %7 = vector.broadcast %6 : vector<1x8xf32> to vector<256x8xf32>
    %8 = arith.addf %5, %7 : vector<256x8xf32>
    %cst = arith.constant 0.000000e+00 : f32
    %9 = vector.broadcast %cst : f32 to vector<256x8xf32>
    %10 = arith.maximumf %8, %9 : vector<256x8xf32>
    %c0_6 = arith.constant 0 : index
    %c0_7 = arith.constant 0 : index
    %c0_8 = arith.constant 0 : index
    %11 = vector.load %arg4[%c0_6, %c0_7, %c0_8] : memref<1x256x8xf32, #tpu.memory_space<vmem>>, vector<1x256x8xf32>
    %12 = vector.shape_cast %11 : vector<1x256x8xf32> to vector<256x8xf32>
    %13 = vector.shape_cast %10 : vector<256x8xf32> to vector<1x256x8xf32>
    tpu.vector_store %arg4[%c0_6, %c0_7, %c0_8], %13 {strides = array<i32>} : memref<1x256x8xf32, #tpu.memory_space<vmem>>, vector<1x256x8xf32>,
    return
  }
  func.func @transform_0(%arg0: i32) -> (i32, i32, i32) {
    %c0_i32 = arith.constant 0 : i32
    %c0_i32_0 = arith.constant 0 : i32
    %c0_i32_1 = arith.constant 0 : i32
    return %arg0, %c0_i32, %c0_i32_0 : i32, i32, i32
  }
  func.func @transform_1(%arg0: i32) -> (i32, i32) {
    %c0_i32 = arith.constant 0 : i32
    %c0_i32_0 = arith.constant 0 : i32
    %c0_i32_1 = arith.constant 0 : i32
    return %c0_i32, %c0_i32_0 : i32, i32
  }
  func.func @transform_2(%arg0: i32) -> (i32, i32) {
    %c0_i32 = arith.constant 0 : i32
    %c0_i32_0 = arith.constant 0 : i32
    %c0_i32_1 = arith.constant 0 : i32
    return %c0_i32, %c0_i32_0 : i32, i32
  }
  func.func @transform_3(%arg0: i32) -> (i32, i32, i32) {
    %c0_i32 = arith.constant 0 : i32
    %c0_i32_0 = arith.constant 0 : i32
    %c0_i32_1 = arith.constant 0 : i32
    return %arg0, %c0_i32, %c0_i32_0 : i32, i32, i32
  }
}

</mosaic_0001>

<bundles_post_ra>
// kernel: double_conv.5
= control target key start
LH: loop header
LB: loop body
LE: loop exit
PB: predicated region body
PF: predicated region fallthrough
CT: control target
= control target key end

     0   :  { %s563_s12 = smov 0   ;;  %s742_s0 = inlined_call_operand.vmem [shape: bf16[2,256,8], index: 0, kind: input, shape index: {}]   ;;  %s743_s1 = inlined_call_operand.vmem [shape: f32[1,8], index: 1, kind: input, shape index: {}]   ;;  %s744_s2 = inlined_call_operand.vmem [shape: f32[1,8], index: 2, kind: input, shape index: {}]   ;;  %s745_s3 = inlined_call_operand.vmem [shape: f32[2,256,8], index: 3, kind: output, shape index: {}]  }
   0x1 LB: > { %s433_s13 = sadd.s32 4294967295, %s541_s12   ;;  %p437_p0 = scmp.ge.s32.totalorder %s541_s12, 1  ;;  %s541_s12 = sphi %s563_s12, %s13_s12  }
   0x2   : > { %p137_p1 = scmp.lt.s32.totalorder %s541_s12, 3 }
   0x4   : > { %p138_p2 = pnand %p437_p0, %p137_p1 }
   0x5   : > { %p161_p3 = scmp.lt.s32.totalorder (!%p138_p2), %s433_s13, 1  ;;  %v582_v0 = vld [vmem:[%s743_s1] ss:$0 sm:$0xff] (!%p138_p2)  ;;  %vm345_vm0 = vcmask (!%p138_p2), 64512  }
   0x6   : > { %141 = sbr.rel (%p138_p2) target bundleno = 53 (0x35), region = 32  ;;  %v591_v9 = vld [vmem:[%s744_s2] ss:$0 sm:$0xff] (!%p138_p2) }
   0xd   : > { %s747_s13 = smov (!%p161_p3, %s433_s13), 1 }
   0xe   : > { %s446_s14 = sshll.u32 %s747_s13, 7  ;;  %s447_s22 = sshll.u32 %s747_s13, 8 }
   0xf   : > { %s577_s17 = scalar_lea.vmem %s742_s0, %s446_s14  ;;  %s609_s25 = scalar_lea.vmem %s745_s3, %s447_s22 }
  0x10   : > { %v449_v1 = vld [vmem:[%s577_s17] sm:$0xff]   ;;  %v512_v2 = vld [vmem:[%s577_s17 + $0x8] sm:$0xff]   ;;  %v513_v3 = vld [vmem:[%s577_s17 + $0x10] sm:$0xff]  }
  0x11   : > { %v450_v4 = vunpack.c.l.bf16 %v449_v1  ;;  %v451_v5 = vunpack.c.h.bf16 %v449_v1  ;;  %v454_v6 = vunpack.c.l.bf16 %v512_v2  ;;  %v455_v7 = vunpack.c.h.bf16 %v512_v2  ;;  %v514_v8 = vld [vmem:[%s577_s17 + $0x18] sm:$0xff]   ;;  %v515_v30 = vld [vmem:[%s577_s17 + $0x20] sm:$0xff]   ;;  %v516_v31 = vld [vmem:[%s577_s17 + $0x28] sm:$0xff]  }
  0x12   : > { %v458_v10 = vunpack.c.l.bf16 %v513_v3  ;;  %v459_v11 = vunpack.c.h.bf16 %v513_v3  ;;  %v462_v12 = vunpack.c.l.bf16 %v514_v8  ;;  %v463_v13 = vunpack.c.h.bf16 %v514_v8  ;;  %v517_v36 = vld [vmem:[%s577_s17 + $0x30] sm:$0xff]   ;;  %v518_v37 = vld [vmem:[%s577_s17 + $0x38] sm:$0xff]   ;;  %v519_v3 = vld [vmem:[%s577_s17 + $0x40] sm:$0xff]  }
  0x13   : > { %v242_v14 = vmul.f32 %v450_v4, %v582_v0  ;;  %v243_v15 = vmul.f32 %v451_v5, %v582_v0  ;;  %v244_v16 = vmul.f32 %v454_v6, %v582_v0  ;;  %v245_v17 = vmul.f32 %v455_v7, %v582_v0  ;;  %v520_v4 = vld [vmem:[%s577_s17 + $0x48] sm:$0xff]  }
  0x14   : > { %v246_v18 = vmul.f32 %v458_v10, %v582_v0  ;;  %v247_v19 = vmul.f32 %v459_v11, %v582_v0  ;;  %v248_v20 = vmul.f32 %v462_v12, %v582_v0  ;;  %v249_v21 = vmul.f32 %v463_v13, %v582_v0  ;;  %v521_v10 = vld [vmem:[%s577_s17 + $0x50] sm:$0xff]   ;;  %v522_v11 = vld [vmem:[%s577_s17 + $0x58] sm:$0xff]  }
  0x15   : > { %v281_v22 = vadd.f32 %v591_v9, %v242_v14  ;;  %v282_v23 = vadd.f32 %v591_v9, %v243_v15  ;;  %v283_v24 = vadd.f32 %v591_v9, %v244_v16  ;;  %v284_v25 = vadd.f32 %v591_v9, %v245_v17 }
  0x16   : > { %v285_v26 = vadd.f32 %v591_v9, %v246_v18  ;;  %v286_v27 = vadd.f32 %v591_v9, %v247_v19  ;;  %v287_v28 = vadd.f32 %v591_v9, %v248_v20  ;;  %v288_v29 = vadd.f32 %v591_v9, %v249_v21 }
  0x17   : > { %v313_v32 = vmax.f32 %v281_v22, 0.0  ;;  %v314_v33 = vmax.f32 %v282_v23, 0.0  ;;  %v315_v34 = vmax.f32 %v283_v24, 0.0  ;;  %v316_v35 = vmax.f32 %v284_v25, 0.0 }
  0x18   : > { %v317_v38 = vmax.f32 %v285_v26, 0.0  ;;  %v318_v39 = vmax.f32 %v286_v27, 0.0  ;;  %v319_v40 = vmax.f32 %v287_v28, 0.0  ;;  %v320_v41 = vmax.f32 %v288_v29, 0.0 }
  0x19   : > { %346 = vst.msk [vmem:[%s609_s25] sm:$0xff] %vm345_vm0, %v313_v32  ;;  %347 = vst.msk [vmem:[%s609_s25 + $0x8] sm:$0xff] %vm345_vm0, %v314_v33  ;;  %v466_v42 = vunpack.c.l.bf16 %v515_v30  ;;  %v467_v43 = vunpack.c.h.bf16 %v515_v30  ;;  %v470_v44 = vunpack.c.l.bf16 %v516_v31  ;;  %v471_v45 = vunpack.c.h.bf16 %v516_v31 }
  0x1a   : > { %348 = vst.msk [vmem:[%s609_s25 + $0x10] sm:$0xff] %vm345_vm0, %v315_v34  ;;  %349 = vst.msk [vmem:[%s609_s25 + $0x18] sm:$0xff] %vm345_vm0, %v316_v35  ;;  %v474_v46 = vunpack.c.l.bf16 %v517_v36  ;;  %v475_v47 = vunpack.c.h.bf16 %v517_v36  ;;  %v478_v48 = vunpack.c.l.bf16 %v518_v37  ;;  %v479_v49 = vunpack.c.h.bf16 %v518_v37 }
  0x1b   : > { %350 = vst.msk [vmem:[%s609_s25 + $0x20] sm:$0xff] %vm345_vm0, %v317_v38  ;;  %351 = vst.msk [vmem:[%s609_s25 + $0x28] sm:$0xff] %vm345_vm0, %v318_v39  ;;  %v250_v50 = vmul.f32 %v466_v42, %v582_v0  ;;  %v251_v51 = vmul.f32 %v467_v43, %v582_v0  ;;  %v252_v52 = vmul.f32 %v470_v44, %v582_v0  ;;  %v482_v16 = vunpack.c.l.bf16 %v519_v3 }
  0x1c   : > { %352 = vst.msk [vmem:[%s609_s25 + $0x30] sm:$0xff] %vm345_vm0, %v319_v40  ;;  %353 = vst.msk [vmem:[%s609_s25 + $0x38] sm:$0xff] %vm345_vm0, %v320_v41  ;;  %v253_v53 = vmul.f32 %v471_v45, %v582_v0  ;;  %v254_v54 = vmul.f32 %v474_v46, %v582_v0  ;;  %v255_v55 = vmul.f32 %v475_v47, %v582_v0  ;;  %v483_v17 = vunpack.c.h.bf16 %v519_v3  ;;  %v523_v40 = vld [vmem:[%s577_s17 + $0x60] sm:$0xff]   ;;  %v524_v41 = vld [vmem:[%s577_s17 + $0x68] sm:$0xff]  }
  0x1d   : > { %v256_v56 = vmul.f32 %v478_v48, %v582_v0  ;;  %v257_v57 = vmul.f32 %v479_v49, %v582_v0  ;;  %v289_v58 = vadd.f32 %v591_v9, %v250_v50  ;;  %v290_v59 = vadd.f32 %v591_v9, %v251_v51  ;;  %v525_v46 = vld [vmem:[%s577_s17 + $0x70] sm:$0xff]   ;;  %v526_v47 = vld [vmem:[%s577_s17 + $0x78] sm:$0xff]  }
  0x1e   : > { %v291_v60 = vadd.f32 %v591_v9, %v252_v52  ;;  %v292_v61 = vadd.f32 %v591_v9, %v253_v53  ;;  %v293_v62 = vadd.f32 %v591_v9, %v254_v54  ;;  %v294_v63 = vadd.f32 %v591_v9, %v255_v55 }
  0x1f   : > { %v295_v1 = vadd.f32 %v591_v9, %v256_v56  ;;  %v296_v2 = vadd.f32 %v591_v9, %v257_v57  ;;  %v321_v5 = vmax.f32 %v289_v58, 0.0  ;;  %v322_v6 = vmax.f32 %v290_v59, 0.0 }
  0x20   : > { %v323_v7 = vmax.f32 %v291_v60, 0.0  ;;  %v324_v8 = vmax.f32 %v292_v61, 0.0  ;;  %v325_v12 = vmax.f32 %v293_v62, 0.0  ;;  %v326_v13 = vmax.f32 %v294_v63, 0.0 }
  0x21   : > { %v327_v14 = vmax.f32 %v295_v1, 0.0  ;;  %v328_v15 = vmax.f32 %v296_v2, 0.0  ;;  %354 = vst.msk [vmem:[%s609_s25 + $0x40] sm:$0xff] %vm345_vm0, %v321_v5  ;;  %355 = vst.msk [vmem:[%s609_s25 + $0x48] sm:$0xff] %vm345_vm0, %v322_v6  ;;  %v486_v18 = vunpack.c.l.bf16 %v520_v4  ;;  %v487_v19 = vunpack.c.h.bf16 %v520_v4 }
  0x22   : > { %356 = vst.msk [vmem:[%s609_s25 + $0x50] sm:$0xff] %vm345_vm0, %v323_v7  ;;  %357 = vst.msk [vmem:[%s609_s25 + $0x58] sm:$0xff] %vm345_vm0, %v324_v8  ;;  %v490_v20 = vunpack.c.l.bf16 %v521_v10  ;;  %v491_v21 = vunpack.c.h.bf16 %v521_v10  ;;  %v494_v22 = vunpack.c.l.bf16 %v522_v11  ;;  %v495_v23 = vunpack.c.h.bf16 %v522_v11 }
  0x23   : > { %358 = vst.msk [vmem:[%s609_s25 + $0x60] sm:$0xff] %vm345_vm0, %v325_v12  ;;  %359 = vst.msk [vmem:[%s609_s25 + $0x68] sm:$0xff] %vm345_vm0, %v326_v13  ;;  %v258_v24 = vmul.f32 %v482_v16, %v582_v0  ;;  %v259_v25 = vmul.f32 %v483_v17, %v582_v0  ;;  %v260_v26 = vmul.f32 %v486_v18, %v582_v0  ;;  %v498_v52 = vunpack.c.l.bf16 %v523_v40 }
  0x24   : > { %360 = vst.msk [vmem:[%s609_s25 + $0x70] sm:$0xff] %vm345_vm0, %v327_v14  ;;  %361 = vst.msk [vmem:[%s609_s25 + $0x78] sm:$0xff] %vm345_vm0, %v328_v15  ;;  %v261_v27 = vmul.f32 %v487_v19, %v582_v0  ;;  %v262_v28 = vmul.f32 %v490_v20, %v582_v0  ;;  %v263_v29 = vmul.f32 %v491_v21, %v582_v0  ;;  %v499_v53 = vunpack.c.h.bf16 %v523_v40 }
  0x25   : > { %v264_v30 = vmul.f32 %v494_v22, %v582_v0  ;;  %v265_v31 = vmul.f32 %v495_v23, %v582_v0  ;;  %v297_v32 = vadd.f32 %v591_v9, %v258_v24  ;;  %v298_v33 = vadd.f32 %v591_v9, %v259_v25 }
  0x26   : > { %v299_v34 = vadd.f32 %v591_v9, %v260_v26  ;;  %v300_v35 = vadd.f32 %v591_v9, %v261_v27  ;;  %v301_v36 = vadd.f32 %v591_v9, %v262_v28  ;;  %v302_v37 = vadd.f32 %v591_v9, %v263_v29 }
  0x27   : > { %v303_v38 = vadd.f32 %v591_v9, %v264_v30  ;;  %v304_v39 = vadd.f32 %v591_v9, %v265_v31  ;;  %v329_v42 = vmax.f32 %v297_v32, 0.0  ;;  %v330_v43 = vmax.f32 %v298_v33, 0.0 }
  0x28   : > { %v331_v44 = vmax.f32 %v299_v34, 0.0  ;;  %v332_v45 = vmax.f32 %v300_v35, 0.0  ;;  %v333_v48 = vmax.f32 %v301_v36, 0.0  ;;  %v334_v49 = vmax.f32 %v302_v37, 0.0 }
  0x29   : > { %v335_v50 = vmax.f32 %v303_v38, 0.0  ;;  %v336_v51 = vmax.f32 %v304_v39, 0.0  ;;  %362 = vst.msk [vmem:[%s609_s25 + $0x80] sm:$0xff] %vm345_vm0, %v329_v42  ;;  %363 = vst.msk [vmem:[%s609_s25 + $0x88] sm:$0xff] %vm345_vm0, %v330_v43  ;;  %v502_v54 = vunpack.c.l.bf16 %v524_v41  ;;  %v503_v55 = vunpack.c.h.bf16 %v524_v41 }
  0x2a   : > { %364 = vst.msk [vmem:[%s609_s25 + $0x90] sm:$0xff] %vm345_vm0, %v331_v44  ;;  %365 = vst.msk [vmem:[%s609_s25 + $0x98] sm:$0xff] %vm345_vm0, %v332_v45  ;;  %v506_v56 = vunpack.c.l.bf16 %v525_v46  ;;  %v507_v57 = vunpack.c.h.bf16 %v525_v46  ;;  %v510_v58 = vunpack.c.l.bf16 %v526_v47  ;;  %v511_v59 = vunpack.c.h.bf16 %v526_v47 }
  0x2b   : > { %366 = vst.msk [vmem:[%s609_s25 + $0xa0] sm:$0xff] %vm345_vm0, %v333_v48  ;;  %367 = vst.msk [vmem:[%s609_s25 + $0xa8] sm:$0xff] %vm345_vm0, %v334_v49  ;;  %v266_v60 = vmul.f32 %v498_v52, %v582_v0  ;;  %v267_v61 = vmul.f32 %v499_v53, %v582_v0  ;;  %v268_v62 = vmul.f32 %v502_v54, %v582_v0 }
  0x2c   : > { %368 = vst.msk [vmem:[%s609_s25 + $0xb0] sm:$0xff] %vm345_vm0, %v335_v50  ;;  %369 = vst.msk [vmem:[%s609_s25 + $0xb8] sm:$0xff] %vm345_vm0, %v336_v51  ;;  %v269_v63 = vmul.f32 %v503_v55, %v582_v0  ;;  %v270_v1 = vmul.f32 %v506_v56, %v582_v0  ;;  %v271_v2 = vmul.f32 %v507_v57, %v582_v0 }
  0x2d   : > { %v272_v3 = vmul.f32 %v510_v58, %v582_v0  ;;  %v273_v4 = vmul.f32 %v511_v59, %v582_v0  ;;  %v305_v5 = vadd.f32 %v591_v9, %v266_v60  ;;  %v306_v6 = vadd.f32 %v591_v9, %v267_v61 }
  0x2e   : > { %v307_v7 = vadd.f32 %v591_v9, %v268_v62  ;;  %v308_v8 = vadd.f32 %v591_v9, %v269_v63  ;;  %v309_v10 = vadd.f32 %v591_v9, %v270_v1  ;;  %v310_v11 = vadd.f32 %v591_v9, %v271_v2 }
  0x2f   : > { %v311_v0 = vadd.f32 %v591_v9, %v272_v3  ;;  %v312_v12 = vadd.f32 %v591_v9, %v273_v4  ;;  %v337_v13 = vmax.f32 %v305_v5, 0.0  ;;  %v338_v14 = vmax.f32 %v306_v6, 0.0 }
  0x30   : > { %v339_v15 = vmax.f32 %v307_v7, 0.0  ;;  %v340_v16 = vmax.f32 %v308_v8, 0.0  ;;  %v341_v17 = vmax.f32 %v309_v10, 0.0  ;;  %v342_v18 = vmax.f32 %v310_v11, 0.0 }
  0x31   : > { %v343_v19 = vmax.f32 %v311_v0, 0.0  ;;  %v344_v20 = vmax.f32 %v312_v12, 0.0  ;;  %370 = vst.msk [vmem:[%s609_s25 + $0xc0] sm:$0xff] %vm345_vm0, %v337_v13  ;;  %371 = vst.msk [vmem:[%s609_s25 + $0xc8] sm:$0xff] %vm345_vm0, %v338_v14 }
  0x32   : > { %372 = vst.msk [vmem:[%s609_s25 + $0xd0] sm:$0xff] %vm345_vm0, %v339_v15  ;;  %373 = vst.msk [vmem:[%s609_s25 + $0xd8] sm:$0xff] %vm345_vm0, %v340_v16 }
  0x33   : > { %374 = vst.msk [vmem:[%s609_s25 + $0xe0] sm:$0xff] %vm345_vm0, %v341_v17  ;;  %375 = vst.msk [vmem:[%s609_s25 + $0xe8] sm:$0xff] %vm345_vm0, %v342_v18 }
  0x34   : > { %376 = vst.msk [vmem:[%s609_s25 + $0xf0] sm:$0xff] %vm345_vm0, %v343_v19  ;;  %377 = vst.msk [vmem:[%s609_s25 + $0xf8] sm:$0xff] %vm345_vm0, %v344_v20 }
  0x35 PF: > { %s13_s12 = sadd.s32 1, %s541_s12  }
  0x36   : > { %p10_p4 = scmp.ge.s32.totalorder %s13_s12, 4  }
  0x38   :  { %12 = sbr.rel (!%p10_p4) target bundleno = 1 (0x1), region = 62 }

// kernel: double_conv.3
= control target key start
LH: loop header
LB: loop body
LE: loop exit
PB: predicated region body
PF: predicated region fallthrough
CT: control target
= control target key end

     0   :  { %s4484_s21 = smov 0   ;;  %s5201_s0 = inlined_call_operand.vmem [shape: bf16[2,18,18,4], index: 0, kind: input, shape index: {}]   ;;  %s5202_s1 = inlined_call_operand.vmem [shape: bf16[9,4,8], index: 1, kind: input, shape index: {}]   ;;  %s5203_s2 = inlined_call_operand.vmem [shape: f32[1,4], index: 2, kind: input, shape index: {}]   ;;  %s5204_s3 = inlined_call_operand.vmem [shape: f32[1,4], index: 3, kind: input, shape index: {}]   ;;  %s5205_s4 = inlined_call_operand.vmem [shape: f32[18,18,1], index: 4, kind: input, shape index: {}]   ;;  %s5206_s5 = inlined_call_operand.vmem [shape: bf16[2,256,8], index: 5, kind: output, shape index: {0}]   ;;  %s5207_s6 = inlined_call_operand.vmem [shape: f32[2,2,8], index: 6, kind: output, shape index: {1}]  }
   0x1 LB: > { %s3433_s2 = sadd.s32 4294967295, %s4447_s21   ;;  %p3437_p0 = scmp.ge.s32.totalorder %s4447_s21, 1  ;;  %s4447_s21 = sphi %s4484_s21, %s17_s21  }
   0x2   : > { %p215_p1 = scmp.lt.s32.totalorder %s4447_s21, 3 }
   0x4   : > { %p216_p2 = pnand %p3437_p0, %p215_p1 }
   0x5   : > { %v3442_v0 = vld [vmem:[%s5202_s1 + $0x2] sm:$0x3] (!%p216_p2)  ;;  %vm575_vm0 = vcmask (!%p216_p2), 1041408   ;;  %v4498_v1 = vld [vmem:[%s5202_s1 + $0x8] sm:$0x3] (!%p216_p2)  ;;  %p249_p3 = scmp.lt.s32.totalorder (!%p216_p2), %s3433_s2, 1 }
   0x6   : > { %219 = sbr.rel (%p216_p2) target bundleno = 556 (0x22c), region = 40  ;;  %4422 = vmatprep.subr.msk.bf16.mxu1 (!%p216_p2), %vm575_vm0, %v3442_v0  ;;  %4426 = vmatprep.subr.msk.bf16.mxu0 (!%p216_p2), %vm575_vm0, %v4498_v1  ;;  %v577_v2 = vsel (!%p216_p2), %vm575_vm0, %v3442_v0, 0  ;;  %v4506_v3 = vsel (!%p216_p2), %vm575_vm0, %v4498_v1, 0  ;;  %v476_v4 = vld [vmem:[%s5202_s1] sm:$0x3] (!%p216_p2)  ;;  %vm372_vm1 = vcmask (!%p216_p2), 31744  }
   0x7   : > { %3859 = vmatpush3.bf16.msra.mxu1 (!%p216_p2), %v577_v2  ;;  %3995 = vmatpush3.bf16.msra.mxu0 (!%p216_p2), %v4506_v3  ;;  %v4517_v5 = vld [vmem:[%s5202_s1 + $0xa] sm:$0x3] (!%p216_p2)  ;;  %vm375_vm2 = vcmask (!%p216_p2), 25600   ;;  %v4532_v9 = vsel (!%p216_p2), %vm575_vm0, %v476_v4, 0  ;;  %vm3140_vm3 = vcmask (!%p216_p2), 60416   ;;  %vm3173_vm4 = vcmask (!%p216_p2), 64512  }
   0x8   : > { %4423 = vmatprep.subr.msk.bf16.mxu1 (!%p216_p2), %vm575_vm0, %v476_v4  ;;  %4428 = vmatprep.subr.msk.bf16.mxu0 (!%p216_p2), %vm575_vm0, %v4517_v5  ;;  %vm3243_vm5 = vcmask (!%p216_p2), 57344  }
   0xd   : > { %s5209_s2 = smov (!%p249_p3, %s3433_s2), 1 }
   0xe   : > { %s4432_s28 = smul.u32 216, %s5209_s2  ;;  %s3628_s18 = sshll.u32 %s5209_s2, 7 }
   0xf   : > { %s5056_s3 = scalar_lea.vmem %s5206_s5, %s3628_s18  ;;  %s3441_s4 = sshll.u32 %s5209_s2, 1 }
  0x10   : > { %s4526_s7 = scalar_lea.vmem %s5201_s0, %s4432_s28  ;;  %s262_s24 = scalar_lea.vmem %s5207_s6, %s3441_s4 }
  0x11   : > { %v3662_v6 = vld [vmem:[%s4526_s7] sm:$0xff]   ;;  %v266_v7 = vld [vmem:[%s4526_s7 + $0x8] sm:$0x1]  ;;  %v267_v8 = vld [vmem:[%s4526_s7 + $0xc] sm:$0xff]  }
  0x12   : > { %v3663_v10 = vunpack.c.l.bf16 %v3662_v6  ;;  %v3664_v11 = vunpack.c.h.bf16 %v3662_v6  ;;  %v320_v12 = vunpack.c.l.bf16 %v266_v7  ;;  %v269_v13 = vld [vmem:[%s4526_s7 + $0x14] sm:$0x1]  ;;  %v321_v14 = vunpack.c.l.bf16 %v267_v8  ;;  %v3697_v15 = vld [vmem:[%s4526_s7 + $0x18] sm:$0xff]   ;;  %v272_v16 = vld [vmem:[%s4526_s7 + $0x20] sm:$0x1] }
  0x13   : > { %v322_v17 = vunpack.c.h.bf16 %v267_v8  ;;  %v323_v18 = vunpack.c.l.bf16 %v269_v13  ;;  %v3667_v19 = vunpack.c.l.bf16 %v3697_v15  ;;  %v3668_v20 = vunpack.c.h.bf16 %v3697_v15  ;;  %v273_v21 = vld [vmem:[%s4526_s7 + $0x24] sm:$0xff]   ;;  %v275_v22 = vld [vmem:[%s4526_s7 + $0x2c] sm:$0x1]  ;;  %v3698_v23 = vld [vmem:[%s4526_s7 + $0x30] sm:$0xff]  }
  0x14   : > { %373 = vst.msk [vmem:[#allocation2] sm:$0xff] %vm372_vm1, %v3663_v10  ;;  %374 = vst.msk [vmem:[#allocation2 + $0x8] sm:$0xff] %vm372_vm1, %v3664_v11  ;;  %v326_v24 = vunpack.c.l.bf16 %v272_v16  ;;  %v327_v25 = vunpack.c.l.bf16 %v273_v21  ;;  %v328_v26 = vunpack.c.h.bf16 %v273_v21  ;;  %v329_v27 = vunpack.c.l.bf16 %v275_v22  ;;  %v278_v28 = vld [vmem:[%s4526_s7 + $0x38] sm:$0x1]  ;;  %v279_v29 = vld [vmem:[%s4526_s7 + $0x3c] sm:$0xff]  }
  0x15   : > { %376 = vst.msk [vmem:[#allocation2 + $0x10] sm:$0x3] %vm375_vm2, %v320_v12  ;;  %v281_v30 = vld [vmem:[%s4526_s7 + $0x44] sm:$0x1]  ;;  %379 = vst.msk [vmem:[#allocation2 + $0x28] sm:$0x3] %vm375_vm2, %v323_v18  ;;  %v3671_v31 = vunpack.c.l.bf16 %v3698_v23  ;;  %v3672_v32 = vunpack.c.h.bf16 %v3698_v23  ;;  %v332_v33 = vunpack.c.l.bf16 %v278_v28  ;;  %v333_v34 = vunpack.c.l.bf16 %v279_v29 }
  0x16   : > { %377 = vst.msk [vmem:[#allocation2 + $0x18] sm:$0xff] %vm372_vm1, %v321_v14  ;;  %378 = vst.msk [vmem:[#allocation2 + $0x20] sm:$0xff] %vm372_vm1, %v322_v17  ;;  %v3699_v35 = vld [vmem:[%s4526_s7 + $0x48] sm:$0xff]   ;;  %v284_v36 = vld [vmem:[%s4526_s7 + $0x50] sm:$0x1]  ;;  %v334_v38 = vunpack.c.h.bf16 %v279_v29  ;;  %v335_v39 = vunpack.c.l.bf16 %v281_v30 }
  0x17   : > { %380 = vst.msk [vmem:[#allocation2 + $0x30] sm:$0xff] %vm372_vm1, %v3667_v19  ;;  %381 = vst.msk [vmem:[#allocation2 + $0x38] sm:$0xff] %vm372_vm1, %v3668_v20  ;;  %v285_v37 = vld [vmem:[%s4526_s7 + $0x54] sm:$0xff]   ;;  %v3675_v40 = vunpack.c.l.bf16 %v3699_v35  ;;  %v3676_v41 = vunpack.c.h.bf16 %v3699_v35  ;;  %v287_v42 = vld [vmem:[%s4526_s7 + $0x5c] sm:$0x1]  ;;  %v338_v45 = vunpack.c.l.bf16 %v284_v36  ;;  %v1934_v35 = vsel %vm575_vm0, %v4517_v5, 0 }
  0x18   : > { %382 = vst.msk [vmem:[#allocation2 + $0x40] sm:$0x3] %vm375_vm2, %v326_v24  ;;  %385 = vst.msk [vmem:[#allocation2 + $0x58] sm:$0x3] %vm375_vm2, %v329_v27  ;;  %v3700_v43 = vld [vmem:[%s4526_s7 + $0x60] sm:$0xff]   ;;  %v339_v46 = vunpack.c.l.bf16 %v285_v37  ;;  %v340_v47 = vunpack.c.h.bf16 %v285_v37  ;;  %v341_v48 = vunpack.c.l.bf16 %v287_v42  ;;  %v291_v49 = vld [vmem:[%s4526_s7 + $0x6c] sm:$0xff]  }
  0x19   : > { %383 = vst.msk [vmem:[#allocation2 + $0x48] sm:$0xff] %vm372_vm1, %v327_v25  ;;  %384 = vst.msk [vmem:[#allocation2 + $0x50] sm:$0xff] %vm372_vm1, %v328_v26  ;;  %v290_v44 = vld [vmem:[%s4526_s7 + $0x68] sm:$0x1]  ;;  %v293_v50 = vld [vmem:[%s4526_s7 + $0x74] sm:$0x1]  ;;  %v3679_v52 = vunpack.c.l.bf16 %v3700_v43  ;;  %v3680_v53 = vunpack.c.h.bf16 %v3700_v43  ;;  %v345_v55 = vunpack.c.l.bf16 %v291_v49  ;;  %v346_v59 = vunpack.c.h.bf16 %v291_v49 }
  0x1a   : > { %386 = vst.msk [vmem:[#allocation2 + $0x60] sm:$0xff] %vm372_vm1, %v3671_v31  ;;  %387 = vst.msk [vmem:[#allocation2 + $0x68] sm:$0xff] %vm372_vm1, %v3672_v32  ;;  %v3701_v51 = vld [vmem:[%s4526_s7 + $0x78] sm:$0xff]   ;;  %v344_v54 = vunpack.c.l.bf16 %v290_v44  ;;  %v296_v56 = vld [vmem:[%s4526_s7 + $0x80] sm:$0x1]  ;;  %v347_v60 = vunpack.c.l.bf16 %v293_v50 }
  0x1b   : > { %388 = vst.msk [vmem:[#allocation2 + $0x70] sm:$0x3] %vm375_vm2, %v332_v33  ;;  %391 = vst.msk [vmem:[#allocation2 + $0x88] sm:$0x3] %vm375_vm2, %v335_v39  ;;  %v297_v57 = vld [vmem:[%s4526_s7 + $0x84] sm:$0xff]   ;;  %v3683_v61 = vunpack.c.l.bf16 %v3701_v51  ;;  %v3684_v62 = vunpack.c.h.bf16 %v3701_v51  ;;  %v3702_v63 = vld [vmem:[%s4526_s7 + $0x90] sm:$0xff]   ;;  %v350_v4 = vunpack.c.l.bf16 %v296_v56 }
  0x1c   : > { %389 = vst.msk [vmem:[#allocation2 + $0x78] sm:$0xff] %vm372_vm1, %v333_v34  ;;  %390 = vst.msk [vmem:[#allocation2 + $0x80] sm:$0xff] %vm372_vm1, %v334_v38  ;;  %v299_v58 = vld [vmem:[%s4526_s7 + $0x8c] sm:$0x1]  ;;  %v302_v0 = vld [vmem:[%s4526_s7 + $0x98] sm:$0x1]  ;;  %v351_v6 = vunpack.c.l.bf16 %v297_v57  ;;  %v352_v7 = vunpack.c.h.bf16 %v297_v57  ;;  %v3687_v15 = vunpack.c.l.bf16 %v3702_v63  ;;  %v3688_v16 = vunpack.c.h.bf16 %v3702_v63 }
  0x1d   : > { %392 = vst.msk [vmem:[#allocation2 + $0x90] sm:$0xff] %vm372_vm1, %v3675_v40  ;;  %393 = vst.msk [vmem:[#allocation2 + $0x98] sm:$0xff] %vm372_vm1, %v3676_v41  ;;  %v303_v2 = vld [vmem:[%s4526_s7 + $0x9c] sm:$0xff]   ;;  %v353_v8 = vunpack.c.l.bf16 %v299_v58  ;;  %v305_v10 = vld [vmem:[%s4526_s7 + $0xa4] sm:$0x1]  ;;  %v356_v17 = vunpack.c.l.bf16 %v302_v0 }
  0x1e   : > { %394 = vst.msk [vmem:[#allocation2 + $0xa0] sm:$0x3] %vm375_vm2, %v338_v45  ;;  %397 = vst.msk [vmem:[#allocation2 + $0xb8] sm:$0x3] %vm375_vm2, %v341_v48  ;;  %v3703_v11 = vld [vmem:[%s4526_s7 + $0xa8] sm:$0xff]   ;;  %v357_v18 = vunpack.c.l.bf16 %v303_v2  ;;  %v309_v19 = vld [vmem:[%s4526_s7 + $0xb4] sm:$0xff]   ;;  %v358_v24 = vunpack.c.h.bf16 %v303_v2  ;;  %v359_v25 = vunpack.c.l.bf16 %v305_v10 }
  0x1f   : > { %395 = vst.msk [vmem:[#allocation2 + $0xa8] sm:$0xff] %vm372_vm1, %v339_v46  ;;  %396 = vst.msk [vmem:[#allocation2 + $0xb0] sm:$0xff] %vm372_vm1, %v340_v47  ;;  %v308_v12 = vld [vmem:[%s4526_s7 + $0xb0] sm:$0x1]  ;;  %v477_v13 = vld [vmem:[#allocation2 + $0x1] sm:$0xff]  ;;  %v3691_v26 = vunpack.c.l.bf16 %v3703_v11  ;;  %v3692_v31 = vunpack.c.h.bf16 %v3703_v11  ;;  %v363_v33 = vunpack.c.l.bf16 %v309_v19  ;;  %v364_v37 = vunpack.c.h.bf16 %v309_v19 }
  0x20   : > { %398 = vst.msk [vmem:[#allocation2 + $0xc0] sm:$0xff] %vm372_vm1, %v3679_v52  ;;  %399 = vst.msk [vmem:[#allocation2 + $0xc8] sm:$0xff] %vm372_vm1, %v3680_v53  ;;  %v478_v14 = vld [vmem:[#allocation2 + $0x9] sm:$0xff]  ;;  %v1541_v21 = vld [vmem:[#allocation2 + $0x19] sm:$0xff]  ;;  %v362_v32 = vunpack.c.l.bf16 %v308_v12 }
  0x21   : > { %400 = vst.msk [vmem:[#allocation2 + $0xd0] sm:$0x3] %vm375_vm2, %v344_v54  ;;  %403 = vst.msk [vmem:[#allocation2 + $0xe8] sm:$0x3] %vm375_vm2, %v347_v60  ;;  %v509_v20 = vpack.c.bf16 %v478_v14, %v477_v13  ;;  %v1542_v22 = vld [vmem:[#allocation2 + $0x21] sm:$0xff]  ;;  %v1543_v23 = vld [vmem:[#allocation2 + $0x31] sm:$0xff] }
  0x22   : > { %401 = vst.msk [vmem:[#allocation2 + $0xd8] sm:$0xff] %vm372_vm1, %v345_v55  ;;  %402 = vst.msk [vmem:[#allocation2 + $0xe0] sm:$0xff] %vm372_vm1, %v346_v59  ;;  %v1573_v27 = vpack.c.bf16 %v1542_v22, %v1541_v21  ;;  %v1544_v28 = vld [vmem:[#allocation2 + $0x39] sm:$0xff]  ;;  %v1545_v29 = vld [vmem:[#allocation2 + $0x49] sm:$0xff] }
  0x23   : > { %404 = vst.msk [vmem:[#allocation2 + $0xf0] sm:$0xff] %vm372_vm1, %v3683_v61  ;;  %405 = vst.msk [vmem:[#allocation2 + $0xf8] sm:$0xff] %vm372_vm1, %v3684_v62  ;;  %v1546_v30 = vld [vmem:[#allocation2 + $0x51] sm:$0xff]  ;;  %3860 = vmatprep.mubr.msk.bf16.mxu1 %vm372_vm1, %v509_v20  ;;  %v4603_v34 = vpack.c.bf16 %v1544_v28, %v1543_v23  ;;  %v4617_v38 = vld [vmem:[%s5202_s1 + $0xc] sm:$0x3] }
  0x24   : > { %406 = vst.msk [vmem:[#allocation2 + $0x100] sm:$0x3] %vm375_vm2, %v350_v4  ;;  %409 = vst.msk [vmem:[#allocation2 + $0x118] sm:$0x3] %vm375_vm2, %v353_v8  ;;  %v4607_v36 = vpack.c.bf16 %v1546_v30, %v1545_v29  ;;  %3996 = vmatprep.mubr.msk.bf16.mxu0 %vm372_vm1, %v1573_v27  ;;  %3861 = vmatmul.mubr.msk.bf16.vlgmr.msra.gmra.mrb[0].mxu1 %vm372_vm1, %v1573_v27  ;;  %v4629_v5 = vld [vmem:[%s5202_s1 + $0x4] sm:$0x3] }
  0x25   : > { %407 = vst.msk [vmem:[#allocation2 + $0x108] sm:$0xff] %vm372_vm1, %v351_v6  ;;  %408 = vst.msk [vmem:[#allocation2 + $0x110] sm:$0xff] %vm372_vm1, %v352_v7  ;;  %3893 = vmatpush3.bf16.msra.mxu1 %v4532_v9  ;;  %3997 = vmatmul.mubr.msk.bf16.vlgmr.msra.gmra.mrb[0].mxu0 %vm372_vm1, %v4603_v34  ;;  %v1547_v39 = vld [vmem:[#allocation2 + $0x61] sm:$0xff]  ;;  %v1548_v40 = vld [vmem:[#allocation2 + $0x69] sm:$0xff] }
  0x26   : > { %410 = vst.msk [vmem:[#allocation2 + $0x120] sm:$0xff] %vm372_vm1, %v3687_v15  ;;  %411 = vst.msk [vmem:[#allocation2 + $0x128] sm:$0xff] %vm372_vm1, %v3688_v16  ;;  %4029 = vmatpush3.bf16.msra.mxu0 %v1934_v35  ;;  %3864 = vmatprep.mubr.msk.bf16.mxu1 %vm372_vm1, %v4603_v34  ;;  %v1549_v9 = vld [vmem:[#allocation2 + $0x79] sm:$0xff]  ;;  %v1550_v41 = vld [vmem:[#allocation2 + $0x81] sm:$0xff]  ;;  %v4639_v42 = vpack.c.bf16 %v1548_v40, %v1547_v39 }
  0x27   : > { %412 = vst.msk [vmem:[#allocation2 + $0x130] sm:$0x3] %vm375_vm2, %v356_v17  ;;  %415 = vst.msk [vmem:[#allocation2 + $0x148] sm:$0x3] %vm375_vm2, %v359_v25  ;;  %4000 = vmatprep.mubr.msk.bf16.mxu0 %vm372_vm1, %v4607_v36  ;;  %4429 = vmatprep.subr.msk.bf16.mxu0 %vm575_vm0, %v4617_v38  ;;  %v4641_v43 = vpack.c.bf16 %v1550_v41, %v1549_v9  ;;  %v1551_v44 = vld [vmem:[#allocation2 + $0x91] sm:$0xff]  ;;  %v1552_v45 = vld [vmem:[#allocation2 + $0x99] sm:$0xff] }
  0x28   : > { %413 = vst.msk [vmem:[#allocation2 + $0x138] sm:$0xff] %vm372_vm1, %v357_v18  ;;  %414 = vst.msk [vmem:[#allocation2 + $0x140] sm:$0xff] %vm372_vm1, %v358_v24  ;;  %4424 = vmatprep.subr.msk.bf16.mxu1 %vm575_vm0, %v4629_v5  ;;  %v1553_v46 = vld [vmem:[#allocation2 + $0xa9] sm:$0xff]  ;;  %v1554_v47 = vld [vmem:[#allocation2 + $0xb1] sm:$0xff]  ;;  %v4652_v50 = vpack.c.bf16 %v1552_v45, %v1551_v44  ;;  %v2229_v18 = vsel %vm575_vm0, %v4617_v38, 0 }
  0x29   : > { %416 = vst.msk [vmem:[#allocation2 + $0x150] sm:$0xff] %vm372_vm1, %v3691_v26  ;;  %417 = vst.msk [vmem:[#allocation2 + $0x158] sm:$0xff] %vm372_vm1, %v3692_v31  ;;  %v311_v48 = vld [vmem:[%s4526_s7 + $0xbc] sm:$0x1]  ;;  %v4654_v51 = vpack.c.bf16 %v1554_v47, %v1553_v46  ;;  %v1555_v52 = vld [vmem:[#allocation2 + $0xc1] sm:$0xff] }
  0x2a   : > { %418 = vst.msk [vmem:[#allocation2 + $0x160] sm:$0x3] %vm375_vm2, %v362_v32  ;;  %v365_v49 = vunpack.c.l.bf16 %v311_v48  ;;  %v1556_v53 = vld [vmem:[#allocation2 + $0xc9] sm:$0xff]  ;;  %v1835_v54 = vld [vmem:[#allocation2 + $0x1a] sm:$0xff]  ;;  %v314_v61 = vld [vmem:[%s4526_s7 + $0xc8] sm:$0x1] }
  0x2b   : > { %419 = vst.msk [vmem:[#allocation2 + $0x168] sm:$0xff] %vm372_vm1, %v363_v33  ;;  %420 = vst.msk [vmem:[#allocation2 + $0x170] sm:$0xff] %vm372_vm1, %v364_v37  ;;  %v1836_v55 = vld [vmem:[#allocation2 + $0x22] sm:$0xff]  ;;  %v4665_v56 = vpack.c.bf16 %v1556_v53, %v1555_v52  ;;  %v368_v62 = vunpack.c.l.bf16 %v314_v61  ;;  %v495_v63 = vld [vmem:[#allocation2 + $0xd9] sm:$0xff] }
  0x2c   : > { %3865 = vmatmul.mubr.msk.bf16.gmra.mrb[4].mxu1 %vm372_vm1, %v4607_v36  ;;  %421 = vst.msk [vmem:[#allocation2 + $0x178] sm:$0x3] %vm375_vm2, %v365_v49  ;;  %v4667_v57 = vpack.c.bf16 %v1836_v55, %v1835_v54  ;;  %v3704_v58 = vld [vmem:[%s4526_s7 + $0xc0] sm:$0xff]   ;;  %v1837_v2 = vld [vmem:[#allocation2 + $0x32] sm:$0xff]  ;;  %v1839_v8 = vld [vmem:[#allocation2 + $0x4a] sm:$0xff] }
  0x2d   : > { %4001 = vmatmul.mubr.msk.bf16.gmra.mrb[4].mxu0 %vm372_vm1, %v4639_v42  ;;  %3868 = vmatprep.mubr.msk.bf16.mxu1 %vm372_vm1, %v4639_v42  ;;  %v3695_v59 = vunpack.c.l.bf16 %v3704_v58  ;;  %v3696_v60 = vunpack.c.h.bf16 %v3704_v58  ;;  %v496_v0 = vld [vmem:[#allocation2 + $0xe1] sm:$0xff]  ;;  %v497_v6 = vld [vmem:[#allocation2 + $0xf1] sm:$0xff]  ;;  %v498_v7 = vld [vmem:[#allocation2 + $0xf9] sm:$0xff]  ;;  %424 = vst.msk [vmem:[#allocation2 + $0x190] sm:$0x3] %vm375_vm2, %v368_v62 }
  0x2e   : > { %4004 = vmatprep.mubr.msk.bf16.mxu0 %vm372_vm1, %v4641_v43  ;;  %v1838_v4 = vld [vmem:[#allocation2 + $0x3a] sm:$0xff]  ;;  %v1840_v10 = vld [vmem:[#allocation2 + $0x52] sm:$0xff]  ;;  %v4682_v11 = vpack.c.bf16 %v496_v0, %v495_v63  ;;  %v4686_v13 = vpack.c.bf16 %v498_v7, %v497_v6  ;;  %v4698_v19 = vld [vmem:[%s5202_s1 + $0xe] sm:$0x3] }
  0x2f   : > { %422 = vst.msk [vmem:[#allocation2 + $0x180] sm:$0xff] %vm372_vm1, %v3695_v59  ;;  %423 = vst.msk [vmem:[#allocation2 + $0x188] sm:$0xff] %vm372_vm1, %v3696_v60  ;;  %v4684_v12 = vpack.c.bf16 %v1838_v4, %v1837_v2  ;;  %v315_v14 = vld [vmem:[%s4526_s7 + $0xcc] sm:$0xff]   ;;  %v4689_v15 = vpack.c.bf16 %v1840_v10, %v1839_v8  ;;  %v1841_v22 = vld [vmem:[#allocation2 + $0x62] sm:$0xff] }
  0x30   : > { %v369_v16 = vunpack.c.l.bf16 %v315_v14  ;;  %v370_v17 = vunpack.c.h.bf16 %v315_v14  ;;  %v499_v20 = vld [vmem:[#allocation2 + $0x109] sm:$0xff]  ;;  %v500_v21 = vld [vmem:[#allocation2 + $0x111] sm:$0xff]  ;;  %v501_v24 = vld [vmem:[#allocation2 + $0x121] sm:$0xff] }
  0x31   : > { %v1842_v23 = vld [vmem:[#allocation2 + $0x6a] sm:$0xff]  ;;  %v1843_v26 = vld [vmem:[#allocation2 + $0x7a] sm:$0xff]  ;;  %v1844_v27 = vld [vmem:[#allocation2 + $0x82] sm:$0xff]  ;;  %v4710_v28 = vpack.c.bf16 %v500_v21, %v499_v20 }
  0x32   : > { %425 = vst.msk [vmem:[#allocation2 + $0x198] sm:$0xff] %vm372_vm1, %v369_v16  ;;  %426 = vst.msk [vmem:[#allocation2 + $0x1a0] sm:$0xff] %vm372_vm1, %v370_v17  ;;  %v502_v25 = vld [vmem:[#allocation2 + $0x129] sm:$0xff]  ;;  %v4712_v29 = vpack.c.bf16 %v1842_v23, %v1841_v22  ;;  %v4716_v31 = vpack.c.bf16 %v1844_v27, %v1843_v26  ;;  %v503_v32 = vld [vmem:[#allocation2 + $0x139] sm:$0xff]  ;;  %v1051_v17 = vsel %vm575_vm0, %v4629_v5, 0 }
  0x33   : > { %v4714_v30 = vpack.c.bf16 %v502_v25, %v501_v24  ;;  %v504_v33 = vld [vmem:[#allocation2 + $0x141] sm:$0xff]  ;;  %v1845_v35 = vld [vmem:[#allocation2 + $0x92] sm:$0xff]  ;;  %v1847_v40 = vld [vmem:[#allocation2 + $0xaa] sm:$0xff] }
  0x34   : > { %3869 = vmatmul.mubr.msk.bf16.gmra.mrb[8].mxu1 %vm372_vm1, %v4641_v43  ;;  %v1846_v37 = vld [vmem:[#allocation2 + $0x9a] sm:$0xff]  ;;  %v505_v38 = vld [vmem:[#allocation2 + $0x151] sm:$0xff]  ;;  %v4726_v41 = vpack.c.bf16 %v504_v33, %v503_v32  ;;  %v507_v47 = vld [vmem:[#allocation2 + $0x169] sm:$0xff] }
  0x35   : > { %4005 = vmatmul.mubr.msk.bf16.gmra.mrb[8].mxu0 %vm372_vm1, %v4652_v50  ;;  %3872 = vmatprep.mubr.msk.bf16.mxu1 %vm372_vm1, %v4652_v50  ;;  %v506_v39 = vld [vmem:[#allocation2 + $0x159] sm:$0xff]  ;;  %v4728_v44 = vpack.c.bf16 %v1846_v37, %v1845_v35  ;;  %v508_v48 = vld [vmem:[#allocation2 + $0x171] sm:$0xff]  ;;  %v1849_v49 = vld [vmem:[#allocation2 + $0xc2] sm:$0xff] }
  0x36   : > { %4008 = vmatprep.mubr.msk.bf16.mxu0 %vm372_vm1, %v4654_v51  ;;  %v1848_v9 = vld [vmem:[#allocation2 + $0xb2] sm:$0xff]  ;;  %v4730_v45 = vpack.c.bf16 %v506_v39, %v505_v38  ;;  %v1850_v52 = vld [vmem:[#allocation2 + $0xca] sm:$0xff]  ;;  %v428_v53 = vld [vmem:[#allocation2] sm:$0xff]  ;;  %v4742_v59 = vpack.c.bf16 %v508_v48, %v507_v47 }
  0x37   : > { %v4732_v46 = vpack.c.bf16 %v1848_v9, %v1847_v40  ;;  %v429_v54 = vld [vmem:[#allocation2 + $0x8] sm:$0xff]  ;;  %v1851_v55 = vld [vmem:[#allocation2 + $0xda] sm:$0xff]  ;;  %v4744_v60 = vpack.c.bf16 %v1850_v52, %v1849_v49  ;;  %v1853_v2 = vld [vmem:[#allocation2 + $0xf2] sm:$0xff] }
  0x38   : > { %v1852_v58 = vld [vmem:[#allocation2 + $0xe2] sm:$0xff]  ;;  %v460_v61 = vpack.c.bf16 %v429_v54, %v428_v53  ;;  %v430_v63 = vld [vmem:[#allocation2 + $0x18] sm:$0xff]  ;;  %v432_v6 = vld [vmem:[#allocation2 + $0x30] sm:$0xff] }
  0x39   : > { %v4746_v62 = vpack.c.bf16 %v1852_v58, %v1851_v55  ;;  %v431_v0 = vld [vmem:[#allocation2 + $0x20] sm:$0xff]  ;;  %v433_v7 = vld [vmem:[#allocation2 + $0x38] sm:$0xff]  ;;  %v1855_v8 = vld [vmem:[#allocation2 + $0x10a] sm:$0xff] }
  0x3a   : > { %v1854_v4 = vld [vmem:[#allocation2 + $0xfa] sm:$0xff]  ;;  %v1856_v10 = vld [vmem:[#allocation2 + $0x112] sm:$0xff]  ;;  %v4755_v14 = vpack.c.bf16 %v431_v0, %v430_v63  ;;  %v4770_v21 = vld [vmem:[%s5202_s1 + $0x6] sm:$0x3] }
  0x3b   : > { %v4757_v16 = vpack.c.bf16 %v1854_v4, %v1853_v2  ;;  %v4763_v20 = vpack.c.bf16 %v1856_v10, %v1855_v8  ;;  %v434_v22 = vld [vmem:[#allocation2 + $0x48] sm:$0xff]  ;;  %v435_v23 = vld [vmem:[#allocation2 + $0x50] sm:$0xff]  ;;  %v436_v25 = vld [vmem:[#allocation2 + $0x60] sm:$0xff] }
  0x3c   : > { %3873 = vmatmul.mubr.msk.bf16.gmra.mrb[12].mxu1 %vm372_vm1, %v4654_v51  ;;  %v1857_v24 = vld [vmem:[#allocation2 + $0x122] sm:$0xff]  ;;  %v1858_v5 = vld [vmem:[#allocation2 + $0x12a] sm:$0xff]  ;;  %v1859_v27 = vld [vmem:[#allocation2 + $0x13a] sm:$0xff]  ;;  %v4780_v33 = vpack.c.bf16 %v435_v23, %v434_v22 }
  0x3d   : > { %4009 = vmatmul.mubr.msk.bf16.gmra.mrb[12].mxu0 %vm372_vm1, %v4665_v56  ;;  %3876 = vmatprep.mubr.msk.bf16.mxu1 %vm372_vm1, %v4665_v56  ;;  %v437_v26 = vld [vmem:[#allocation2 + $0x68] sm:$0xff]  ;;  %v4782_v35 = vpack.c.bf16 %v1858_v5, %v1857_v24  ;;  %v438_v39 = vld [vmem:[#allocation2 + $0x78] sm:$0xff]  ;;  %v439_v40 = vld [vmem:[#allocation2 + $0x80] sm:$0xff] }
  0x3e   : > { %4030 = vmatprep.mubr.msk.bf16.mxu0 %vm372_vm1, %v4667_v57  ;;  %v1860_v32 = vld [vmem:[#allocation2 + $0x142] sm:$0xff]  ;;  %v4784_v37 = vpack.c.bf16 %v437_v26, %v436_v25  ;;  %v1861_v9 = vld [vmem:[#allocation2 + $0x152] sm:$0xff]  ;;  %v1862_v47 = vld [vmem:[#allocation2 + $0x15a] sm:$0xff]  ;;  %v4796_v54 = vpack.c.bf16 %v439_v40, %v438_v39  ;;  %v2523_v39 = vsel %vm575_vm0, %v4698_v19, 0 }
  0x3f   : > { %v4786_v38 = vpack.c.bf16 %v1860_v32, %v1859_v27  ;;  %v440_v48 = vld [vmem:[#allocation2 + $0x90] sm:$0xff]  ;;  %v441_v49 = vld [vmem:[#allocation2 + $0x98] sm:$0xff]  ;;  %v4799_v58 = vpack.c.bf16 %v1862_v47, %v1861_v9  ;;  %v442_v2 = vld [vmem:[#allocation2 + $0xa8] sm:$0xff] }
  0x40   : > { %v1863_v52 = vld [vmem:[#allocation2 + $0x16a] sm:$0xff]  ;;  %v1864_v53 = vld [vmem:[#allocation2 + $0x172] sm:$0xff]  ;;  %v447_v5 = vld [vmem:[#allocation2 + $0xe0] sm:$0xff] }
  0x41   : > { %v317_v55 = vld [vmem:[%s4526_s7 + $0xd4] sm:$0x1]  ;;  %v4803_v0 = vpack.c.bf16 %v1864_v53, %v1863_v52  ;;  %v1866_v8 = vld [vmem:[#allocation2 + $0x18a] sm:$0xff]  ;;  %v446_v24 = vld [vmem:[#allocation2 + $0xd8] sm:$0xff] }
  0x42   : > { %v371_v63 = vunpack.c.l.bf16 %v317_v55  ;;  %v443_v4 = vld [vmem:[#allocation2 + $0xb0] sm:$0xff]  ;;  %v445_v10 = vld [vmem:[#allocation2 + $0xc8] sm:$0xff]  ;;  %v449_v26 = vld [vmem:[#allocation2 + $0xf8] sm:$0xff]  ;;  %v4828_v27 = vpack.c.bf16 %v447_v5, %v446_v24 }
  0x43   : > { %v448_v25 = vld [vmem:[#allocation2 + $0xf0] sm:$0xff]  ;;  %v450_v9 = vld [vmem:[#allocation2 + $0x108] sm:$0xff]  ;;  %v454_v53 = vld [vmem:[#allocation2 + $0x138] sm:$0xff] }
  0x44   : > { %3877 = vmatmul.mubr.msk.bf16.gmra.mrb[16].mxu1 %vm372_vm1, %v4682_v11  ;;  %427 = vst.msk [vmem:[#allocation2 + $0x1a8] sm:$0x3] %vm375_vm2, %v371_v63  ;;  %v4830_v32 = vpack.c.bf16 %v449_v26, %v448_v25  ;;  %v3577_v40 = vld [vmem:[%s5202_s1 + $0x10] sm:$0x3]  ;;  %v455_v55 = vld [vmem:[#allocation2 + $0x140] sm:$0xff]  ;;  %v1346_v26 = vsel %vm575_vm0, %v4770_v21, 0 }
  0x45   : > { %4031 = vmatmul.mubr.msk.bf16.vlgmr.msra.gmra.mrb[0].mxu0 %vm372_vm1, %v4684_v12  ;;  %3880 = vmatprep.mubr.msk.bf16.mxu1 %vm372_vm1, %v4686_v13  ;;  %v451_v47 = vld [vmem:[#allocation2 + $0x110] sm:$0xff] }
  0x46   : > { %4063 = vmatpush3.bf16.msra.mxu0 %v2229_v18  ;;  %4034 = vmatprep.mubr.msk.bf16.mxu0 %vm372_vm1, %v4689_v15  ;;  %v4761_v18 = vpack.c.bf16 %v433_v7, %v432_v6  ;;  %v444_v6 = vld [vmem:[#allocation2 + $0xc0] sm:$0xff]  ;;  %v456_v63 = vld [vmem:[#allocation2 + $0x150] sm:$0xff] }
  0x47   : > { %4430 = vmatprep.subr.msk.bf16.mxu0 %vm575_vm0, %v4698_v19  ;;  %v1865_v7 = vld [vmem:[#allocation2 + $0x182] sm:$0xff]  ;;  %v4818_v23 = vpack.c.bf16 %v445_v10, %v444_v6  ;;  %v953_v24 = vld [vmem:[#allocation2 + $0xa] sm:$0xff] }
  0x48   : > { %v4816_v22 = vpack.c.bf16 %v1866_v8, %v1865_v7  ;;  %v452_v19 = vld [vmem:[#allocation2 + $0x120] sm:$0xff]  ;;  %v458_v7 = vld [vmem:[#allocation2 + $0x168] sm:$0xff]  ;;  %v459_v8 = vld [vmem:[#allocation2 + $0x170] sm:$0xff] }
  0x49   : > { %v952_v10 = vld [vmem:[#allocation2 + $0x2] sm:$0xff]  ;;  %v4870_v5 = vpack.c.bf16 %v459_v8, %v458_v7 }
  0x4a   : > { %v984_v25 = vpack.c.bf16 %v953_v24, %v952_v10 }
  0x4c   : > { %3881 = vmatmul.mubr.msk.bf16.gmra.mrb[20].mxu1 %vm372_vm1, %v4710_v28 }
  0x4d   : > { %4035 = vmatmul.mubr.msk.bf16.gmra.mrb[4].mxu0 %vm372_vm1, %v4712_v29  ;;  %3884 = vmatprep.mubr.msk.bf16.mxu1 %vm372_vm1, %v4714_v30 }
  0x4e   : > { %4038 = vmatprep.mubr.msk.bf16.mxu0 %vm372_vm1, %v4716_v31 }
  0x54   : > { %3885 = vmatmul.mubr.msk.bf16.gmra.mrb[24].mxu1 %vm372_vm1, %v4726_v41 }
  0x55   : > { %4039 = vmatmul.mubr.msk.bf16.gmra.mrb[8].mxu0 %vm372_vm1, %v4728_v44  ;;  %3888 = vmatprep.mubr.msk.bf16.mxu1 %vm372_vm1, %v4730_v45 }
  0x56   : > { %4042 = vmatprep.mubr.msk.bf16.mxu0 %vm372_vm1, %v4732_v46 }
  0x5c   : > { %3889 = vmatmul.mubr.msk.bf16.gmra.mrb[28].mxu1 %vm372_vm1, %v4742_v59 }
  0x5d   : > { %4043 = vmatmul.mubr.msk.bf16.gmra.mrb[12].mxu0 %vm372_vm1, %v4744_v60  ;;  %3894 = vmatprep.mubr.msk.bf16.mxu1 %vm372_vm1, %v460_v61  ;;  %v4801_v61 = vpack.c.bf16 %v441_v49, %v440_v48  ;;  %v453_v48 = vld [vmem:[#allocation2 + $0x128] sm:$0xff]  ;;  %v4846_v49 = vpack.c.bf16 %v451_v47, %v450_v9  ;;  %v2161_v9 = vld [vmem:[#allocation2 + $0x1a0] sm:$0xff] }
  0x5e   : > { %4046 = vmatprep.mubr.msk.bf16.mxu0 %vm372_vm1, %v4746_v62  ;;  %v4848_v52 = vpack.c.bf16 %v453_v48, %v452_v19  ;;  %v2817_v19 = vsel %vm575_vm0, %v3577_v40, 0 }
  0x64   : > { %3895 = vmatmul.mubr.msk.bf16.vlgmr.msra.gmra.mrb[0].mxu1 %vm372_vm1, %v4755_v14 }
  0x65   : > { %3927 = vmatpush3.bf16.msra.mxu1 %v1051_v17  ;;  %4047 = vmatmul.mubr.msk.bf16.gmra.mrb[16].mxu0 %vm372_vm1, %v4757_v16  ;;  %v4814_v17 = vpack.c.bf16 %v443_v4, %v442_v2  ;;  %v457_v2 = vld [vmem:[#allocation2 + $0x158] sm:$0xff]  ;;  %v4858_v4 = vpack.c.bf16 %v455_v55, %v454_v53 }
  0x66   : > { %3898 = vmatprep.mubr.msk.bf16.mxu1 %vm372_vm1, %v4761_v18  ;;  %4050 = vmatprep.mubr.msk.bf16.mxu0 %vm372_vm1, %v4763_v20  ;;  %v4860_v6 = vpack.c.bf16 %v457_v2, %v456_v63 }
  0x67   : > { %4425 = vmatprep.subr.msk.bf16.mxu1 %vm575_vm0, %v4770_v21  ;;  %v2159_v21 = vld [vmem:[#allocation2 + $0x188] sm:$0xff] }
  0x6c   : > { %3899 = vmatmul.mubr.msk.bf16.gmra.mrb[4].mxu1 %vm372_vm1, %v4780_v33 }
  0x6d   : > { %4051 = vmatmul.mubr.msk.bf16.gmra.mrb[20].mxu0 %vm372_vm1, %v4782_v35  ;;  %3902 = vmatprep.mubr.msk.bf16.mxu1 %vm372_vm1, %v4784_v37 }
  0x6e   : > { %4054 = vmatprep.mubr.msk.bf16.mxu0 %vm372_vm1, %v4786_v38 }
  0x74   : > { %3903 = vmatmul.mubr.msk.bf16.gmra.mrb[8].mxu1 %vm372_vm1, %v4796_v54 }
  0x75   : > { %4055 = vmatmul.mubr.msk.bf16.gmra.mrb[24].mxu0 %vm372_vm1, %v4799_v58  ;;  %3906 = vmatprep.mubr.msk.bf16.mxu1 %vm372_vm1, %v4801_v61 }
  0x76   : > { %4058 = vmatprep.mubr.msk.bf16.mxu0 %vm372_vm1, %v4803_v0 }
  0x7c   : > { %3907 = vmatmul.mubr.msk.bf16.gmra.mrb[12].mxu1 %vm372_vm1, %v4814_v17 }
  0x7d   : > { %4059 = vmatmul.mubr.msk.bf16.gmra.mrb[28].mxu0 %vm372_vm1, %v4816_v22  ;;  %3910 = vmatprep.mubr.msk.bf16.mxu1 %vm372_vm1, %v4818_v23 }
  0x7e   : > { %4064 = vmatprep.mubr.msk.bf16.mxu0 %vm372_vm1, %v4761_v18 }
  0x84   : > { %3911 = vmatmul.mubr.msk.bf16.gmra.mrb[16].mxu1 %vm372_vm1, %v4828_v27 }
  0x85   : > { %4065 = vmatmul.mubr.msk.bf16.vlgmr.msra.gmra.mrb[0].mxu0 %vm372_vm1, %v4780_v33  ;;  %3914 = vmatprep.mubr.msk.bf16.mxu1 %vm372_vm1, %v4830_v32 }
  0x86   : > { %4097 = vmatpush3.bf16.msra.mxu0 %v2523_v39  ;;  %4068 = vmatprep.mubr.msk.bf16.mxu0 %vm372_vm1, %v4784_v37 }
  0x87   : > { %4431 = vmatprep.subr.msk.bf16.mxu0 %vm575_vm0, %v3577_v40 }
  0x8c   : > { %3915 = vmatmul.mubr.msk.bf16.gmra.mrb[20].mxu1 %vm372_vm1, %v4846_v49 }
  0x8d   : > { %4069 = vmatmul.mubr.msk.bf16.gmra.mrb[4].mxu0 %vm372_vm1, %v4796_v54  ;;  %3918 = vmatprep.mubr.msk.bf16.mxu1 %vm372_vm1, %v4848_v52 }
  0x8e   : > { %4072 = vmatprep.mubr.msk.bf16.mxu0 %vm372_vm1, %v4801_v61 }
  0x94   : > { %3919 = vmatmul.mubr.msk.bf16.gmra.mrb[24].mxu1 %vm372_vm1, %v4858_v4 }
  0x95   : > { %4073 = vmatmul.mubr.msk.bf16.gmra.mrb[8].mxu0 %vm372_vm1, %v4814_v17  ;;  %3922 = vmatprep.mubr.msk.bf16.mxu1 %vm372_vm1, %v4860_v6 }
  0x96   : > { %4076 = vmatprep.mubr.msk.bf16.mxu0 %vm372_vm1, %v4818_v23 }
  0x9c   : > { %3923 = vmatmul.mubr.msk.bf16.gmra.mrb[28].mxu1 %vm372_vm1, %v4870_v5 }
  0x9d   : > { %4077 = vmatmul.mubr.msk.bf16.gmra.mrb[12].mxu0 %vm372_vm1, %v4828_v27  ;;  %3928 = vmatprep.mubr.msk.bf16.mxu1 %vm372_vm1, %v984_v25 }
  0x9e   : > { %4080 = vmatprep.mubr.msk.bf16.mxu0 %vm372_vm1, %v4830_v32 }
  0xa4   : > { %3929 = vmatmul.mubr.msk.bf16.vlgmr.msra.gmra.mrb[0].mxu1 %vm372_vm1, %v4667_v57  ;;  %v2158_v57 = vld [vmem:[#allocation2 + $0x180] sm:$0xff] }
  0xa5   : > { %3961 = vmatpush3.bf16.msra.mxu1 %v1346_v26  ;;  %4081 = vmatmul.mubr.msk.bf16.gmra.mrb[16].mxu0 %vm372_vm1, %v4846_v49  ;;  %v4899_v39 = vpack.c.bf16 %v2159_v21, %v2158_v57 }
  0xa6   : > { %3932 = vmatprep.mubr.msk.bf16.mxu1 %vm372_vm1, %v4684_v12  ;;  %4084 = vmatprep.mubr.msk.bf16.mxu0 %vm372_vm1, %v4848_v52 }
  0xa7   : > { %4427 = vmatprep.subr.msk.bf16.mxu1 %vm575_vm0, %v4498_v1  ;;  %v2160_v1 = vld [vmem:[#allocation2 + $0x198] sm:$0xff] }
  0xa8   : > { %v2177_v47 = vpack.c.bf16 %v2161_v9, %v2160_v1 }
  0xac   : > { %3933 = vmatmul.mubr.msk.bf16.gmra.mrb[4].mxu1 %vm372_vm1, %v4689_v15 }
  0xad   : > { %4085 = vmatmul.mubr.msk.bf16.gmra.mrb[20].mxu0 %vm372_vm1, %v4858_v4  ;;  %3936 = vmatprep.mubr.msk.bf16.mxu1 %vm372_vm1, %v4712_v29 }
  0xae   : > { %4088 = vmatprep.mubr.msk.bf16.mxu0 %vm372_vm1, %v4860_v6 }
  0xb4   : > { %3937 = vmatmul.mubr.msk.bf16.gmra.mrb[8].mxu1 %vm372_vm1, %v4716_v31 }
  0xb5   : > { %4089 = vmatmul.mubr.msk.bf16.gmra.mrb[24].mxu0 %vm372_vm1, %v4870_v5  ;;  %3940 = vmatprep.mubr.msk.bf16.mxu1 %vm372_vm1, %v4728_v44 }
  0xb6   : > { %4092 = vmatprep.mubr.msk.bf16.mxu0 %vm372_vm1, %v4899_v39 }
  0xbc   : > { %3941 = vmatmul.mubr.msk.bf16.gmra.mrb[12].mxu1 %vm372_vm1, %v4732_v46 }
  0xbd   : > { %4093 = vmatmul.mubr.msk.bf16.gmra.mrb[28].mxu0 %vm372_vm1, %v2177_v47  ;;  %3944 = vmatprep.mubr.msk.bf16.mxu1 %vm372_vm1, %v4744_v60 }
  0xbe   : > { %4098 = vmatprep.mubr.msk.bf16.mxu0 %vm372_vm1, %v4603_v34  ;;  %v2453_v34 = vld [vmem:[#allocation2 + $0x189] sm:$0xff] }
  0xc4   : > { %3945 = vmatmul.mubr.msk.bf16.gmra.mrb[16].mxu1 %vm372_vm1, %v4746_v62 }
  0xc5   : > { %4099 = vmatmul.mubr.msk.bf16.vlgmr.msra.gmra.mrb[0].mxu0 %vm372_vm1, %v4607_v36  ;;  %3948 = vmatprep.mubr.msk.bf16.mxu1 %vm372_vm1, %v4757_v16 }
  0xc6   : > { %4131 = vmatpush3.bf16.msra.mxu0 %v2817_v19  ;;  %4102 = vmatprep.mubr.msk.bf16.mxu0 %vm372_vm1, %v4639_v42  ;;  %v2454_v42 = vld [vmem:[#allocation2 + $0x199] sm:$0xff] }
  0xcc   : > { %3949 = vmatmul.mubr.msk.bf16.gmra.mrb[20].mxu1 %vm372_vm1, %v4763_v20 }
  0xcd   : > { %4103 = vmatmul.mubr.msk.bf16.gmra.mrb[4].mxu0 %vm372_vm1, %v4641_v43  ;;  %3952 = vmatprep.mubr.msk.bf16.mxu1 %vm372_vm1, %v4782_v35  ;;  %v2455_v43 = vld [vmem:[#allocation2 + $0x1a1] sm:$0xff] }
  0xce   : > { %4106 = vmatprep.mubr.msk.bf16.mxu0 %vm372_vm1, %v4652_v50  ;;  %v2471_v50 = vpack.c.bf16 %v2455_v43, %v2454_v42 }
  0xd4   : > { %3953 = vmatmul.mubr.msk.bf16.gmra.mrb[24].mxu1 %vm372_vm1, %v4786_v38 }
  0xd5   : > { %4107 = vmatmul.mubr.msk.bf16.gmra.mrb[8].mxu0 %vm372_vm1, %v4654_v51  ;;  %3956 = vmatprep.mubr.msk.bf16.mxu1 %vm372_vm1, %v4799_v58  ;;  %v1557_v51 = vld [vmem:[#allocation2 + $0xd9] sm:$0xff] }
  0xd6   : > { %4110 = vmatprep.mubr.msk.bf16.mxu0 %vm372_vm1, %v4665_v56  ;;  %v1558_v56 = vld [vmem:[#allocation2 + $0xe1] sm:$0xff] }
  0xdc   : > { %3957 = vmatmul.mubr.msk.bf16.gmra.mrb[28].mxu1 %vm372_vm1, %v4803_v0 }
  0xdd   : > { %4111 = vmatmul.mubr.msk.bf16.gmra.mrb[12].mxu0 %vm372_vm1, %v4682_v11  ;;  %3962 = vmatprep.mubr.msk.bf16.mxu1 %vm372_vm1, %v4755_v14  ;;  %v1581_v11 = vpack.c.bf16 %v1558_v56, %v1557_v51 }
  0xde   : > { %4114 = vmatprep.mubr.msk.bf16.mxu0 %vm372_vm1, %v4686_v13  ;;  %v1560_v13 = vld [vmem:[#allocation2 + $0xf9] sm:$0xff] }
  0xe4   : > { %3963 = vmatmul.mubr.msk.bf16.vlgmr.msra.gmra.mrb[0].mxu1 %vm372_vm1, %v4761_v18 }
  0xe5   : > { %4165 = vmatpush3.bf16.msra.mxu1 %v4506_v3  ;;  %4115 = vmatmul.mubr.msk.bf16.gmra.mrb[16].mxu0 %vm372_vm1, %v4710_v28  ;;  %v2452_v3 = vld [vmem:[#allocation2 + $0x181] sm:$0xff] }
  0xe6   : > { %3966 = vmatprep.mubr.msk.bf16.mxu1 %vm372_vm1, %v4780_v33  ;;  %4118 = vmatprep.mubr.msk.bf16.mxu0 %vm372_vm1, %v4714_v30  ;;  %v2470_v36 = vpack.c.bf16 %v2453_v34, %v2452_v3 }
  0xec   : > { %3967 = vmatmul.mubr.msk.bf16.gmra.mrb[4].mxu1 %vm372_vm1, %v4784_v37 }
  0xed   : > { %4119 = vmatmul.mubr.msk.bf16.gmra.mrb[20].mxu0 %vm372_vm1, %v4726_v41  ;;  %3970 = vmatprep.mubr.msk.bf16.mxu1 %vm372_vm1, %v4796_v54 }
  0xee   : > { %4122 = vmatprep.mubr.msk.bf16.mxu0 %vm372_vm1, %v4730_v45 }
  0xf4   : > { %3971 = vmatmul.mubr.msk.bf16.gmra.mrb[8].mxu1 %vm372_vm1, %v4801_v61 }
  0xf5   : > { %4123 = vmatmul.mubr.msk.bf16.gmra.mrb[24].mxu0 %vm372_vm1, %v4742_v59  ;;  %3974 = vmatprep.mubr.msk.bf16.mxu1 %vm372_vm1, %v4814_v17 }
  0xf6   : > { %4126 = vmatprep.mubr.msk.bf16.mxu0 %vm372_vm1, %v2470_v36 }
  0xfc   : > { %3975 = vmatmul.mubr.msk.bf16.gmra.mrb[12].mxu1 %vm372_vm1, %v4818_v23 }
  0xfd   : > { %4127 = vmatmul.mubr.msk.bf16.gmra.mrb[28].mxu0 %vm372_vm1, %v2471_v50  ;;  %3978 = vmatprep.mubr.msk.bf16.mxu1 %vm372_vm1, %v4828_v27 }
  0xfe   : > { %4132 = vmatprep.mubr.msk.bf16.mxu0 %vm372_vm1, %v4684_v12  ;;  %v1559_v12 = vld [vmem:[#allocation2 + $0xf1] sm:$0xff] }
 0x104   : > { %3979 = vmatmul.mubr.msk.bf16.gmra.mrb[16].mxu1 %vm372_vm1, %v4830_v32 }
 0x105   : > { %4133 = vmatmul.mubr.msk.bf16.vlgmr.msra.gmra.mrb[0].mxu0 %vm372_vm1, %v4689_v15  ;;  %3982 = vmatprep.mubr.msk.bf16.mxu1 %vm372_vm1, %v4846_v49  ;;  %v1582_v15 = vpack.c.bf16 %v1560_v13, %v1559_v12 }
 0x106   : > { %4136 = vmatprep.mubr.msk.bf16.mxu0 %vm372_vm1, %v4712_v29  ;;  %v2749_v29 = vld [vmem:[#allocation2 + $0x1a2] sm:$0xff] }
 0x10c   : > { %3983 = vmatmul.mubr.msk.bf16.gmra.mrb[20].mxu1 %vm372_vm1, %v4848_v52 }
 0x10d   : > { %4137 = vmatmul.mubr.msk.bf16.gmra.mrb[4].mxu0 %vm372_vm1, %v4716_v31  ;;  %3986 = vmatprep.mubr.msk.bf16.mxu1 %vm372_vm1, %v4858_v4 }
 0x10e   : > { %4140 = vmatprep.mubr.msk.bf16.mxu0 %vm372_vm1, %v4728_v44 }
 0x114   : > { %3987 = vmatmul.mubr.msk.bf16.gmra.mrb[24].mxu1 %vm372_vm1, %v4860_v6 }
 0x115   : > { %4141 = vmatmul.mubr.msk.bf16.gmra.mrb[8].mxu0 %vm372_vm1, %v4732_v46  ;;  %3990 = vmatprep.mubr.msk.bf16.mxu1 %vm372_vm1, %v4870_v5 }
 0x116   : > { %4144 = vmatprep.mubr.msk.bf16.mxu0 %vm372_vm1, %v4744_v60 }
 0x11c   : > { %3991 = vmatmul.mubr.msk.bf16.gmra.mrb[28].mxu1 %vm372_vm1, %v4899_v39 }
 0x11d   : > { %4145 = vmatmul.mubr.msk.bf16.gmra.mrb[12].mxu0 %vm372_vm1, %v4746_v62  ;;  %4012 = vmatprep.mubr.msk.bf16.mxu1 %vm372_vm1, %v1581_v11 }
 0x11e   : > { %4148 = vmatprep.mubr.msk.bf16.mxu0 %vm372_vm1, %v4757_v16 }
 0x124   : > { %4013 = vmatmul.mubr.msk.bf16.vlgmr.msra.gmra.mrb[16].mxu1 %vm372_vm1, %v1582_v15 }
 0x125   : > { %4149 = vmatmul.mubr.msk.bf16.gmra.mrb[16].mxu0 %vm372_vm1, %v4763_v20  ;;  %4016 = vmatprep.mubr.msk.bf16.mxu1 %vm372_vm1, %v4710_v28  ;;  %v2748_v28 = vld [vmem:[#allocation2 + $0x19a] sm:$0xff] }
 0x126   : > { %4152 = vmatprep.mubr.msk.bf16.mxu0 %vm372_vm1, %v4782_v35 }
 0x12c   : > { %4017 = vmatmul.mubr.msk.bf16.gmra.mrb[20].mxu1 %vm372_vm1, %v4714_v30  ;;  %v2765_v30 = vpack.c.bf16 %v2749_v29, %v2748_v28 }
 0x12d   : > { %4153 = vmatmul.mubr.msk.bf16.gmra.mrb[20].mxu0 %vm372_vm1, %v4786_v38  ;;  %4020 = vmatprep.mubr.msk.bf16.mxu1 %vm372_vm1, %v4726_v41 }
 0x12e   : > { %4156 = vmatprep.mubr.msk.bf16.mxu0 %vm372_vm1, %v4799_v58 }
 0x134   : > { %4021 = vmatmul.mubr.msk.bf16.gmra.mrb[24].mxu1 %vm372_vm1, %v4730_v45 }
 0x135   : > { %4157 = vmatmul.mubr.msk.bf16.gmra.mrb[24].mxu0 %vm372_vm1, %v4803_v0  ;;  %4024 = vmatprep.mubr.msk.bf16.mxu1 %vm372_vm1, %v4742_v59 }
 0x136   : > { %4160 = vmatprep.mubr.msk.bf16.mxu0 %vm372_vm1, %v4816_v22 }
 0x13c   : > { %4025 = vmatmul.mubr.msk.bf16.gmra.mrb[28].mxu1 %vm372_vm1, %v2470_v36 }
 0x13d   : > { %4161 = vmatmul.mubr.msk.bf16.gmra.mrb[28].mxu0 %vm372_vm1, %v2765_v30 }
 0x1b7   : > { %v3964_v31 = vpop.f32.mrb[0].mxu1 }
 0x1b8   : > { %v1382_v41 = vpop.f32.mrb[1].mxu1 }
 0x1b9   : > { %v3965_v44 = vpop.f32.mrb[2].mxu1 }
 0x1ba   : > { %v1385_v45 = vpop.f32.mrb[3].mxu1 }
 0x1bf   : > { %v3968_v46 = vpop.f32.mrb[4].mxu1 }
 0x1c0   : > { %v1398_v60 = vpop.f32.mrb[5].mxu1 }
 0x1c1   : > { %v3969_v62 = vpop.f32.mrb[6].mxu1 }
 0x1c2   : > { %v1401_v14 = vpop.f32.mrb[7].mxu1 }
 0x1c7   : > { %v5036_v59 = vpop.f32.mrb[8].mxu1 }
 0x1c8   : > { %v5038_v16 = vpop.f32.mrb[9].mxu1 }
 0x1c9   : > { %v5040_v18 = vpop.f32.mrb[10].mxu1 }
 0x1ca   : > { %v5042_v20 = vpop.f32.mrb[11].mxu1 }
 0x1cf   : > { %v5044_v33 = vpop.f32.mrb[12].mxu1 }
 0x1d0   : > { %v5046_v35 = vpop.f32.mrb[13].mxu1 }
 0x1d1   : > { %v5048_v37 = vpop.f32.mrb[14].mxu1 }
 0x1d2   : > { %v5050_v38 = vpop.f32.mrb[15].mxu1 }
 0x1d8   : > { %v4134_v54 = vpop.f32.mrb[0].mxu0 }
 0x1d9   : > { %v4166_v58 = vadd.f32 %v4134_v54, %v3964_v31  ;;  %v2853_v61 = vpop.f32.mrb[1].mxu0 }
 0x1da   : > { %v4167_v0 = vadd.f32 %v2853_v61, %v1382_v41  ;;  %v4135_v17 = vpop.f32.mrb[2].mxu0 }
 0x1db   : > { %v3631_v22 = vpack.c.bf16 %v4166_v58, %v4166_v58  ;;  %v4168_v23 = vadd.f32 %v4135_v17, %v3965_v44  ;;  %v2856_v27 = vpop.f32.mrb[3].mxu0  ;;  %v3247_v49 = vmul.f32 %v4166_v58, %v4166_v58  ;;  %v3177_v7 = vsel %vm3173_vm4, %v4166_v58, 0.0 }
 0x1dc   : > { %v3629_v32 = vpack.c.bf16 %v4167_v0, %v4167_v0  ;;  %v3245_v40 = vmul.f32 %v4167_v0, %v4167_v0  ;;  %v4169_v48 = vadd.f32 %v2856_v27, %v1385_v45  ;;  %v3174_v53 = vsel %vm3173_vm4, %v4167_v0, 0.0 }
 0x1dd   : > { %3143 = vst.msk [vmem:[%s5056_s3 + $0x8] sm:$0xf] %vm3140_vm3, %v3631_v22  ;;  %v3632_v52 = vpack.c.bf16 %v4168_v23, %v4168_v23  ;;  %v3248_v4 = vmul.f32 %v4168_v23, %v4168_v23  ;;  %v3280_v21 = vsel %vm3173_vm4, %v3247_v49, 0.0  ;;  %v3179_v9 = vsel %vm3173_vm4, %v4168_v23, 0.0 }
 0x1de   : > { %3141 = vst.msk [vmem:[%s5056_s3] sm:$0xf] %vm3140_vm3, %v3629_v32  ;;  %v3630_v55 = vpack.c.bf16 %v4169_v48, %v4169_v48  ;;  %v3175_v63 = vsel %vm3173_vm4, %v4169_v48, 0.0  ;;  %v3246_v2 = vmul.f32 %v4169_v48, %v4169_v48  ;;  %v3277_v8 = vsel %vm3173_vm4, %v3245_v40, 0.0 }
 0x1df   : > { %3144 = vst.msk [vmem:[%s5056_s3 + $0xc] sm:$0xf] %vm3140_vm3, %v3632_v52  ;;  %v3176_v6 = vadd.f32 %v3175_v63, %v3174_v53  ;;  %v3282_v47 = vsel %vm3173_vm4, %v3248_v4, 0.0 }
 0x1e0   : > { %3142 = vst.msk [vmem:[%s5056_s3 + $0x4] sm:$0xf] %vm3140_vm3, %v3630_v55  ;;  %v3278_v10 = vsel %vm3173_vm4, %v3246_v2, 0.0  ;;  %v4138_v24 = vpop.f32.mrb[4].mxu0 }
 0x1e1   : > { %v3178_v5 = vadd.f32 %v3177_v7, %v3176_v6  ;;  %v3279_v25 = vadd.f32 %v3278_v10, %v3277_v8  ;;  %v4170_v26 = vadd.f32 %v4138_v24, %v3968_v46  ;;  %v2869_v57 = vpop.f32.mrb[5].mxu0 }
 0x1e2   : > { %v4171_v39 = vadd.f32 %v2869_v57, %v1398_v60  ;;  %v4139_v1 = vpop.f32.mrb[6].mxu0 }
 0x1e3   : > { %v3281_v19 = vadd.f32 %v3280_v21, %v3279_v25  ;;  %v3635_v3 = vpack.c.bf16 %v4170_v26, %v4170_v26  ;;  %v2872_v34 = vpop.f32.mrb[7].mxu0  ;;  %v3180_v42 = vadd.f32 %v3179_v9, %v3178_v5  ;;  %v4172_v56 = vadd.f32 %v4139_v1, %v3969_v62 }
 0x1e4   : > { %v3633_v36 = vpack.c.bf16 %v4171_v39, %v4171_v39  ;;  %v3181_v43 = vsel %vm3173_vm4, %v4171_v39, 0.0  ;;  %v3249_v50 = vmul.f32 %v4171_v39, %v4171_v39  ;;  %v4173_v11 = vadd.f32 %v2872_v34, %v1401_v14 }
 0x1e5   : > { %3147 = vst.msk [vmem:[%s5056_s3 + $0x18] sm:$0xf] %vm3140_vm3, %v3635_v3  ;;  %v3283_v51 = vadd.f32 %v3282_v47, %v3281_v19  ;;  %v3182_v12 = vadd.f32 %v3181_v43, %v3180_v42  ;;  %v3251_v15 = vmul.f32 %v4170_v26, %v4170_v26  ;;  %v3636_v29 = vpack.c.bf16 %v4172_v56, %v4172_v56 }
 0x1e6   : > { %3145 = vst.msk [vmem:[%s5056_s3 + $0x10] sm:$0xf] %vm3140_vm3, %v3633_v36  ;;  %v3284_v13 = vsel %vm3173_vm4, %v3249_v50, 0.0  ;;  %v3634_v30 = vpack.c.bf16 %v4173_v11, %v4173_v11  ;;  %v3183_v31 = vsel %vm3173_vm4, %v4173_v11, 0.0  ;;  %v3250_v41 = vmul.f32 %v4173_v11, %v4173_v11 }
 0x1e7   : > { %v3285_v28 = vadd.f32 %v3284_v13, %v3283_v51  ;;  %3148 = vst.msk [vmem:[%s5056_s3 + $0x1c] sm:$0xf] %vm3140_vm3, %v3636_v29  ;;  %v3184_v45 = vadd.f32 %v3183_v31, %v3182_v12  ;;  %v3185_v62 = vsel %vm3173_vm4, %v4170_v26, 0.0  ;;  %v3252_v14 = vmul.f32 %v4172_v56, %v4172_v56 }
 0x1e8   : > { %v4142_v44 = vpop.f32.mrb[8].mxu0  ;;  %3146 = vst.msk [vmem:[%s5056_s3 + $0x14] sm:$0xf] %vm3140_vm3, %v3634_v30  ;;  %v3286_v54 = vsel %vm3173_vm4, %v3250_v41, 0.0  ;;  %v3288_v0 = vsel %vm3173_vm4, %v3251_v15, 0.0 }
 0x1e9   : > { %v4174_v46 = vadd.f32 %v4142_v44, %v5036_v59  ;;  %v2885_v60 = vpop.f32.mrb[9].mxu0  ;;  %v3186_v17 = vadd.f32 %v3185_v62, %v3184_v45  ;;  %v3287_v22 = vadd.f32 %v3286_v54, %v3285_v28  ;;  %v3187_v59 = vsel %vm3173_vm4, %v4172_v56, 0.0 }
 0x1ea   : > { %v4175_v58 = vadd.f32 %v2885_v60, %v5038_v16  ;;  %v4143_v61 = vpop.f32.mrb[10].mxu0  ;;  %v3290_v55 = vsel %vm3173_vm4, %v3252_v14, 0.0 }
 0x1eb   : > { %v3639_v23 = vpack.c.bf16 %v4174_v46, %v4174_v46  ;;  %v2888_v27 = vpop.f32.mrb[11].mxu0  ;;  %v3289_v49 = vadd.f32 %v3288_v0, %v3287_v22  ;;  %v3188_v52 = vadd.f32 %v3187_v59, %v3186_v17  ;;  %v4176_v16 = vadd.f32 %v4143_v61, %v5040_v18 }
 0x1ec   : > { %v3637_v32 = vpack.c.bf16 %v4175_v58, %v4175_v58  ;;  %v3189_v40 = vsel %vm3173_vm4, %v4175_v58, 0.0  ;;  %v3253_v48 = vmul.f32 %v4175_v58, %v4175_v58  ;;  %v4177_v53 = vadd.f32 %v2888_v27, %v5042_v20 }
 0x1ed   : > { %3151 = vst.msk [vmem:[%s5056_s3 + $0x28] sm:$0xf] %vm3140_vm3, %v3639_v23  ;;  %v3255_v2 = vmul.f32 %v4174_v46, %v4174_v46  ;;  %v3190_v4 = vadd.f32 %v3189_v40, %v3188_v52  ;;  %v3291_v6 = vadd.f32 %v3290_v55, %v3289_v49  ;;  %v3640_v7 = vpack.c.bf16 %v4176_v16, %v4176_v16 }
 0x1ee   : > { %3149 = vst.msk [vmem:[%s5056_s3 + $0x20] sm:$0xf] %vm3140_vm3, %v3637_v32  ;;  %v3292_v63 = vsel %vm3173_vm4, %v3253_v48, 0.0  ;;  %v3638_v8 = vpack.c.bf16 %v4177_v53, %v4177_v53  ;;  %v3191_v10 = vsel %vm3173_vm4, %v4177_v53, 0.0  ;;  %v3254_v24 = vmul.f32 %v4177_v53, %v4177_v53 }
 0x1ef   : > { %v3293_v25 = vadd.f32 %v3292_v63, %v3291_v6  ;;  %3152 = vst.msk [vmem:[%s5056_s3 + $0x2c] sm:$0xf] %vm3140_vm3, %v3640_v7  ;;  %v3192_v18 = vadd.f32 %v3191_v10, %v3190_v4  ;;  %v3193_v57 = vsel %vm3173_vm4, %v4174_v46, 0.0  ;;  %v3256_v21 = vmul.f32 %v4176_v16, %v4176_v16 }
 0x1f0   : > { %v4146_v5 = vpop.f32.mrb[12].mxu0  ;;  %3150 = vst.msk [vmem:[%s5056_s3 + $0x24] sm:$0xf] %vm3140_vm3, %v3638_v8  ;;  %v3294_v39 = vsel %vm3173_vm4, %v3254_v24, 0.0  ;;  %v3296_v47 = vsel %vm3173_vm4, %v3255_v2, 0.0 }
 0x1f1   : > { %v4178_v20 = vadd.f32 %v4146_v5, %v5044_v33  ;;  %v2901_v26 = vpop.f32.mrb[13].mxu0  ;;  %v3194_v19 = vadd.f32 %v3193_v57, %v3192_v18  ;;  %v3295_v3 = vadd.f32 %v3294_v39, %v3293_v25  ;;  %v3195_v33 = vsel %vm3173_vm4, %v4176_v16, 0.0 }
 0x1f2   : > { %v4179_v1 = vadd.f32 %v2901_v26, %v5046_v35  ;;  %v4147_v9 = vpop.f32.mrb[14].mxu0  ;;  %v3298_v12 = vsel %vm3173_vm4, %v3256_v21, 0.0 }
 0x1f3   : > { %v3643_v34 = vpack.c.bf16 %v4178_v20, %v4178_v20  ;;  %v2904_v36 = vpop.f32.mrb[15].mxu0  ;;  %v3297_v51 = vadd.f32 %v3296_v47, %v3295_v3  ;;  %v3196_v56 = vadd.f32 %v3195_v33, %v3194_v19  ;;  %v4180_v35 = vadd.f32 %v4147_v9, %v5048_v37 }
 0x1f4   : > { %v3641_v42 = vpack.c.bf16 %v4179_v1, %v4179_v1  ;;  %v3197_v43 = vsel %vm3173_vm4, %v4179_v1, 0.0  ;;  %v3257_v50 = vmul.f32 %v4179_v1, %v4179_v1  ;;  %v4181_v11 = vadd.f32 %v2904_v36, %v5050_v38 }
 0x1f5   : > { %3155 = vst.msk [vmem:[%s5056_s3 + $0x38] sm:$0xf] %vm3140_vm3, %v3643_v34  ;;  %v3259_v15 = vmul.f32 %v4178_v20, %v4178_v20  ;;  %v3198_v28 = vadd.f32 %v3197_v43, %v3196_v56  ;;  %v3299_v29 = vadd.f32 %v3298_v12, %v3297_v51  ;;  %v3644_v30 = vpack.c.bf16 %v4180_v35, %v4180_v35 }
 0x1f6   : > { %3153 = vst.msk [vmem:[%s5056_s3 + $0x30] sm:$0xf] %vm3140_vm3, %v3641_v42  ;;  %v3300_v13 = vsel %vm3173_vm4, %v3257_v50, 0.0  ;;  %v3642_v41 = vpack.c.bf16 %v4181_v11, %v4181_v11  ;;  %v3199_v44 = vsel %vm3173_vm4, %v4181_v11, 0.0  ;;  %v3258_v45 = vmul.f32 %v4181_v11, %v4181_v11 }
 0x1f7   : > { %v4014_v31 = vpop.f32.mrb[16].mxu1  ;;  %v3301_v60 = vadd.f32 %v3300_v13, %v3299_v29  ;;  %3156 = vst.msk [vmem:[%s5056_s3 + $0x3c] sm:$0xf] %vm3140_vm3, %v3644_v30  ;;  %v3200_v38 = vadd.f32 %v3199_v44, %v3198_v28  ;;  %v3201_v58 = vsel %vm3173_vm4, %v4178_v20, 0.0  ;;  %v3260_v61 = vmul.f32 %v4180_v35, %v4180_v35 }
 0x1f8   : > { %v4150_v37 = vpop.f32.mrb[16].mxu0  ;;  %v1740_v46 = vpop.f32.mrb[17].mxu1  ;;  %3154 = vst.msk [vmem:[%s5056_s3 + $0x34] sm:$0xf] %vm3140_vm3, %v3642_v41  ;;  %v3302_v0 = vsel %vm3173_vm4, %v3258_v45, 0.0  ;;  %v3304_v27 = vsel %vm3173_vm4, %v3259_v15, 0.0 }
 0x1f9   : > { %v4182_v62 = vadd.f32 %v4150_v37, %v4014_v31  ;;  %v2917_v14 = vpop.f32.mrb[17].mxu0  ;;  %v4015_v54 = vpop.f32.mrb[18].mxu1  ;;  %v3202_v59 = vadd.f32 %v3201_v58, %v3200_v38  ;;  %v3303_v32 = vadd.f32 %v3302_v0, %v3301_v60  ;;  %v3203_v49 = vsel %vm3173_vm4, %v4180_v35, 0.0 }
 0x1fa   : > { %v4183_v17 = vadd.f32 %v2917_v14, %v1740_v46  ;;  %v4151_v22 = vpop.f32.mrb[18].mxu0  ;;  %v1743_v23 = vpop.f32.mrb[19].mxu1  ;;  %v3306_v6 = vsel %vm3173_vm4, %v3260_v61, 0.0 }
 0x1fb   : > { %v3647_v40 = vpack.c.bf16 %v4182_v62, %v4182_v62  ;;  %v2920_v48 = vpop.f32.mrb[19].mxu0  ;;  %v3305_v55 = vadd.f32 %v3304_v27, %v3303_v32  ;;  %v3204_v63 = vadd.f32 %v3203_v49, %v3202_v59  ;;  %v4184_v2 = vadd.f32 %v4151_v22, %v4015_v54 }
 0x1fc   : > { %v3645_v52 = vpack.c.bf16 %v4183_v17, %v4183_v17  ;;  %v3205_v16 = vsel %vm3173_vm4, %v4183_v17, 0.0  ;;  %v3261_v53 = vmul.f32 %v4183_v17, %v4183_v17  ;;  %v4185_v4 = vadd.f32 %v2920_v48, %v1743_v23 }
 0x1fd   : > { %3159 = vst.msk [vmem:[%s5056_s3 + $0x48] sm:$0xf] %vm3140_vm3, %v3647_v40  ;;  %v3263_v8 = vmul.f32 %v4182_v62, %v4182_v62  ;;  %v3206_v10 = vadd.f32 %v3205_v16, %v3204_v63  ;;  %v3307_v24 = vadd.f32 %v3306_v6, %v3305_v55  ;;  %v3648_v5 = vpack.c.bf16 %v4184_v2, %v4184_v2 }
 0x1fe   : > { %3157 = vst.msk [vmem:[%s5056_s3 + $0x40] sm:$0xf] %vm3140_vm3, %v3645_v52  ;;  %v3308_v7 = vsel %vm3173_vm4, %v3261_v53, 0.0  ;;  %v3646_v18 = vpack.c.bf16 %v4185_v4, %v4185_v4  ;;  %v3207_v20 = vsel %vm3173_vm4, %v4185_v4, 0.0  ;;  %v3262_v26 = vmul.f32 %v4185_v4, %v4185_v4 }
 0x1ff   : > { %v4018_v25 = vpop.f32.mrb[20].mxu1  ;;  %v3309_v39 = vadd.f32 %v3308_v7, %v3307_v24  ;;  %3160 = vst.msk [vmem:[%s5056_s3 + $0x4c] sm:$0xf] %vm3140_vm3, %v3648_v5  ;;  %v3208_v1 = vadd.f32 %v3207_v20, %v3206_v10  ;;  %v3209_v3 = vsel %vm3173_vm4, %v4182_v62, 0.0  ;;  %v3264_v34 = vmul.f32 %v4184_v2, %v4184_v2 }
 0x200   : > { %v4154_v57 = vpop.f32.mrb[20].mxu0  ;;  %v1756_v21 = vpop.f32.mrb[21].mxu1  ;;  %3158 = vst.msk [vmem:[%s5056_s3 + $0x44] sm:$0xf] %vm3140_vm3, %v3646_v18  ;;  %v3310_v36 = vsel %vm3173_vm4, %v3262_v26, 0.0  ;;  %v3312_v50 = vsel %vm3173_vm4, %v3263_v8, 0.0 }
 0x201   : > { %v4186_v9 = vadd.f32 %v4154_v57, %v4018_v25  ;;  %v2933_v47 = vpop.f32.mrb[21].mxu0  ;;  %v4019_v19 = vpop.f32.mrb[22].mxu1  ;;  %v3210_v51 = vadd.f32 %v3209_v3, %v3208_v1  ;;  %v3311_v56 = vadd.f32 %v3310_v36, %v3309_v39  ;;  %v3211_v12 = vsel %vm3173_vm4, %v4184_v2, 0.0 }
 0x202   : > { %v4187_v33 = vadd.f32 %v2933_v47, %v1756_v21  ;;  %v4155_v42 = vpop.f32.mrb[22].mxu0  ;;  %v1759_v43 = vpop.f32.mrb[23].mxu1  ;;  %v3314_v44 = vsel %vm3173_vm4, %v3264_v34, 0.0 }
 0x203   : > { %v3651_v35 = vpack.c.bf16 %v4186_v9, %v4186_v9  ;;  %v2936_v11 = vpop.f32.mrb[23].mxu0  ;;  %v3313_v29 = vadd.f32 %v3312_v50, %v3311_v56  ;;  %v3212_v30 = vadd.f32 %v3211_v12, %v3210_v51  ;;  %v4188_v31 = vadd.f32 %v4155_v42, %v4019_v19 }
 0x204   : > { %v3649_v13 = vpack.c.bf16 %v4187_v33, %v4187_v33  ;;  %v3213_v15 = vsel %vm3173_vm4, %v4187_v33, 0.0  ;;  %v3265_v28 = vmul.f32 %v4187_v33, %v4187_v33  ;;  %v4189_v41 = vadd.f32 %v2936_v11, %v1759_v43 }
 0x205   : > { %3163 = vst.msk [vmem:[%s5056_s3 + $0x58] sm:$0xf] %vm3140_vm3, %v3651_v35  ;;  %v3267_v37 = vmul.f32 %v4186_v9, %v4186_v9  ;;  %v3214_v46 = vadd.f32 %v3213_v15, %v3212_v30  ;;  %v3315_v60 = vadd.f32 %v3314_v44, %v3313_v29  ;;  %v3652_v38 = vpack.c.bf16 %v4188_v31, %v4188_v31 }
 0x206   : > { %3161 = vst.msk [vmem:[%s5056_s3 + $0x50] sm:$0xf] %vm3140_vm3, %v3649_v13  ;;  %v3316_v45 = vsel %vm3173_vm4, %v3265_v28, 0.0  ;;  %v3650_v14 = vpack.c.bf16 %v4189_v41, %v4189_v41  ;;  %v3215_v54 = vsel %vm3173_vm4, %v4189_v41, 0.0  ;;  %v3266_v58 = vmul.f32 %v4189_v41, %v4189_v41 }
 0x207   : > { %v4022_v62 = vpop.f32.mrb[24].mxu1  ;;  %v3317_v17 = vadd.f32 %v3316_v45, %v3315_v60  ;;  %3164 = vst.msk [vmem:[%s5056_s3 + $0x5c] sm:$0xf] %vm3140_vm3, %v3652_v38  ;;  %v3216_v22 = vadd.f32 %v3215_v54, %v3214_v46  ;;  %v3217_v32 = vsel %vm3173_vm4, %v4186_v9, 0.0  ;;  %v3268_v40 = vmul.f32 %v4188_v31, %v4188_v31 }
 0x208   : > { %v4158_v61 = vpop.f32.mrb[24].mxu0  ;;  %v1772_v0 = vpop.f32.mrb[25].mxu1  ;;  %3162 = vst.msk [vmem:[%s5056_s3 + $0x54] sm:$0xf] %vm3140_vm3, %v3650_v14  ;;  %v3318_v48 = vsel %vm3173_vm4, %v3266_v58, 0.0  ;;  %v3320_v53 = vsel %vm3173_vm4, %v3267_v37, 0.0 }
 0x209   : > { %v4190_v23 = vadd.f32 %v4158_v61, %v4022_v62  ;;  %v2949_v27 = vpop.f32.mrb[25].mxu0  ;;  %v4023_v59 = vpop.f32.mrb[26].mxu1  ;;  %v3218_v55 = vadd.f32 %v3217_v32, %v3216_v22  ;;  %v3319_v63 = vadd.f32 %v3318_v48, %v3317_v17  ;;  %v3219_v6 = vsel %vm3173_vm4, %v4188_v31, 0.0 }
 0x20a   : > { %v4191_v49 = vadd.f32 %v2949_v27, %v1772_v0  ;;  %v4159_v52 = vpop.f32.mrb[26].mxu0  ;;  %v1775_v16 = vpop.f32.mrb[27].mxu1  ;;  %v3322_v20 = vsel %vm3173_vm4, %v3268_v40, 0.0 }
 0x20b   : > { %v3655_v2 = vpack.c.bf16 %v4190_v23, %v4190_v23  ;;  %v2952_v4 = vpop.f32.mrb[27].mxu0  ;;  %v3321_v24 = vadd.f32 %v3320_v53, %v3319_v63  ;;  %v3220_v5 = vadd.f32 %v3219_v6, %v3218_v55  ;;  %v4192_v25 = vadd.f32 %v4159_v52, %v4023_v59 }
 0x20c   : > { %v3653_v7 = vpack.c.bf16 %v4191_v49, %v4191_v49  ;;  %v3221_v8 = vsel %vm3173_vm4, %v4191_v49, 0.0  ;;  %v3269_v10 = vmul.f32 %v4191_v49, %v4191_v49  ;;  %v4193_v18 = vadd.f32 %v2952_v4, %v1775_v16 }
 0x20d   : > { %3167 = vst.msk [vmem:[%s5056_s3 + $0x68] sm:$0xf] %vm3140_vm3, %v3655_v2  ;;  %v3271_v57 = vmul.f32 %v4190_v23, %v4190_v23  ;;  %v3222_v21 = vadd.f32 %v3221_v8, %v3220_v5  ;;  %v3323_v39 = vadd.f32 %v3322_v20, %v3321_v24  ;;  %v3656_v1 = vpack.c.bf16 %v4192_v25, %v4192_v25 }
 0x20e   : > { %3165 = vst.msk [vmem:[%s5056_s3 + $0x60] sm:$0xf] %vm3140_vm3, %v3653_v7  ;;  %v3324_v26 = vsel %vm3173_vm4, %v3269_v10, 0.0  ;;  %v3654_v47 = vpack.c.bf16 %v4193_v18, %v4193_v18  ;;  %v3223_v19 = vsel %vm3173_vm4, %v4193_v18, 0.0  ;;  %v3270_v3 = vmul.f32 %v4193_v18, %v4193_v18 }
 0x20f   : > { %v4026_v9 = vpop.f32.mrb[28].mxu1  ;;  %v3325_v33 = vadd.f32 %v3324_v26, %v3323_v39  ;;  %3168 = vst.msk [vmem:[%s5056_s3 + $0x6c] sm:$0xf] %vm3140_vm3, %v3656_v1  ;;  %v3224_v42 = vadd.f32 %v3223_v19, %v3222_v21  ;;  %v3225_v56 = vsel %vm3173_vm4, %v4190_v23, 0.0  ;;  %v3272_v35 = vmul.f32 %v4192_v25, %v4192_v25 }
 0x210   : > { %v4162_v34 = vpop.f32.mrb[28].mxu0  ;;  %v1788_v36 = vpop.f32.mrb[29].mxu1  ;;  %3166 = vst.msk [vmem:[%s5056_s3 + $0x64] sm:$0xf] %vm3140_vm3, %v3654_v47  ;;  %v3326_v11 = vsel %vm3173_vm4, %v3270_v3, 0.0  ;;  %v3328_v28 = vsel %vm3173_vm4, %v3271_v57, 0.0 }
 0x211   : > { %v4194_v43 = vadd.f32 %v4162_v34, %v4026_v9  ;;  %v2965_v50 = vpop.f32.mrb[29].mxu0  ;;  %v4027_v51 = vpop.f32.mrb[30].mxu1  ;;  %v3226_v29 = vadd.f32 %v3225_v56, %v3224_v42  ;;  %v3327_v30 = vadd.f32 %v3326_v11, %v3325_v33  ;;  %v3227_v44 = vsel %vm3173_vm4, %v4192_v25, 0.0 }
 0x212   : > { %v4195_v12 = vadd.f32 %v2965_v50, %v1788_v36  ;;  %v4163_v13 = vpop.f32.mrb[30].mxu0  ;;  %v1791_v15 = vpop.f32.mrb[31].mxu1  ;;  %v3330_v54 = vsel %vm3173_vm4, %v3272_v35, 0.0 }
 0x213   : > { %v3659_v31 = vpack.c.bf16 %v4194_v43, %v4194_v43  ;;  %v2968_v41 = vpop.f32.mrb[31].mxu0  ;;  %v3329_v60 = vadd.f32 %v3328_v28, %v3327_v30  ;;  %v3228_v38 = vadd.f32 %v3227_v44, %v3226_v29  ;;  %v4196_v62 = vadd.f32 %v4163_v13, %v4027_v51 }
 0x214   : > { %v3657_v45 = vpack.c.bf16 %v4195_v12, %v4195_v12  ;;  %v3229_v37 = vsel %vm3173_vm4, %v4195_v12, 0.0  ;;  %v3273_v46 = vmul.f32 %v4195_v12, %v4195_v12  ;;  %v4197_v14 = vadd.f32 %v2968_v41, %v1791_v15 }
 0x215   : > { %3171 = vst.msk [vmem:[%s5056_s3 + $0x78] sm:$0xf] %vm3140_vm3, %v3659_v31  ;;  %v3230_v61 = vadd.f32 %v3229_v37, %v3228_v38  ;;  %v3331_v0 = vadd.f32 %v3330_v54, %v3329_v60  ;;  %v3660_v17 = vpack.c.bf16 %v4196_v62, %v4196_v62  ;;  %v3275_v22 = vmul.f32 %v4194_v43, %v4194_v43 }
 0x216   : > { %3169 = vst.msk [vmem:[%s5056_s3 + $0x70] sm:$0xf] %vm3140_vm3, %v3657_v45  ;;  %v3332_v58 = vsel %vm3173_vm4, %v3273_v46, 0.0  ;;  %v3658_v23 = vpack.c.bf16 %v4197_v14, %v4197_v14  ;;  %v3231_v27 = vsel %vm3173_vm4, %v4197_v14, 0.0  ;;  %v3274_v59 = vmul.f32 %v4197_v14, %v4197_v14 }
 0x217   : > { %v3333_v32 = vadd.f32 %v3332_v58, %v3331_v0  ;;  %3172 = vst.msk [vmem:[%s5056_s3 + $0x7c] sm:$0xf] %vm3140_vm3, %v3660_v17  ;;  %v3232_v40 = vadd.f32 %v3231_v27, %v3230_v61  ;;  %v3233_v48 = vsel %vm3173_vm4, %v4194_v43, 0.0  ;;  %v3276_v49 = vmul.f32 %v4196_v62, %v4196_v62 }
 0x218   : > { %3170 = vst.msk [vmem:[%s5056_s3 + $0x74] sm:$0xf] %vm3140_vm3, %v3658_v23  ;;  %v3334_v52 = vsel %vm3173_vm4, %v3274_v59, 0.0  ;;  %v3336_v55 = vsel %vm3173_vm4, %v3275_v22, 0.0  ;;  %v3235_v63 = vsel %vm3173_vm4, %v4196_v62, 0.0 }
 0x219   : > { %v3234_v16 = vadd.f32 %v3233_v48, %v3232_v40  ;;  %v3335_v53 = vadd.f32 %v3334_v52, %v3333_v32  ;;  %v3338_v6 = vsel %vm3173_vm4, %v3276_v49, 0.0 }
 0x21b   : > { %v3236_v2 = vadd.f32 %v3235_v63, %v3234_v16  ;;  %v3337_v4 = vadd.f32 %v3336_v55, %v3335_v53 }
 0x21d   : > { %v3237_v7 = vrot.slane %v3236_v2, 4  ;;  %v3339_v8 = vadd.f32 %v3338_v6, %v3337_v4 }
 0x21f   : > { %v3238_v10 = vadd.f32 %v3237_v7, %v3236_v2  ;;  %v3340_v24 = vrot.slane %v3339_v8, 4 }
 0x221   : > { %v3239_v5 = vrot.slane %v3238_v10, 2  ;;  %v3341_v25 = vadd.f32 %v3340_v24, %v3339_v8 }
 0x223   : > { %v3240_v18 = vadd.f32 %v3239_v5, %v3238_v10  ;;  %v3342_v20 = vrot.slane %v3341_v25, 2 }
 0x225   : > { %v3241_v26 = vrot.slane %v3240_v18, 1  ;;  %v3343_v57 = vadd.f32 %v3342_v20, %v3341_v25 }
 0x227   : > { %v3242_v21 = vadd.f32 %v3241_v26, %v3240_v18  ;;  %v3344_v39 = vrot.slane %v3343_v57, 1 }
 0x229   : > { %3244 = vst.msk [vmem:[%s262_s24] sm:$0x1] %vm3243_vm5, %v3242_v21  ;;  %v3345_v1 = vadd.f32 %v3344_v39, %v3343_v57 }
 0x22b   : > { %3346 = vst.msk [vmem:[%s262_s24 + $0x1] sm:$0x1] %vm3243_vm5, %v3345_v1 }
 0x22c PF: > { %s17_s21 = sadd.s32 1, %s4447_s21  }
 0x22d   : > { %p14_p4 = scmp.ge.s32.totalorder %s17_s21, 4  }
 0x22f   :  { %16 = sbr.rel (!%p14_p4) target bundleno = 1 (0x1), region = 92 }

// kernel: double_conv.4
= control target key start
LH: loop header
LB: loop body
LE: loop exit
PB: predicated region body
PF: predicated region fallthrough
CT: control target
= control target key end

     0   :  { %s5044_s21 = smov 0   ;;  %s6031_s0 = inlined_call_operand.vmem [shape: bf16[2,18,18,8], index: 0, kind: input, shape index: {}]   ;;  %s6032_s1 = inlined_call_operand.vmem [shape: bf16[9,8,8], index: 1, kind: input, shape index: {}]   ;;  %s6033_s2 = inlined_call_operand.vmem [shape: f32[1,8], index: 2, kind: input, shape index: {}]   ;;  %s6034_s3 = inlined_call_operand.vmem [shape: f32[1,8], index: 3, kind: input, shape index: {}]   ;;  %s6035_s4 = inlined_call_operand.vmem [shape: f32[18,18,1], index: 4, kind: input, shape index: {}]   ;;  %s6036_s5 = inlined_call_operand.vmem [shape: bf16[2,256,8], index: 5, kind: output, shape index: {0}]   ;;  %s6037_s6 = inlined_call_operand.vmem [shape: f32[2,2,8], index: 6, kind: output, shape index: {1}]  }
   0x1 LB: > { %s3986_s22 = sadd.s32 4294967295, %s5006_s21   ;;  %p3990_p0 = scmp.ge.s32.totalorder %s5006_s21, 1  ;;  %s5006_s21 = sphi %s5044_s21, %s17_s21  }
   0x2   : > { %p215_p1 = scmp.lt.s32.totalorder %s5006_s21, 3 }
   0x4   : > { %p216_p2 = pnand %p3990_p0, %p215_p1 }
   0x5   : > { %v550_v0 = vld [vmem:[%s6035_s4 + $0x10] sm:$0x3] (!%p216_p2)  ;;  %v548_v1 = vld [vmem:[%s6035_s4] sm:$0xff] (!%p216_p2)  ;;  %v5008_v2 = vmov (!%p216_p2), 0   ;;  %v551_v3 = vld [vmem:[%s6035_s4 + $0x18] sm:$0xff] (!%p216_p2)  ;;  %vm1129_vm0 = vcmask (!%p216_p2), 1043456  }
   0x6   : > { %219 = sbr.rel (%p216_p2) target bundleno = 703 (0x2bf), region = 40  ;;  %4998 = vset.pattern.permute.xlu1 (!%p216_p2), %v5008_v2  ;;  %4997 = vset.pattern.permute.xlu0 (!%p216_p2), %v5008_v2  ;;  %v549_v4 = vld [vmem:[%s6035_s4 + $0x8] sm:$0xff] (!%p216_p2)  ;;  %v552_v6 = vld [vmem:[%s6035_s4 + $0x20] sm:$0xff] (!%p216_p2)  ;;  %v555_v7 = vld [vmem:[%s6035_s4 + $0x38] sm:$0xff] (!%p216_p2)  ;;  %p249_p3 = scmp.lt.s32.totalorder (!%p216_p2), %s3986_s22, 1  ;;  %vm929_vm1 = vcmask (!%p216_p2), 58368  }
   0x7   : > { %614 = vperm.xlu1 (!%p216_p2), %4998, %v550_v0   ;;  %604 = vperm.xlu0 (!%p216_p2), %4997, %v548_v1   ;;  %v553_v5 = vld [vmem:[%s6035_s4 + $0x28] sm:$0x3] (!%p216_p2)  ;;  %v554_v8 = vld [vmem:[%s6035_s4 + $0x30] sm:$0xff] (!%p216_p2)  ;;  %v556_v10 = vld [vmem:[%s6035_s4 + $0x40] sm:$0x3] (!%p216_p2)  ;;  %vm926_vm2 = vcmask (!%p216_p2), 64512  }
   0x8   : > { %v557_v9 = vld [vmem:[%s6035_s4 + $0x48] sm:$0xff] (!%p216_p2)  ;;  %v559_v11 = vld [vmem:[%s6035_s4 + $0x58] sm:$0x3] (!%p216_p2)  ;;  %v558_v12 = vld [vmem:[%s6035_s4 + $0x50] sm:$0xff] (!%p216_p2)  ;;  %vm3694_vm3 = vcmask (!%p216_p2), 60416   ;;  %vm3796_vm4 = vcmask (!%p216_p2), 57344  }
   0x9   : > { %v3997_v13 = vld [vmem:[%s6032_s1 + $0x4] sm:$0xf] (!%p216_p2)  ;;  %v561_v14 = vld [vmem:[%s6035_s4 + $0x68] sm:$0xff] (!%p216_p2)  ;;  %v4064_v16 = vld [vmem:[%s6032_s1 + $0x10] sm:$0xf] (!%p216_p2) }
   0xa   : > { %v560_v15 = vld [vmem:[%s6035_s4 + $0x60] sm:$0xff] (!%p216_p2)  ;;  %4977 = vmatprep.subr.msk.bf16.mxu1 (!%p216_p2), %vm1129_vm0, %v3997_v13  ;;  %v563_v17 = vld [vmem:[%s6035_s4 + $0x78] sm:$0xff] (!%p216_p2)  ;;  %v562_v18 = vld [vmem:[%s6035_s4 + $0x70] sm:$0x3] (!%p216_p2)  ;;  %4981 = vmatprep.subr.msk.bf16.mxu0 (!%p216_p2), %vm1129_vm0, %v4064_v16  ;;  %v1131_v19 = vsel (!%p216_p2), %vm1129_vm0, %v3997_v13, 0  ;;  %v5110_v20 = vsel (!%p216_p2), %vm1129_vm0, %v4064_v16, 0 }
   0xb   : > { %619 = vperm.xlu1 (!%p216_p2), %4998, %v551_v3   ;;  %609 = vperm.xlu0 (!%p216_p2), %4997, %v549_v4   ;;  %v565_v21 = vld [vmem:[%s6035_s4 + $0x88] sm:$0x3] (!%p216_p2)  ;;  %v564_v22 = vld [vmem:[%s6035_s4 + $0x80] sm:$0xff] (!%p216_p2)  ;;  %v567_v23 = vld [vmem:[%s6035_s4 + $0x98] sm:$0xff] (!%p216_p2) }
   0xc   : > { %4414 = vmatpush3.bf16.msra.mxu1 (!%p216_p2), %v1131_v19  ;;  %4550 = vmatpush3.bf16.msra.mxu0 (!%p216_p2), %v5110_v20  ;;  %v566_v24 = vld [vmem:[%s6035_s4 + $0x90] sm:$0xff] (!%p216_p2)  ;;  %v569_v25 = vld [vmem:[%s6035_s4 + $0xa8] sm:$0xff] (!%p216_p2)  ;;  %v568_v26 = vld [vmem:[%s6035_s4 + $0xa0] sm:$0x3] (!%p216_p2) }
   0xd   : > { %v571_v27 = vld [vmem:[%s6035_s4 + $0xb8] sm:$0x3]  ;;  %v570_v28 = vld [vmem:[%s6035_s4 + $0xb0] sm:$0xff]  ;;  %v573_v29 = vld [vmem:[%s6035_s4 + $0xc8] sm:$0xff]  ;;  %s6039_s22 = smov (!%p249_p3, %s3986_s22), 1 }
   0xe   : > { %v572_v30 = vld [vmem:[%s6035_s4 + $0xc0] sm:$0xff]  ;;  %v5151_v32 = vld [vmem:[%s6032_s1 + $0x14] sm:$0xf]  ;;  %v575_v33 = vld [vmem:[%s6035_s4 + $0xd8] sm:$0xff]  ;;  %s4987_s29 = smul.u32 216, %s6039_s22  ;;  %s4183_s27 = sshll.u32 %s6039_s22, 7 }
   0xf   : > { %629 = vperm.xlu1 %4998, %v553_v5   ;;  %624 = vperm.xlu0 %4997, %v552_v6   ;;  %v5146_v31 = vld [vmem:[%s6032_s1] sm:$0xf]  ;;  %v574_v34 = vld [vmem:[%s6035_s4 + $0xd0] sm:$0x3]  ;;  %v577_v35 = vld [vmem:[%s6035_s4 + $0xe8] sm:$0x3]  ;;  %s5882_s30 = scalar_lea.vmem %s6036_s5, %s4183_s27 }
  0x10   : > { %4978 = vmatprep.subr.msk.bf16.mxu1 %vm1129_vm0, %v5146_v31  ;;  %4983 = vmatprep.subr.msk.bf16.mxu0 %vm1129_vm0, %v5151_v32  ;;  %v576_v36 = vld [vmem:[%s6035_s4 + $0xe0] sm:$0xff]  ;;  %v579_v37 = vld [vmem:[%s6035_s4 + $0xf8] sm:$0xff]  ;;  %v578_v38 = vld [vmem:[%s6035_s4 + $0xf0] sm:$0xff]  ;;  %s5251_s8 = scalar_lea.vmem %s6031_s0, %s4987_s29  ;;  %s3994_s7 = sshll.u32 %s6039_s22, 1 }
  0x11   : > { %v581_v39 = vld [vmem:[%s6035_s4 + $0x108] sm:$0xff]  ;;  %v580_v40 = vld [vmem:[%s6035_s4 + $0x100] sm:$0x3]  ;;  %v583_v41 = vld [vmem:[%s6035_s4 + $0x118] sm:$0x3]  ;;  %s262_s10 = scalar_lea.vmem %s6037_s6, %s3994_s7 }
  0x12   : > { %v582_v42 = vld [vmem:[%s6035_s4 + $0x110] sm:$0xff]  ;;  %v585_v43 = vld [vmem:[%s6035_s4 + $0x128] sm:$0xff]  ;;  %v584_v44 = vld [vmem:[%s6035_s4 + $0x120] sm:$0xff] }
  0x13   : > { %639 = vperm.xlu1 %4998, %v555_v7   ;;  %634 = vperm.xlu0 %4997, %v554_v8   ;;  %v587_v45 = vld [vmem:[%s6035_s4 + $0x138] sm:$0xff]  ;;  %v586_v46 = vld [vmem:[%s6035_s4 + $0x130] sm:$0x3]  ;;  %v589_v47 = vld [vmem:[%s6035_s4 + $0x148] sm:$0x3] }
  0x14   : > { %v588_v48 = vld [vmem:[%s6035_s4 + $0x140] sm:$0xff]  ;;  %v591_v49 = vld [vmem:[%s6035_s4 + $0x158] sm:$0xff]  ;;  %v590_v50 = vld [vmem:[%s6035_s4 + $0x150] sm:$0xff] }
  0x15   : > { %v593_v51 = vld [vmem:[%s6035_s4 + $0x168] sm:$0xff]  ;;  %v592_v52 = vld [vmem:[%s6035_s4 + $0x160] sm:$0x3]  ;;  %v595_v53 = vld [vmem:[%s6035_s4 + $0x178] sm:$0x3] }
  0x16   : > { %v594_v54 = vld [vmem:[%s6035_s4 + $0x170] sm:$0xff]  ;;  %v597_v55 = vld [vmem:[%s6035_s4 + $0x188] sm:$0xff]  ;;  %v596_v56 = vld [vmem:[%s6035_s4 + $0x180] sm:$0xff] }
  0x17   : > { %649 = vperm.xlu1 %4998, %v557_v9   ;;  %644 = vperm.xlu0 %4997, %v556_v10   ;;  %v599_v57 = vld [vmem:[%s6035_s4 + $0x198] sm:$0xff]  ;;  %v598_v58 = vld [vmem:[%s6035_s4 + $0x190] sm:$0x3]  ;;  %v601_v59 = vld [vmem:[%s6035_s4 + $0x1a8] sm:$0x3] }
  0x18   : > { %v600_v60 = vld [vmem:[%s6035_s4 + $0x1a0] sm:$0xff]  ;;  %v266_v61 = vld [vmem:[%s5251_s8 + $0x8] sm:$0x1]  ;;  %v267_v1 = vld [vmem:[%s5251_s8 + $0xc] sm:$0xff]  }
  0x19   : > { %v4217_v62 = vld [vmem:[%s5251_s8] sm:$0xff]   ;;  %v320_v63 = vunpack.c.l.bf16 %v266_v61  ;;  %v321_v3 = vunpack.c.l.bf16 %v267_v1  ;;  %v269_v7 = vld [vmem:[%s5251_s8 + $0x14] sm:$0x1] }
  0x1a   : > { %v4218_v0 = vunpack.c.l.bf16 %v4217_v62  ;;  %v5259_v2 = vld [vmem:[%s6033_s2] ss:$0 sm:$0xff]  ;;  %v4219_v6 = vunpack.c.h.bf16 %v4217_v62  ;;  %v323_v10 = vunpack.c.l.bf16 %v269_v7 }
  0x1b   : > { %659 = vperm.xlu1 %4998, %v559_v11   ;;  %654 = vperm.xlu0 %4997, %v558_v12   ;;  %v381_v4 = vmul.f32 %v5259_v2, %v320_v63  ;;  %v5267_v8 = vld [vmem:[%s6034_s3] ss:$0 sm:$0xff]  ;;  %v382_v9 = vmul.f32 %v5259_v2, %v321_v3  ;;  %v322_v11 = vunpack.c.h.bf16 %v267_v1  ;;  %v4252_v12 = vld [vmem:[%s5251_s8 + $0x18] sm:$0xff]  }
  0x1c   : > { %v379_v5 = vmul.f32 %v4218_v0, %v5259_v2  ;;  %v4223_v16 = vunpack.c.h.bf16 %v4252_v12  ;;  %v279_v63 = vld [vmem:[%s5251_s8 + $0x3c] sm:$0xff]  }
  0x1d   : > { %v442_v13 = vadd.f32 %v5267_v8, %v381_v4  ;;  %v383_v19 = vmul.f32 %v5259_v2, %v322_v11  ;;  %v333_v7 = vunpack.c.l.bf16 %v279_v63 }
  0x1f   : > { %669 = vperm.xlu1 %4998, %v561_v14   ;;  %664 = vperm.xlu0 %4997, %v560_v15   ;;  %v440_v14 = vadd.f32 %v5267_v8, %v379_v5  ;;  %v380_v15 = vmul.f32 %v4219_v6, %v5259_v2  ;;  %v278_v5 = vld [vmem:[%s5251_s8 + $0x38] sm:$0x1] }
  0x23   : > { %679 = vperm.xlu1 %4998, %v563_v17   ;;  %674 = vperm.xlu0 %4997, %v562_v18   ;;  %v443_v17 = vadd.f32 %v5267_v8, %v382_v9  ;;  %v384_v18 = vmul.f32 %v5259_v2, %v323_v10 }
  0x27   : > { %689 = vperm.xlu1 %4998, %v565_v21   ;;  %684 = vperm.xlu0 %4997, %v564_v22   ;;  %v4222_v21 = vunpack.c.l.bf16 %v4252_v12  ;;  %v273_v22 = vld [vmem:[%s5251_s8 + $0x24] sm:$0xff]  }
  0x2b   : > { %699 = vperm.xlu1 %4998, %v567_v23   ;;  %694 = vperm.xlu0 %4997, %v566_v24   ;;  %v496_v23 = vmax.f32 %v442_v13, 0.0  ;;  %v494_v24 = vmax.f32 %v440_v14, 0.0  ;;  %v332_v14 = vunpack.c.l.bf16 %v278_v5 }
  0x2f   : > { %709 = vperm.xlu1 %4998, %v569_v25   ;;  %704 = vperm.xlu0 %4997, %v568_v26   ;;  %v441_v25 = vadd.f32 %v5267_v8, %v380_v15  ;;  %v272_v26 = vld [vmem:[%s5251_s8 + $0x20] sm:$0x1]  ;;  %v281_v15 = vld [vmem:[%s5251_s8 + $0x44] sm:$0x1] }
  0x33   : > { %719 = vperm.xlu1 %4998, %v571_v27   ;;  %714 = vperm.xlu0 %4997, %v570_v28   ;;  %v386_v27 = vmul.f32 %v4223_v16, %v5259_v2  ;;  %v327_v28 = vunpack.c.l.bf16 %v273_v22 }
  0x37   : > { %729 = vperm.xlu1 %4998, %v573_v29   ;;  %724 = vperm.xlu0 %4997, %v572_v30  }
  0x3b   : > { %739 = vperm.xlu1 %4998, %v575_v33   ;;  %734 = vperm.xlu0 %4997, %v574_v34   ;;  %v497_v33 = vmax.f32 %v443_v17, 0.0  ;;  %v445_v34 = vadd.f32 %v5267_v8, %v384_v18 }
  0x3f   : > { %749 = vperm.xlu1 %4998, %v577_v35   ;;  %744 = vperm.xlu0 %4997, %v576_v36   ;;  %v444_v35 = vadd.f32 %v5267_v8, %v383_v19  ;;  %v385_v36 = vmul.f32 %v4222_v21, %v5259_v2 }
  0x43   : > { %759 = vperm.xlu1 %4998, %v579_v37   ;;  %754 = vperm.xlu0 %4997, %v578_v38  }
  0x47   : > { %769 = vperm.xlu1 %4998, %v581_v39   ;;  %764 = vperm.xlu0 %4997, %v580_v40   ;;  %v495_v39 = vmax.f32 %v441_v25, 0.0  ;;  %v326_v40 = vunpack.c.l.bf16 %v272_v26  ;;  %v335_v25 = vunpack.c.l.bf16 %v281_v15 }
  0x4b   : > { %779 = vperm.xlu1 %4998, %v583_v41   ;;  %774 = vperm.xlu0 %4997, %v582_v42   ;;  %v275_v41 = vld [vmem:[%s5251_s8 + $0x2c] sm:$0x1]  ;;  %v447_v42 = vadd.f32 %v5267_v8, %v386_v27 }
  0x4f   : > { %789 = vperm.xlu1 %4998, %v585_v43   ;;  %784 = vperm.xlu0 %4997, %v584_v44   ;;  %v388_v43 = vmul.f32 %v5259_v2, %v327_v28 }
  0x53   : > { %799 = vperm.xlu1 %4998, %v587_v45   ;;  %794 = vperm.xlu0 %4997, %v586_v46   ;;  %v499_v46 = vmax.f32 %v445_v34, 0.0 }
  0x57   : > { %809 = vperm.xlu1 %4998, %v589_v47   ;;  %804 = vperm.xlu0 %4997, %v588_v48   ;;  %v498_v47 = vmax.f32 %v444_v35, 0.0  ;;  %v446_v48 = vadd.f32 %v5267_v8, %v385_v36 }
  0x5b   : > { %819 = vperm.xlu1 %4998, %v591_v49   ;;  %814 = vperm.xlu0 %4997, %v590_v50   ;;  %v329_v49 = vunpack.c.l.bf16 %v275_v41 }
  0x5f   : > { %829 = vperm.xlu1 %4998, %v593_v51   ;;  %824 = vperm.xlu0 %4997, %v592_v52   ;;  %v387_v52 = vmul.f32 %v5259_v2, %v326_v40 }
  0x61   : > { %v448_v3 = vadd.f32 %v5267_v8, %v387_v52 }
  0x63   : > { %839 = vperm.xlu1 %4998, %v595_v53   ;;  %834 = vperm.xlu0 %4997, %v594_v54   ;;  %v328_v53 = vunpack.c.h.bf16 %v273_v22  ;;  %v4253_v54 = vld [vmem:[%s5251_s8 + $0x30] sm:$0xff]   ;;  %v502_v18 = vmax.f32 %v448_v3, 0.0 }
  0x64   : > { %v4227_v61 = vunpack.c.h.bf16 %v4253_v54  ;;  %v4226_v62 = vunpack.c.l.bf16 %v4253_v54 }
  0x65   : > { %v389_v4 = vmul.f32 %v5259_v2, %v328_v53 }
  0x66   : > { %v392_v12 = vmul.f32 %v4227_v61, %v5259_v2  ;;  %v391_v13 = vmul.f32 %v4226_v62, %v5259_v2 }
  0x67   : > { %849 = vperm.xlu1 %4998, %v597_v55   ;;  %844 = vperm.xlu0 %4997, %v596_v56   ;;  %v501_v55 = vmax.f32 %v447_v42, 0.0  ;;  %v449_v56 = vadd.f32 %v5267_v8, %v388_v43  ;;  %v450_v19 = vadd.f32 %v5267_v8, %v389_v4  ;;  %v396_v43 = vmul.f32 %v5259_v2, %v335_v25  ;;  %v4255_v25 = vld [vmem:[%s5251_s8 + $0x60] sm:$0xff]  }
  0x69   : > { %v503_v6 = vmax.f32 %v449_v56, 0.0  ;;  %v504_v36 = vmax.f32 %v450_v19, 0.0  ;;  %v284_v56 = vld [vmem:[%s5251_s8 + $0x50] sm:$0x1] }
  0x6b   : > { %859 = vperm.xlu1 %4998, %v599_v57   ;;  %854 = vperm.xlu0 %4997, %v598_v58  }
  0x6f   : > { %869 = vperm.xlu1 %4998, %v601_v59   ;;  %864 = vperm.xlu0 %4997, %v600_v60   ;;  %v500_v59 = vmax.f32 %v446_v48, 0.0  ;;  %v390_v60 = vmul.f32 %v5259_v2, %v329_v49 }
  0x71   : > { %v451_v11 = vadd.f32 %v5267_v8, %v390_v60 }
  0x73   : > { %v505_v28 = vmax.f32 %v451_v11, 0.0 }
  0x86   : > { %v615_v29 = vpop.permute.xlu1 %614  ;;  %v605_v30 = vpop.permute.xlu0 %604 }
  0x87   : > { %v874_v37 = vmul.f32 %v615_v29, %v496_v23  ;;  %v872_v38 = vmul.f32 %v605_v30, %v494_v24  ;;  %v394_v24 = vmul.f32 %v5259_v2, %v333_v7  ;;  %v453_v29 = vadd.f32 %v5267_v8, %v392_v12 }
  0x88   : > { %v452_v30 = vadd.f32 %v5267_v8, %v391_v13  ;;  %v2488_v13 = vsel %vm1129_vm0, %v5151_v32, 0 }
  0x89   : > { %930 = vst.msk [vmem:[#allocation2 + $0x10] sm:$0x3] %vm929_vm1, %v874_v37  ;;  %v334_v37 = vunpack.c.h.bf16 %v279_v63  ;;  %v455_v42 = vadd.f32 %v5267_v8, %v394_v24 }
  0x8a   : > { %927 = vst.msk [vmem:[#allocation2] sm:$0xff] %vm926_vm2, %v872_v38  ;;  %v620_v44 = vpop.permute.xlu1 %619  ;;  %v610_v45 = vpop.permute.xlu0 %609  ;;  %v4254_v38 = vld [vmem:[%s5251_s8 + $0x48] sm:$0xff]   ;;  %v506_v48 = vmax.f32 %v452_v30, 0.0 }
  0x8b   : > { %v875_v50 = vmul.f32 %v620_v44, %v497_v33  ;;  %v873_v51 = vmul.f32 %v610_v45, %v495_v39  ;;  %v393_v33 = vmul.f32 %v5259_v2, %v332_v14  ;;  %v1343_v44 = vsel %vm1129_vm0, %v5146_v31, 0 }
  0x8c   : > { %v395_v31 = vmul.f32 %v5259_v2, %v334_v37  ;;  %v4230_v54 = vunpack.c.l.bf16 %v4254_v38 }
  0x8d   : > { %931 = vst.msk [vmem:[#allocation2 + $0x18] sm:$0xff] %vm926_vm2, %v875_v50  ;;  %928 = vst.msk [vmem:[#allocation2 + $0x8] sm:$0xff] %vm926_vm2, %v873_v51  ;;  %v454_v49 = vadd.f32 %v5267_v8, %v393_v33  ;;  %v4231_v50 = vunpack.c.h.bf16 %v4254_v38  ;;  %v5325_v51 = vld [vmem:[%s6032_s1 + $0x8] sm:$0xf]  ;;  %v4235_v38 = vunpack.c.h.bf16 %v4255_v25 }
  0x8e   : > { %v630_v57 = vpop.permute.xlu1 %629  ;;  %v625_v58 = vpop.permute.xlu0 %624  ;;  %v456_v5 = vadd.f32 %v5267_v8, %v395_v31 }
  0x8f   : > { %v877_v0 = vmul.f32 %v630_v57, %v499_v46  ;;  %v876_v1 = vmul.f32 %v625_v58, %v498_v47  ;;  %v507_v47 = vmax.f32 %v453_v29, 0.0  ;;  %v509_v57 = vmax.f32 %v455_v42, 0.0 }
  0x90   : > { %v457_v58 = vadd.f32 %v5267_v8, %v396_v43  ;;  %v508_v61 = vmax.f32 %v454_v49, 0.0  ;;  %v398_v62 = vmul.f32 %v4231_v50, %v5259_v2  ;;  %v510_v32 = vmax.f32 %v456_v5, 0.0  ;;  %v291_v43 = vld [vmem:[%s5251_s8 + $0x6c] sm:$0xff]  }
  0x91   : > { %933 = vst.msk [vmem:[#allocation2 + $0x28] sm:$0x3] %vm929_vm1, %v877_v0  ;;  %v338_v0 = vunpack.c.l.bf16 %v284_v56  ;;  %v4234_v42 = vunpack.c.l.bf16 %v4255_v25  ;;  %v404_v50 = vmul.f32 %v4235_v38, %v5259_v2 }
  0x92   : > { %932 = vst.msk [vmem:[#allocation2 + $0x20] sm:$0xff] %vm926_vm2, %v876_v1  ;;  %v640_v9 = vpop.permute.xlu1 %639  ;;  %v635_v10 = vpop.permute.xlu0 %634  ;;  %v287_v1 = vld [vmem:[%s5251_s8 + $0x5c] sm:$0x1] }
  0x93   : > { %v879_v16 = vmul.f32 %v640_v9, %v501_v55  ;;  %v878_v17 = vmul.f32 %v635_v10, %v500_v59  ;;  %v285_v55 = vld [vmem:[%s5251_s8 + $0x54] sm:$0xff]   ;;  %v341_v11 = vunpack.c.l.bf16 %v287_v1  ;;  %v399_v19 = vmul.f32 %v5259_v2, %v338_v0 }
  0x94   : > { %v1031_v21 = vld [vmem:[#allocation2 + $0x1] sm:$0xff]  ;;  %v1032_v22 = vld [vmem:[#allocation2 + $0x9] sm:$0xff]  ;;  %v339_v63 = vunpack.c.l.bf16 %v285_v55  ;;  %v340_v12 = vunpack.c.h.bf16 %v285_v55  ;;  %v403_v56 = vmul.f32 %v4234_v42, %v5259_v2  ;;  %v465_v1 = vadd.f32 %v5267_v8, %v404_v50 }
  0x95   : > { %935 = vst.msk [vmem:[#allocation2 + $0x38] sm:$0xff] %vm926_vm2, %v879_v16  ;;  %934 = vst.msk [vmem:[#allocation2 + $0x30] sm:$0xff] %vm926_vm2, %v878_v17  ;;  %v1063_v23 = vpack.c.bf16 %v1032_v22, %v1031_v21  ;;  %v511_v16 = vmax.f32 %v457_v58, 0.0  ;;  %v459_v17 = vadd.f32 %v5267_v8, %v398_v62  ;;  %v5351_v21 = vld [vmem:[%s6032_s1 + $0x18] sm:$0xf]  ;;  %v402_v29 = vmul.f32 %v5259_v2, %v341_v11 }
  0x96   : > { %v650_v26 = vpop.permute.xlu1 %649  ;;  %v645_v27 = vpop.permute.xlu0 %644  ;;  %v401_v30 = vmul.f32 %v5259_v2, %v340_v12  ;;  %v460_v37 = vadd.f32 %v5267_v8, %v399_v19  ;;  %v346_v11 = vunpack.c.h.bf16 %v291_v43  ;;  %v519_v19 = vmax.f32 %v465_v1, 0.0 }
  0x97   : > { %v881_v34 = vmul.f32 %v650_v26, %v503_v6  ;;  %v880_v35 = vmul.f32 %v645_v27, %v502_v18  ;;  %4415 = vmatprep.mubr.msk.bf16.mxu1 %vm926_vm2, %v1063_v23  ;;  %v397_v6 = vmul.f32 %v4230_v54, %v5259_v2  ;;  %v400_v18 = vmul.f32 %v5259_v2, %v339_v63 }
  0x98   : > { %v514_v55 = vmax.f32 %v460_v37, 0.0 }
  0x99   : > { %v1033_v39 = vld [vmem:[#allocation2 + $0x19] sm:$0xff]  ;;  %v1034_v40 = vld [vmem:[#allocation2 + $0x21] sm:$0xff]  ;;  %937 = vst.msk [vmem:[#allocation2 + $0x48] sm:$0xff] %vm926_vm2, %v881_v34  ;;  %v458_v24 = vadd.f32 %v5267_v8, %v397_v6 }
  0x9a   : > { %936 = vst.msk [vmem:[#allocation2 + $0x40] sm:$0x3] %vm929_vm1, %v880_v35  ;;  %v1064_v41 = vpack.c.bf16 %v1034_v40, %v1033_v39  ;;  %v660_v45 = vpop.permute.xlu1 %659  ;;  %v655_v46 = vpop.permute.xlu0 %654  ;;  %v513_v35 = vmax.f32 %v459_v17, 0.0  ;;  %v4256_v6 = vld [vmem:[%s5251_s8 + $0x78] sm:$0xff]  }
  0x9b   : > { %v883_v52 = vmul.f32 %v660_v45, %v505_v28  ;;  %v882_v53 = vmul.f32 %v655_v46, %v504_v36  ;;  %v461_v36 = vadd.f32 %v5267_v8, %v400_v18  ;;  %v463_v45 = vadd.f32 %v5267_v8, %v402_v29  ;;  %v296_v29 = vld [vmem:[%s5251_s8 + $0x80] sm:$0x1] }
  0x9c   : > { %4416 = vmatmul.mubr.msk.bf16.vlgmr.msra.gmra.mrb[0].mxu1 %vm926_vm2, %v1064_v41  ;;  %4551 = vmatprep.mubr.msk.bf16.mxu0 %vm926_vm2, %v1064_v41  ;;  %v1035_v7 = vld [vmem:[#allocation2 + $0x31] sm:$0xff]  ;;  %v512_v41 = vmax.f32 %v458_v24, 0.0  ;;  %v462_v46 = vadd.f32 %v5267_v8, %v401_v30 }
  0x9d   : > { %4448 = vmatpush3.bf16.msra.mxu1 %v1343_v44  ;;  %939 = vst.msk [vmem:[#allocation2 + $0x58] sm:$0x3] %vm929_vm1, %v883_v52  ;;  %v290_v44 = vld [vmem:[%s5251_s8 + $0x68] sm:$0x1]  ;;  %v515_v49 = vmax.f32 %v461_v36, 0.0  ;;  %v345_v52 = vunpack.c.l.bf16 %v291_v43 }
  0x9e   : > { %938 = vst.msk [vmem:[#allocation2 + $0x50] sm:$0xff] %vm926_vm2, %v882_v53  ;;  %4979 = vmatprep.subr.msk.bf16.mxu1 %vm1129_vm0, %v5325_v51  ;;  %v670_v59 = vpop.permute.xlu1 %669  ;;  %v665_v60 = vpop.permute.xlu0 %664  ;;  %v344_v53 = vunpack.c.l.bf16 %v290_v44  ;;  %v516_v62 = vmax.f32 %v462_v46, 0.0  ;;  %v299_v44 = vld [vmem:[%s5251_s8 + $0x8c] sm:$0x1] }
  0x9f   : > { %v885_v3 = vmul.f32 %v670_v59, %v507_v47  ;;  %v884_v4 = vmul.f32 %v665_v60, %v506_v48 }
  0xa1   : > { %v1036_v9 = vld [vmem:[#allocation2 + $0x39] sm:$0xff]  ;;  %941 = vst.msk [vmem:[#allocation2 + $0x68] sm:$0xff] %vm926_vm2, %v885_v3  ;;  %940 = vst.msk [vmem:[#allocation2 + $0x60] sm:$0xff] %vm926_vm2, %v884_v4  ;;  %v406_v3 = vmul.f32 %v5259_v2, %v345_v52  ;;  %v405_v4 = vmul.f32 %v5259_v2, %v344_v53 }
  0xa2   : > { %v1065_v10 = vpack.c.bf16 %v1036_v9, %v1035_v7  ;;  %v680_v14 = vpop.permute.xlu1 %679  ;;  %v675_v15 = vpop.permute.xlu0 %674 }
  0xa3   : > { %v887_v22 = vmul.f32 %v680_v14, %v509_v57  ;;  %v886_v23 = vmul.f32 %v675_v15, %v508_v61  ;;  %v293_v57 = vld [vmem:[%s5251_s8 + $0x74] sm:$0x1]  ;;  %v517_v61 = vmax.f32 %v463_v45, 0.0  ;;  %v4239_v15 = vunpack.c.h.bf16 %v4256_v6 }
  0xa4   : > { %4419 = vmatprep.mubr.msk.bf16.mxu1 %vm926_vm2, %v1065_v10  ;;  %4552 = vmatmul.mubr.msk.bf16.vlgmr.msra.gmra.mrb[0].mxu0 %vm926_vm2, %v1065_v10  ;;  %v347_v5 = vunpack.c.l.bf16 %v293_v57  ;;  %v464_v10 = vadd.f32 %v5267_v8, %v403_v56 }
  0xa5   : > { %v1037_v26 = vld [vmem:[#allocation2 + $0x49] sm:$0xff]  ;;  %v1038_v27 = vld [vmem:[#allocation2 + $0x51] sm:$0xff]  ;;  %4584 = vmatpush3.bf16.msra.mxu0 %v2488_v13  ;;  %943 = vst.msk [vmem:[#allocation2 + $0x78] sm:$0xff] %vm926_vm2, %v887_v22  ;;  %v467_v22 = vadd.f32 %v5267_v8, %v406_v3  ;;  %v410_v30 = vmul.f32 %v4239_v15, %v5259_v2  ;;  %v5416_v3 = vld [vmem:[%s5251_s8 + $0x9c] sm:$0xff]  }
  0xa6   : > { %942 = vst.msk [vmem:[#allocation2 + $0x70] sm:$0x3] %vm929_vm1, %v886_v23  ;;  %v1066_v28 = vpack.c.bf16 %v1038_v27, %v1037_v26  ;;  %4984 = vmatprep.subr.msk.bf16.mxu0 %vm1129_vm0, %v5351_v21  ;;  %v690_v33 = vpop.permute.xlu1 %689  ;;  %v685_v34 = vpop.permute.xlu0 %684  ;;  %v466_v23 = vadd.f32 %v5267_v8, %v405_v4  ;;  %v518_v26 = vmax.f32 %v464_v10, 0.0  ;;  %v407_v27 = vmul.f32 %v5259_v2, %v346_v11  ;;  %v302_v11 = vld [vmem:[%s5251_s8 + $0x98] sm:$0x1] }
  0xa7   : > { %v889_v39 = vmul.f32 %v690_v33, %v511_v16  ;;  %v888_v40 = vmul.f32 %v685_v34, %v510_v32  ;;  %v4238_v16 = vunpack.c.l.bf16 %v4256_v6  ;;  %v408_v32 = vmul.f32 %v5259_v2, %v347_v5 }
  0xa8   : > { %4420 = vmatmul.mubr.msk.bf16.gmra.mrb[4].mxu1 %vm926_vm2, %v1066_v28  ;;  %4555 = vmatprep.mubr.msk.bf16.mxu0 %vm926_vm2, %v1066_v28  ;;  %v1039_v58 = vld [vmem:[#allocation2 + $0x61] sm:$0xff]  ;;  %v521_v36 = vmax.f32 %v467_v22, 0.0  ;;  %v520_v42 = vmax.f32 %v466_v23, 0.0  ;;  %v468_v43 = vadd.f32 %v5267_v8, %v407_v27 }
  0xa9   : > { %945 = vst.msk [vmem:[#allocation2 + $0x88] sm:$0x3] %vm929_vm1, %v889_v39  ;;  %v297_v28 = vld [vmem:[%s5251_s8 + $0x84] sm:$0xff]   ;;  %v409_v33 = vmul.f32 %v4238_v16, %v5259_v2  ;;  %v469_v37 = vadd.f32 %v5267_v8, %v408_v32  ;;  %v350_v39 = vunpack.c.l.bf16 %v296_v29  ;;  %v357_v16 = vunpack.c.l.bf16 %v5416_v3 }
  0xaa   : > { %944 = vst.msk [vmem:[#allocation2 + $0x80] sm:$0xff] %vm926_vm2, %v888_v40  ;;  %v700_v47 = vpop.permute.xlu1 %699  ;;  %v695_v48 = vpop.permute.xlu0 %694  ;;  %v351_v38 = vunpack.c.l.bf16 %v297_v28  ;;  %v2390_v29 = vld [vmem:[#allocation2 + $0x22] sm:$0xff] }
  0xab   : > { %v891_v31 = vmul.f32 %v700_v47, %v513_v35  ;;  %v890_v54 = vmul.f32 %v695_v48, %v512_v41  ;;  %v471_v48 = vadd.f32 %v5267_v8, %v410_v30  ;;  %v523_v53 = vmax.f32 %v469_v37, 0.0 }
  0xad   : > { %v1040_v59 = vld [vmem:[#allocation2 + $0x69] sm:$0xff]  ;;  %947 = vst.msk [vmem:[#allocation2 + $0x98] sm:$0xff] %vm926_vm2, %v891_v31  ;;  %946 = vst.msk [vmem:[#allocation2 + $0x90] sm:$0xff] %vm926_vm2, %v890_v54  ;;  %v412_v31 = vmul.f32 %v5259_v2, %v351_v38  ;;  %v411_v54 = vmul.f32 %v5259_v2, %v350_v39 }
  0xae   : > { %v1067_v60 = vpack.c.bf16 %v1040_v59, %v1039_v58  ;;  %v710_v63 = vpop.permute.xlu1 %709  ;;  %v705_v0 = vpop.permute.xlu0 %704  ;;  %v522_v58 = vmax.f32 %v468_v43, 0.0  ;;  %v352_v59 = vunpack.c.h.bf16 %v297_v28  ;;  %v2389_v28 = vld [vmem:[#allocation2 + $0x1a] sm:$0xff] }
  0xaf   : > { %v893_v7 = vmul.f32 %v710_v63, %v515_v49  ;;  %v892_v9 = vmul.f32 %v705_v0, %v514_v55  ;;  %v470_v49 = vadd.f32 %v5267_v8, %v409_v33  ;;  %v353_v55 = vunpack.c.l.bf16 %v299_v44 }
  0xb0   : > { %4423 = vmatprep.mubr.msk.bf16.mxu1 %vm926_vm2, %v1067_v60  ;;  %4556 = vmatmul.mubr.msk.bf16.gmra.mrb[4].mxu0 %vm926_vm2, %v1067_v60  ;;  %v4257_v60 = vld [vmem:[%s5251_s8 + $0x90] sm:$0xff]   ;;  %v525_v0 = vmax.f32 %v471_v48, 0.0  ;;  %v473_v6 = vadd.f32 %v5267_v8, %v412_v31 }
  0xb1   : > { %v1041_v12 = vld [vmem:[#allocation2 + $0x79] sm:$0xff]  ;;  %v1042_v13 = vld [vmem:[#allocation2 + $0x81] sm:$0xff]  ;;  %949 = vst.msk [vmem:[#allocation2 + $0xa8] sm:$0xff] %vm926_vm2, %v893_v7  ;;  %v524_v1 = vmax.f32 %v470_v49, 0.0  ;;  %v472_v7 = vadd.f32 %v5267_v8, %v411_v54  ;;  %v4243_v10 = vunpack.c.h.bf16 %v4257_v60  ;;  %v4242_v15 = vunpack.c.l.bf16 %v4257_v60 }
  0xb2   : > { %948 = vst.msk [vmem:[#allocation2 + $0xa0] sm:$0x3] %vm929_vm1, %v892_v9  ;;  %v1068_v14 = vpack.c.bf16 %v1042_v13, %v1041_v12  ;;  %v720_v17 = vpop.permute.xlu1 %719  ;;  %v715_v18 = vpop.permute.xlu0 %714  ;;  %v414_v9 = vmul.f32 %v5259_v2, %v353_v55  ;;  %v527_v22 = vmax.f32 %v473_v6, 0.0  ;;  %v2392_v60 = vld [vmem:[#allocation2 + $0x3a] sm:$0xff] }
  0xb3   : > { %v895_v24 = vmul.f32 %v720_v17, %v517_v61  ;;  %v894_v25 = vmul.f32 %v715_v18, %v516_v62  ;;  %v356_v17 = vunpack.c.l.bf16 %v302_v11  ;;  %v526_v23 = vmax.f32 %v472_v7, 0.0  ;;  %v309_v7 = vld [vmem:[%s5251_s8 + $0xb4] sm:$0xff]   ;;  %v308_v11 = vld [vmem:[%s5251_s8 + $0xb0] sm:$0x1] }
  0xb4   : > { %4424 = vmatmul.mubr.msk.bf16.gmra.mrb[8].mxu1 %vm926_vm2, %v1068_v14  ;;  %4559 = vmatprep.mubr.msk.bf16.mxu0 %vm926_vm2, %v1068_v14  ;;  %v1043_v45 = vld [vmem:[#allocation2 + $0x91] sm:$0xff]  ;;  %v413_v14 = vmul.f32 %v5259_v2, %v352_v59  ;;  %v475_v32 = vadd.f32 %v5267_v8, %v414_v9  ;;  %v415_v33 = vmul.f32 %v4242_v15, %v5259_v2  ;;  %v2783_v15 = vsel %vm1129_vm0, %v5351_v21, 0 }
  0xb5   : > { %951 = vst.msk [vmem:[#allocation2 + $0xb8] sm:$0x3] %vm929_vm1, %v895_v24  ;;  %v416_v24 = vmul.f32 %v4243_v10, %v5259_v2  ;;  %v417_v38 = vmul.f32 %v5259_v2, %v356_v17  ;;  %v2391_v9 = vld [vmem:[#allocation2 + $0x32] sm:$0xff] }
  0xb6   : > { %950 = vst.msk [vmem:[#allocation2 + $0xb0] sm:$0xff] %vm926_vm2, %v894_v25  ;;  %v730_v34 = vpop.permute.xlu1 %729  ;;  %v725_v35 = vpop.permute.xlu0 %724  ;;  %v305_v25 = vld [vmem:[%s5251_s8 + $0xa4] sm:$0x1]  ;;  %v474_v30 = vadd.f32 %v5267_v8, %v413_v14  ;;  %v529_v43 = vmax.f32 %v475_v32, 0.0  ;;  %v476_v49 = vadd.f32 %v5267_v8, %v415_v33  ;;  %v363_v32 = vunpack.c.l.bf16 %v309_v7 }
  0xb7   : > { %v897_v40 = vmul.f32 %v730_v34, %v519_v19  ;;  %v896_v41 = vmul.f32 %v725_v35, %v518_v26  ;;  %v359_v39 = vunpack.c.l.bf16 %v305_v25  ;;  %v477_v44 = vadd.f32 %v5267_v8, %v416_v24  ;;  %v5480_v24 = vld [vmem:[%s6032_s1 + $0x1c] sm:$0xf] }
  0xb8   : > { %v528_v48 = vmax.f32 %v474_v30, 0.0  ;;  %v478_v55 = vadd.f32 %v5267_v8, %v417_v38 }
  0xb9   : > { %v1044_v46 = vld [vmem:[#allocation2 + $0x99] sm:$0xff]  ;;  %953 = vst.msk [vmem:[#allocation2 + $0xc8] sm:$0xff] %vm926_vm2, %v897_v40  ;;  %952 = vst.msk [vmem:[#allocation2 + $0xc0] sm:$0xff] %vm926_vm2, %v896_v41  ;;  %v531_v59 = vmax.f32 %v477_v44, 0.0 }
  0xba   : > { %v1069_v47 = vpack.c.bf16 %v1044_v46, %v1043_v45  ;;  %v740_v50 = vpop.permute.xlu1 %739  ;;  %v735_v52 = vpop.permute.xlu0 %734  ;;  %v358_v45 = vunpack.c.h.bf16 %v5416_v3  ;;  %v530_v3 = vmax.f32 %v476_v49, 0.0  ;;  %v4259_v44 = vld [vmem:[%s5251_s8 + $0xc0] sm:$0xff]  }
  0xbb   : > { %v899_v56 = vmul.f32 %v740_v50, %v521_v36  ;;  %v898_v57 = vmul.f32 %v735_v52, %v520_v42  ;;  %v418_v36 = vmul.f32 %v5259_v2, %v357_v16  ;;  %v5441_v42 = vpack.c.bf16 %v2390_v29, %v2389_v28  ;;  %v4258_v50 = vld [vmem:[%s5251_s8 + $0xa8] sm:$0xff]   ;;  %v311_v16 = vld [vmem:[%s5251_s8 + $0xbc] sm:$0x1] }
  0xbc   : > { %4427 = vmatprep.mubr.msk.bf16.mxu1 %vm926_vm2, %v1069_v47  ;;  %4560 = vmatmul.mubr.msk.bf16.gmra.mrb[8].mxu0 %vm926_vm2, %v1069_v47  ;;  %v4246_v6 = vunpack.c.l.bf16 %v4258_v50  ;;  %v365_v30 = vunpack.c.l.bf16 %v311_v16 }
  0xbd   : > { %v1045_v61 = vld [vmem:[#allocation2 + $0xa9] sm:$0xff]  ;;  %v1046_v62 = vld [vmem:[#allocation2 + $0xb1] sm:$0xff]  ;;  %955 = vst.msk [vmem:[#allocation2 + $0xd8] sm:$0xff] %vm926_vm2, %v899_v56  ;;  %v479_v31 = vadd.f32 %v5267_v8, %v418_v36  ;;  %v420_v56 = vmul.f32 %v5259_v2, %v359_v39 }
  0xbe   : > { %954 = vst.msk [vmem:[#allocation2 + $0xd0] sm:$0x3] %vm929_vm1, %v898_v57  ;;  %v5413_v63 = vpack.c.bf16 %v1046_v62, %v1045_v61  ;;  %v750_v4 = vpop.permute.xlu1 %749  ;;  %v745_v5 = vpop.permute.xlu0 %744  ;;  %v419_v61 = vmul.f32 %v5259_v2, %v358_v45  ;;  %v4247_v62 = vunpack.c.h.bf16 %v4258_v50  ;;  %v421_v21 = vmul.f32 %v4246_v6, %v5259_v2 }
  0xbf   : > { %v901_v12 = vmul.f32 %v750_v4, %v523_v53  ;;  %v900_v13 = vmul.f32 %v745_v5, %v522_v58  ;;  %v2393_v4 = vld [vmem:[#allocation2 + $0x4a] sm:$0xff]  ;;  %v2394_v5 = vld [vmem:[#allocation2 + $0x52] sm:$0xff]  ;;  %v533_v10 = vmax.f32 %v479_v31, 0.0  ;;  %v481_v14 = vadd.f32 %v5267_v8, %v420_v56  ;;  %v2395_v31 = vld [vmem:[#allocation2 + $0x62] sm:$0xff] }
  0xc0   : > { %4428 = vmatmul.mubr.msk.bf16.gmra.mrb[12].mxu1 %vm926_vm2, %v5413_v63  ;;  %4563 = vmatprep.mubr.msk.bf16.mxu0 %vm926_vm2, %v5413_v63  ;;  %v1047_v34 = vld [vmem:[#allocation2 + $0xc1] sm:$0xff]  ;;  %v482_v49 = vadd.f32 %v5267_v8, %v421_v21 }
  0xc1   : > { %957 = vst.msk [vmem:[#allocation2 + $0xe8] sm:$0x3] %vm929_vm1, %v901_v12  ;;  %v5467_v12 = vpack.c.bf16 %v2392_v60, %v2391_v9  ;;  %v535_v38 = vmax.f32 %v481_v14, 0.0  ;;  %v5517_v9 = vld [vmem:[%s5251_s8 + $0xcc] sm:$0xff]  }
  0xc2   : > { %956 = vst.msk [vmem:[#allocation2 + $0xe0] sm:$0xff] %vm926_vm2, %v900_v13  ;;  %v760_v18 = vpop.permute.xlu1 %759  ;;  %v755_v19 = vpop.permute.xlu0 %754  ;;  %v532_v13 = vmax.f32 %v478_v55, 0.0  ;;  %v426_v55 = vmul.f32 %v5259_v2, %v365_v30  ;;  %v536_v6 = vmax.f32 %v482_v49, 0.0 }
  0xc3   : > { %v903_v26 = vmul.f32 %v760_v18, %v525_v0  ;;  %v902_v27 = vmul.f32 %v755_v19, %v524_v1  ;;  %v5473_v19 = vpack.c.bf16 %v2394_v5, %v2393_v4 }
  0xc5   : > { %v1048_v35 = vld [vmem:[#allocation2 + $0xc9] sm:$0xff]  ;;  %959 = vst.msk [vmem:[#allocation2 + $0xf8] sm:$0xff] %vm926_vm2, %v903_v26  ;;  %958 = vst.msk [vmem:[#allocation2 + $0xf0] sm:$0xff] %vm926_vm2, %v902_v27  ;;  %v362_v27 = vunpack.c.l.bf16 %v308_v11  ;;  %v487_v11 = vadd.f32 %v5267_v8, %v426_v55 }
  0xc6   : > { %v5438_v37 = vpack.c.bf16 %v1048_v35, %v1047_v34  ;;  %v770_v40 = vpop.permute.xlu1 %769  ;;  %v765_v41 = vpop.permute.xlu0 %764  ;;  %v364_v34 = vunpack.c.h.bf16 %v309_v7 }
  0xc7   : > { %v905_v46 = vmul.f32 %v770_v40, %v527_v22  ;;  %v904_v47 = vmul.f32 %v765_v41, %v526_v23  ;;  %v480_v22 = vadd.f32 %v5267_v8, %v419_v61  ;;  %v422_v23 = vmul.f32 %v4247_v62, %v5259_v2  ;;  %v2396_v40 = vld [vmem:[#allocation2 + $0x6a] sm:$0xff] }
  0xc8   : > { %4431 = vmatprep.mubr.msk.bf16.mxu1 %vm926_vm2, %v5438_v37  ;;  %4564 = vmatmul.mubr.msk.bf16.gmra.mrb[12].mxu0 %vm926_vm2, %v5438_v37  ;;  %v423_v50 = vmul.f32 %v5259_v2, %v362_v27  ;;  %v2401_v27 = vld [vmem:[#allocation2 + $0xaa] sm:$0xff] }
  0xc9   : > { %4585 = vmatprep.mubr.msk.bf16.mxu0 %vm926_vm2, %v5441_v42  ;;  %v1049_v52 = vld [vmem:[#allocation2 + $0xd9] sm:$0xff]  ;;  %v1050_v53 = vld [vmem:[#allocation2 + $0xe1] sm:$0xff]  ;;  %961 = vst.msk [vmem:[#allocation2 + $0x108] sm:$0xff] %vm926_vm2, %v905_v46  ;;  %v534_v39 = vmax.f32 %v480_v22, 0.0  ;;  %v483_v41 = vadd.f32 %v5267_v8, %v422_v23  ;;  %v369_v22 = vunpack.c.l.bf16 %v5517_v9 }
  0xca   : > { %960 = vst.msk [vmem:[#allocation2 + $0x100] sm:$0x3] %vm929_vm1, %v904_v47  ;;  %v5456_v54 = vpack.c.bf16 %v1050_v53, %v1049_v52  ;;  %v780_v57 = vpop.permute.xlu1 %779  ;;  %v775_v58 = vpop.permute.xlu0 %774  ;;  %v2397_v47 = vld [vmem:[#allocation2 + $0x7a] sm:$0xff]  ;;  %v484_v7 = vadd.f32 %v5267_v8, %v423_v50 }
  0xcb   : > { %v907_v0 = vmul.f32 %v780_v57, %v529_v43  ;;  %v906_v1 = vmul.f32 %v775_v58, %v528_v48  ;;  %v424_v43 = vmul.f32 %v5259_v2, %v363_v32  ;;  %v2398_v48 = vld [vmem:[#allocation2 + $0x82] sm:$0xff]  ;;  %v5505_v57 = vpack.c.bf16 %v2396_v40, %v2395_v31 }
  0xcc   : > { %4432 = vmatmul.mubr.msk.bf16.gmra.mrb[16].mxu1 %vm926_vm2, %v5456_v54  ;;  %v1051_v28 = vld [vmem:[#allocation2 + $0xf1] sm:$0xff]  ;;  %v425_v58 = vmul.f32 %v5259_v2, %v364_v34  ;;  %v5508_v62 = vpack.c.bf16 %v2398_v48, %v2397_v47  ;;  %v538_v21 = vmax.f32 %v484_v7, 0.0  ;;  %v430_v47 = vmul.f32 %v5259_v2, %v369_v22  ;;  %v2405_v7 = vld [vmem:[#allocation2 + $0xda] sm:$0xff] }
  0xcd   : > { %963 = vst.msk [vmem:[#allocation2 + $0x118] sm:$0x3] %vm929_vm1, %v907_v0  ;;  %v537_v0 = vmax.f32 %v483_v41, 0.0 }
  0xce   : > { %962 = vst.msk [vmem:[#allocation2 + $0x110] sm:$0xff] %vm926_vm2, %v906_v1  ;;  %v790_v17 = vpop.permute.xlu1 %789  ;;  %v785_v18 = vpop.permute.xlu0 %784  ;;  %v485_v1 = vadd.f32 %v5267_v8, %v424_v43 }
  0xcf   : > { %v909_v25 = vmul.f32 %v790_v17, %v531_v59  ;;  %v908_v26 = vmul.f32 %v785_v18, %v530_v3  ;;  %v4251_v59 = vunpack.c.h.bf16 %v4259_v44  ;;  %v4250_v3 = vunpack.c.l.bf16 %v4259_v44  ;;  %v2400_v17 = vld [vmem:[#allocation2 + $0x9a] sm:$0xff] }
  0xd0   : > { %4586 = vmatmul.mubr.msk.bf16.vlgmr.msra.gmra.mrb[0].mxu0 %vm926_vm2, %v5467_v12 }
  0xd1   : > { %4589 = vmatprep.mubr.msk.bf16.mxu0 %vm926_vm2, %v5473_v19  ;;  %v1052_v29 = vld [vmem:[#allocation2 + $0xf9] sm:$0xff]  ;;  %4618 = vmatpush3.bf16.msra.mxu0 %v2783_v15  ;;  %965 = vst.msk [vmem:[#allocation2 + $0x128] sm:$0xff] %vm926_vm2, %v909_v25  ;;  %964 = vst.msk [vmem:[#allocation2 + $0x120] sm:$0xff] %vm926_vm2, %v908_v26  ;;  %v428_v14 = vmul.f32 %v4251_v59, %v5259_v2  ;;  %v427_v18 = vmul.f32 %v4250_v3, %v5259_v2  ;;  %v539_v26 = vmax.f32 %v485_v1, 0.0  ;;  %v2404_v1 = vld [vmem:[#allocation2 + $0xca] sm:$0xff] }
  0xd2   : > { %v5489_v33 = vpack.c.bf16 %v1052_v29, %v1051_v28  ;;  %4985 = vmatprep.subr.msk.bf16.mxu0 %vm1129_vm0, %v5480_v24  ;;  %v800_v35 = vpop.permute.xlu1 %799  ;;  %v795_v36 = vpop.permute.xlu0 %794  ;;  %v2402_v28 = vld [vmem:[#allocation2 + $0xb2] sm:$0xff]  ;;  %v491_v3 = vadd.f32 %v5267_v8, %v430_v47 }
  0xd3   : > { %v911_v45 = vmul.f32 %v800_v35, %v533_v10  ;;  %v910_v46 = vmul.f32 %v795_v36, %v532_v13  ;;  %v314_v10 = vld [vmem:[%s5251_s8 + $0xc8] sm:$0x1]  ;;  %v486_v13 = vadd.f32 %v5267_v8, %v425_v58  ;;  %v317_v29 = vld [vmem:[%s5251_s8 + $0xd4] sm:$0x1]  ;;  %v541_v36 = vmax.f32 %v487_v11, 0.0 }
  0xd4   : > { %4435 = vmatprep.mubr.msk.bf16.mxu1 %vm926_vm2, %v5489_v33  ;;  %v368_v23 = vunpack.c.l.bf16 %v314_v10  ;;  %v2399_v35 = vld [vmem:[#allocation2 + $0x92] sm:$0xff]  ;;  %v489_v41 = vadd.f32 %v5267_v8, %v428_v14 }
  0xd5   : > { %v1053_v52 = vld [vmem:[#allocation2 + $0x109] sm:$0xff]  ;;  %v1054_v53 = vld [vmem:[#allocation2 + $0x111] sm:$0xff]  ;;  %967 = vst.msk [vmem:[#allocation2 + $0x138] sm:$0xff] %vm926_vm2, %v911_v45  ;;  %v540_v40 = vmax.f32 %v486_v13, 0.0  ;;  %v5537_v45 = vpack.c.bf16 %v2402_v28, %v2401_v27 }
  0xd6   : > { %966 = vst.msk [vmem:[#allocation2 + $0x130] sm:$0x3] %vm929_vm1, %v910_v46  ;;  %v5503_v56 = vpack.c.bf16 %v1054_v53, %v1053_v52  ;;  %v810_v60 = vpop.permute.xlu1 %809  ;;  %v805_v61 = vpop.permute.xlu0 %804  ;;  %v488_v46 = vadd.f32 %v5267_v8, %v427_v18  ;;  %v429_v48 = vmul.f32 %v5259_v2, %v368_v23  ;;  %v371_v52 = vunpack.c.l.bf16 %v317_v29  ;;  %v2403_v13 = vld [vmem:[#allocation2 + $0xc2] sm:$0xff]  ;;  %v2407_v47 = vld [vmem:[#allocation2 + $0xf2] sm:$0xff] }
  0xd7   : > { %v913_v4 = vmul.f32 %v810_v60, %v535_v38  ;;  %v912_v5 = vmul.f32 %v805_v61, %v534_v39  ;;  %v5534_v39 = vpack.c.bf16 %v2400_v17, %v2399_v35  ;;  %v370_v53 = vunpack.c.h.bf16 %v5517_v9  ;;  %v2406_v9 = vld [vmem:[#allocation2 + $0xe2] sm:$0xff] }
  0xd8   : > { %4436 = vmatmul.mubr.msk.bf16.gmra.mrb[20].mxu1 %vm926_vm2, %v5503_v56  ;;  %4590 = vmatmul.mubr.msk.bf16.gmra.mrb[4].mxu0 %vm926_vm2, %v5505_v57  ;;  %v1055_v30 = vld [vmem:[#allocation2 + $0x121] sm:$0xff]  ;;  %v543_v61 = vmax.f32 %v489_v41, 0.0  ;;  %v432_v10 = vmul.f32 %v5259_v2, %v371_v52  ;;  %v5561_v14 = vpack.c.bf16 %v2404_v1, %v2403_v13  ;;  %v5563_v17 = vpack.c.bf16 %v2406_v9, %v2405_v7  ;;  %v2409_v41 = vld [vmem:[#allocation2 + $0x10a] sm:$0xff]  ;;  %v984_v1 = vld [vmem:[#allocation2 + $0x18] sm:$0xff] }
  0xd9   : > { %4593 = vmatprep.mubr.msk.bf16.mxu0 %vm926_vm2, %v5508_v62  ;;  %969 = vst.msk [vmem:[#allocation2 + $0x148] sm:$0x3] %vm929_vm1, %v913_v4  ;;  %v490_v4 = vadd.f32 %v5267_v8, %v429_v48  ;;  %v431_v11 = vmul.f32 %v5259_v2, %v370_v53  ;;  %v545_v18 = vmax.f32 %v491_v3, 0.0  ;;  %v986_v3 = vld [vmem:[#allocation2 + $0x30] sm:$0xff] }
  0xda   : > { %968 = vst.msk [vmem:[#allocation2 + $0x140] sm:$0xff] %vm926_vm2, %v912_v5  ;;  %v820_v15 = vpop.permute.xlu1 %819  ;;  %v815_v16 = vpop.permute.xlu0 %814  ;;  %v493_v2 = vadd.f32 %v5267_v8, %v432_v10  ;;  %v1605_v10 = vsel %vm1129_vm0, %v5325_v51, 0  ;;  %v989_v51 = vld [vmem:[#allocation2 + $0x50] sm:$0xff] }
  0xdb   : > { %v915_v32 = vmul.f32 %v820_v15, %v537_v0  ;;  %v914_v25 = vmul.f32 %v815_v16, %v536_v6  ;;  %v542_v0 = vmax.f32 %v488_v46, 0.0  ;;  %v544_v22 = vmax.f32 %v490_v4, 0.0  ;;  %v987_v4 = vld [vmem:[#allocation2 + $0x38] sm:$0xff] }
  0xdc   : > { %v5600_v13 = vpack.c.bf16 %v987_v4, %v986_v3  ;;  %v1000_v3 = vld [vmem:[#allocation2 + $0xd8] sm:$0xff] }
  0xdd   : > { %v1056_v34 = vld [vmem:[#allocation2 + $0x129] sm:$0xff]  ;;  %971 = vst.msk [vmem:[#allocation2 + $0x158] sm:$0xff] %vm926_vm2, %v915_v32  ;;  %970 = vst.msk [vmem:[#allocation2 + $0x150] sm:$0xff] %vm926_vm2, %v914_v25  ;;  %v492_v25 = vadd.f32 %v5267_v8, %v431_v11  ;;  %v547_v8 = vmax.f32 %v493_v2, 0.0 }
  0xde   : > { %v5532_v38 = vpack.c.bf16 %v1056_v34, %v1055_v30  ;;  %v830_v43 = vpop.permute.xlu1 %829  ;;  %v825_v44 = vpop.permute.xlu0 %824  ;;  %v2408_v30 = vld [vmem:[#allocation2 + $0xfa] sm:$0xff] }
  0xdf   : > { %v917_v49 = vmul.f32 %v830_v43, %v539_v26  ;;  %v916_v50 = vmul.f32 %v825_v44, %v538_v21  ;;  %v2410_v43 = vld [vmem:[#allocation2 + $0x112] sm:$0xff] }
  0xe0   : > { %4439 = vmatprep.mubr.msk.bf16.mxu1 %vm926_vm2, %v5532_v38  ;;  %4594 = vmatmul.mubr.msk.bf16.gmra.mrb[8].mxu0 %vm926_vm2, %v5534_v39 }
  0xe1   : > { %4597 = vmatprep.mubr.msk.bf16.mxu0 %vm926_vm2, %v5537_v45  ;;  %v1057_v31 = vld [vmem:[#allocation2 + $0x139] sm:$0xff]  ;;  %v1058_v55 = vld [vmem:[#allocation2 + $0x141] sm:$0xff]  ;;  %973 = vst.msk [vmem:[#allocation2 + $0x168] sm:$0xff] %vm926_vm2, %v917_v49  ;;  %v5581_v49 = vpack.c.bf16 %v2408_v30, %v2407_v47  ;;  %v997_v47 = vld [vmem:[#allocation2 + $0xb0] sm:$0xff] }
  0xe2   : > { %972 = vst.msk [vmem:[#allocation2 + $0x160] sm:$0x3] %vm929_vm1, %v916_v50  ;;  %v5551_v58 = vpack.c.bf16 %v1058_v55, %v1057_v31  ;;  %v840_v59 = vpop.permute.xlu1 %839  ;;  %v835_v60 = vpop.permute.xlu0 %834  ;;  %v982_v50 = vld [vmem:[#allocation2] sm:$0xff]  ;;  %v5583_v55 = vpack.c.bf16 %v2410_v43, %v2409_v41 }
  0xe3   : > { %v919_v5 = vmul.f32 %v840_v59, %v541_v36  ;;  %v918_v6 = vmul.f32 %v835_v60, %v540_v40  ;;  %v546_v36 = vmax.f32 %v492_v25, 0.0  ;;  %v983_v40 = vld [vmem:[#allocation2 + $0x8] sm:$0xff] }
  0xe4   : > { %4440 = vmatmul.mubr.msk.bf16.gmra.mrb[24].mxu1 %vm926_vm2, %v5551_v58  ;;  %v1059_v26 = vld [vmem:[#allocation2 + $0x151] sm:$0xff]  ;;  %v1014_v31 = vpack.c.bf16 %v983_v40, %v982_v50  ;;  %v2414_v7 = vld [vmem:[#allocation2 + $0x142] sm:$0xff] }
  0xe5   : > { %975 = vst.msk [vmem:[#allocation2 + $0x178] sm:$0x3] %vm929_vm1, %v919_v5  ;;  %v2411_v5 = vld [vmem:[#allocation2 + $0x122] sm:$0xff]  ;;  %v992_v40 = vld [vmem:[#allocation2 + $0x78] sm:$0xff] }
  0xe6   : > { %974 = vst.msk [vmem:[#allocation2 + $0x170] sm:$0xff] %vm926_vm2, %v918_v6  ;;  %v850_v15 = vpop.permute.xlu1 %849  ;;  %v845_v16 = vpop.permute.xlu0 %844  ;;  %v2413_v6 = vld [vmem:[#allocation2 + $0x13a] sm:$0xff]  ;;  %v988_v25 = vld [vmem:[#allocation2 + $0x48] sm:$0xff] }
  0xe7   : > { %v921_v23 = vmul.f32 %v850_v15, %v543_v61  ;;  %v920_v32 = vmul.f32 %v845_v16, %v542_v0  ;;  %v985_v61 = vld [vmem:[#allocation2 + $0x20] sm:$0xff]  ;;  %v2412_v0 = vld [vmem:[#allocation2 + $0x12a] sm:$0xff]  ;;  %v5611_v16 = vpack.c.bf16 %v2414_v7, %v2413_v6 }
  0xe8   : > { %4598 = vmatmul.mubr.msk.bf16.gmra.mrb[12].mxu0 %vm926_vm2, %v5561_v14  ;;  %v5594_v9 = vpack.c.bf16 %v985_v61, %v984_v1  ;;  %v5598_v11 = vpack.c.bf16 %v2412_v0, %v2411_v5  ;;  %v5605_v15 = vld [vmem:[%s6032_s1 + $0xc] sm:$0xf]  ;;  %v998_v50 = vld [vmem:[#allocation2 + $0xc0] sm:$0xff]  ;;  %v1003_v1 = vld [vmem:[#allocation2 + $0xf8] sm:$0xff] }
  0xe9   : > { %4601 = vmatprep.mubr.msk.bf16.mxu0 %vm926_vm2, %v5563_v17  ;;  %v1060_v21 = vld [vmem:[#allocation2 + $0x159] sm:$0xff]  ;;  %977 = vst.msk [vmem:[#allocation2 + $0x188] sm:$0xff] %vm926_vm2, %v921_v23  ;;  %976 = vst.msk [vmem:[#allocation2 + $0x180] sm:$0xff] %vm926_vm2, %v920_v32  ;;  %v991_v23 = vld [vmem:[#allocation2 + $0x68] sm:$0xff] }
  0xea   : > { %v5573_v27 = vpack.c.bf16 %v1060_v21, %v1059_v26  ;;  %v860_v28 = vpop.permute.xlu1 %859  ;;  %v855_v29 = vpop.permute.xlu0 %854  ;;  %v2415_v26 = vld [vmem:[#allocation2 + $0x152] sm:$0xff]  ;;  %v5619_v21 = vpack.c.bf16 %v989_v51, %v988_v25  ;;  %v5662_v61 = vld [vmem:[%s6032_s1 + $0x20] sm:$0xf]  ;;  %v1004_v51 = vld [vmem:[#allocation2 + $0x108] sm:$0xff] }
  0xeb   : > { %v923_v34 = vmul.f32 %v860_v28, %v545_v18  ;;  %v922_v35 = vmul.f32 %v855_v29, %v544_v22  ;;  %v2416_v18 = vld [vmem:[#allocation2 + $0x15a] sm:$0xff]  ;;  %v1005_v6 = vld [vmem:[#allocation2 + $0x110] sm:$0xff] }
  0xec   : > { %4443 = vmatprep.mubr.msk.bf16.mxu1 %vm926_vm2, %v5573_v27  ;;  %v990_v22 = vld [vmem:[#allocation2 + $0x60] sm:$0xff]  ;;  %v5621_v28 = vpack.c.bf16 %v2416_v18, %v2415_v26  ;;  %v5682_v18 = vpack.c.bf16 %v1005_v6, %v1004_v51  ;;  %v1008_v25 = vld [vmem:[#allocation2 + $0x138] sm:$0xff] }
  0xed   : > { %v1061_v44 = vld [vmem:[#allocation2 + $0x169] sm:$0xff]  ;;  %v1062_v46 = vld [vmem:[#allocation2 + $0x171] sm:$0xff]  ;;  %979 = vst.msk [vmem:[#allocation2 + $0x198] sm:$0xff] %vm926_vm2, %v923_v34  ;;  %v5623_v29 = vpack.c.bf16 %v991_v23, %v990_v22  ;;  %v993_v34 = vld [vmem:[#allocation2 + $0x80] sm:$0xff] }
  0xee   : > { %978 = vst.msk [vmem:[#allocation2 + $0x190] sm:$0x3] %vm929_vm1, %v922_v35  ;;  %v5579_v48 = vpack.c.bf16 %v1062_v46, %v1061_v44  ;;  %v870_v52 = vpop.permute.xlu1 %869  ;;  %v865_v53 = vpop.permute.xlu0 %864  ;;  %v2417_v32 = vld [vmem:[#allocation2 + $0x16a] sm:$0xff]  ;;  %v2418_v2 = vld [vmem:[#allocation2 + $0x172] sm:$0xff]  ;;  %v5635_v43 = vpack.c.bf16 %v993_v34, %v992_v40  ;;  %v1001_v0 = vld [vmem:[#allocation2 + $0xe0] sm:$0xff] }
  0xef   : > { %v925_v59 = vmul.f32 %v870_v52, %v547_v8  ;;  %v924_v60 = vmul.f32 %v865_v53, %v546_v36  ;;  %v5625_v30 = vpack.c.bf16 %v2418_v2, %v2417_v32  ;;  %v994_v8 = vld [vmem:[#allocation2 + $0x90] sm:$0xff]  ;;  %v995_v36 = vld [vmem:[#allocation2 + $0x98] sm:$0xff]  ;;  %v999_v52 = vld [vmem:[#allocation2 + $0xc8] sm:$0xff]  ;;  %v5670_v4 = vpack.c.bf16 %v1001_v0, %v1000_v3 }
  0xf0   : > { %4444 = vmatmul.mubr.msk.bf16.gmra.mrb[28].mxu1 %vm926_vm2, %v5579_v48  ;;  %4602 = vmatmul.mubr.msk.bf16.gmra.mrb[16].mxu0 %vm926_vm2, %v5581_v49  ;;  %v2419_v41 = vld [vmem:[#allocation2 + $0x182] sm:$0xff]  ;;  %v5639_v46 = vpack.c.bf16 %v995_v36, %v994_v8  ;;  %v1010_v32 = vld [vmem:[#allocation2 + $0x150] sm:$0xff]  ;;  %v1011_v2 = vld [vmem:[#allocation2 + $0x158] sm:$0xff] }
  0xf1   : > { %4449 = vmatprep.mubr.msk.bf16.mxu1 %vm926_vm2, %v1014_v31  ;;  %4605 = vmatprep.mubr.msk.bf16.mxu0 %vm926_vm2, %v5583_v55  ;;  %981 = vst.msk [vmem:[#allocation2 + $0x1a8] sm:$0x3] %vm929_vm1, %v925_v59  ;;  %v996_v53 = vld [vmem:[#allocation2 + $0xa8] sm:$0xff]  ;;  %v5651_v59 = vpack.c.bf16 %v999_v52, %v998_v50  ;;  %v1006_v7 = vld [vmem:[#allocation2 + $0x120] sm:$0xff]  ;;  %v5696_v34 = vpack.c.bf16 %v1011_v2, %v1010_v32  ;;  %v1900_v50 = vsel %vm1129_vm0, %v5605_v15, 0  ;;  %v2981_v6 = vld [vmem:[#allocation2 + $0x51] sm:$0xff] }
  0xf2   : > { %980 = vst.msk [vmem:[#allocation2 + $0x1a0] sm:$0xff] %vm926_vm2, %v924_v60  ;;  %v5649_v31 = vpack.c.bf16 %v997_v47, %v996_v53  ;;  %v3077_v60 = vsel %vm1129_vm0, %v5480_v24, 0  ;;  %v1002_v24 = vld [vmem:[#allocation2 + $0xf0] sm:$0xff]  ;;  %v1009_v23 = vld [vmem:[#allocation2 + $0x140] sm:$0xff]  ;;  %v1012_v40 = vld [vmem:[#allocation2 + $0x168] sm:$0xff]  ;;  %v3371_v32 = vsel %vm1129_vm0, %v5662_v61, 0 }
  0xf3   : > { %v5672_v5 = vpack.c.bf16 %v1003_v1, %v1002_v24  ;;  %v5694_v26 = vpack.c.bf16 %v1009_v23, %v1008_v25  ;;  %v1506_v8 = vld [vmem:[#allocation2 + $0x2] sm:$0xff]  ;;  %v1507_v36 = vld [vmem:[#allocation2 + $0xa] sm:$0xff]  ;;  %v2984_v2 = vld [vmem:[#allocation2 + $0x79] sm:$0xff] }
  0xf4   : > { %v1538_v47 = vpack.c.bf16 %v1507_v36, %v1506_v8  ;;  %v4999_v52 = vld [vmem:[%s6032_s1 + $0x10] sm:$0xf]  ;;  %v2713_v53 = vld [vmem:[#allocation2 + $0x188] sm:$0xff]  ;;  %v2714_v0 = vld [vmem:[#allocation2 + $0x198] sm:$0xff] }
  0xf5   : > { %v2420_v35 = vld [vmem:[#allocation2 + $0x18a] sm:$0xff]  ;;  %v2982_v51 = vld [vmem:[#allocation2 + $0x61] sm:$0xff] }
  0xf6   : > { %v5637_v44 = vpack.c.bf16 %v2420_v35, %v2419_v41  ;;  %v1013_v35 = vld [vmem:[#allocation2 + $0x170] sm:$0xff]  ;;  %v2985_v25 = vld [vmem:[#allocation2 + $0x81] sm:$0xff] }
  0xf7   : > { %v5706_v41 = vpack.c.bf16 %v1013_v35, %v1012_v40  ;;  %v2978_v1 = vld [vmem:[#allocation2 + $0x31] sm:$0xff]  ;;  %v2987_v35 = vld [vmem:[#allocation2 + $0x99] sm:$0xff]  ;;  %v3013_v8 = vpack.c.bf16 %v2985_v25, %v2984_v2 }
  0xf8   : > { %4450 = vmatmul.mubr.msk.bf16.vlgmr.msra.gmra.mrb[0].mxu1 %vm926_vm2, %v5594_v9  ;;  %4606 = vmatmul.mubr.msk.bf16.gmra.mrb[20].mxu0 %vm926_vm2, %v5598_v11  ;;  %v2986_v36 = vld [vmem:[#allocation2 + $0x91] sm:$0xff] }
  0xf9   : > { %4482 = vmatpush3.bf16.msra.mxu1 %v1605_v10  ;;  %4453 = vmatprep.mubr.msk.bf16.mxu1 %vm926_vm2, %v5600_v13  ;;  %v1007_v10 = vld [vmem:[#allocation2 + $0x128] sm:$0xff]  ;;  %v3014_v40 = vpack.c.bf16 %v2987_v35, %v2986_v36 }
  0xfa   : > { %4609 = vmatprep.mubr.msk.bf16.mxu0 %vm926_vm2, %v5611_v16  ;;  %4980 = vmatprep.subr.msk.bf16.mxu1 %vm1129_vm0, %v5605_v15  ;;  %v5684_v22 = vpack.c.bf16 %v1007_v10, %v1006_v7  ;;  %v2712_v15 = vld [vmem:[#allocation2 + $0x180] sm:$0xff]  ;;  %v2983_v7 = vld [vmem:[#allocation2 + $0x69] sm:$0xff] }
  0xfb   : > { %v3012_v23 = vpack.c.bf16 %v2983_v7, %v2982_v51 }
 0x100   : > { %4454 = vmatmul.mubr.msk.bf16.gmra.mrb[4].mxu1 %vm926_vm2, %v5619_v21  ;;  %4610 = vmatmul.mubr.msk.bf16.gmra.mrb[24].mxu0 %vm926_vm2, %v5621_v28 }
 0x101   : > { %4457 = vmatprep.mubr.msk.bf16.mxu1 %vm926_vm2, %v5623_v29  ;;  %4613 = vmatprep.mubr.msk.bf16.mxu0 %vm926_vm2, %v5625_v30 }
 0x108   : > { %4458 = vmatmul.mubr.msk.bf16.gmra.mrb[8].mxu1 %vm926_vm2, %v5635_v43  ;;  %4614 = vmatmul.mubr.msk.bf16.gmra.mrb[28].mxu0 %vm926_vm2, %v5637_v44 }
 0x109   : > { %4461 = vmatprep.mubr.msk.bf16.mxu1 %vm926_vm2, %v5639_v46  ;;  %4619 = vmatprep.mubr.msk.bf16.mxu0 %vm926_vm2, %v5600_v13 }
 0x110   : > { %4462 = vmatmul.mubr.msk.bf16.gmra.mrb[12].mxu1 %vm926_vm2, %v5649_v31  ;;  %4620 = vmatmul.mubr.msk.bf16.vlgmr.msra.gmra.mrb[0].mxu0 %vm926_vm2, %v5619_v21 }
 0x111   : > { %4465 = vmatprep.mubr.msk.bf16.mxu1 %vm926_vm2, %v5651_v59  ;;  %4623 = vmatprep.mubr.msk.bf16.mxu0 %vm926_vm2, %v5623_v29 }
 0x112   : > { %4652 = vmatpush3.bf16.msra.mxu0 %v3077_v60  ;;  %v5729_v60 = vpack.c.bf16 %v2713_v53, %v2712_v15 }
 0x113   : > { %4986 = vmatprep.subr.msk.bf16.mxu0 %vm1129_vm0, %v5662_v61 }
 0x118   : > { %4466 = vmatmul.mubr.msk.bf16.gmra.mrb[16].mxu1 %vm926_vm2, %v5670_v4  ;;  %4624 = vmatmul.mubr.msk.bf16.gmra.mrb[4].mxu0 %vm926_vm2, %v5635_v43 }
 0x119   : > { %4469 = vmatprep.mubr.msk.bf16.mxu1 %vm926_vm2, %v5672_v5  ;;  %4627 = vmatprep.mubr.msk.bf16.mxu0 %vm926_vm2, %v5639_v46 }
 0x120   : > { %4470 = vmatmul.mubr.msk.bf16.gmra.mrb[20].mxu1 %vm926_vm2, %v5682_v18  ;;  %4628 = vmatmul.mubr.msk.bf16.gmra.mrb[8].mxu0 %vm926_vm2, %v5649_v31 }
 0x121   : > { %4473 = vmatprep.mubr.msk.bf16.mxu1 %vm926_vm2, %v5684_v22  ;;  %4631 = vmatprep.mubr.msk.bf16.mxu0 %vm926_vm2, %v5651_v59 }
 0x128   : > { %4474 = vmatmul.mubr.msk.bf16.gmra.mrb[24].mxu1 %vm926_vm2, %v5694_v26  ;;  %4632 = vmatmul.mubr.msk.bf16.gmra.mrb[12].mxu0 %vm926_vm2, %v5670_v4 }
 0x129   : > { %4477 = vmatprep.mubr.msk.bf16.mxu1 %vm926_vm2, %v5696_v34  ;;  %4635 = vmatprep.mubr.msk.bf16.mxu0 %vm926_vm2, %v5672_v5 }
 0x130   : > { %4478 = vmatmul.mubr.msk.bf16.gmra.mrb[28].mxu1 %vm926_vm2, %v5706_v41  ;;  %4636 = vmatmul.mubr.msk.bf16.gmra.mrb[16].mxu0 %vm926_vm2, %v5682_v18 }
 0x131   : > { %4483 = vmatprep.mubr.msk.bf16.mxu1 %vm926_vm2, %v1538_v47  ;;  %4639 = vmatprep.mubr.msk.bf16.mxu0 %vm926_vm2, %v5684_v22 }
 0x138   : > { %4484 = vmatmul.mubr.msk.bf16.vlgmr.msra.gmra.mrb[0].mxu1 %vm926_vm2, %v5441_v42  ;;  %4640 = vmatmul.mubr.msk.bf16.gmra.mrb[20].mxu0 %vm926_vm2, %v5694_v26  ;;  %v2715_v42 = vld [vmem:[#allocation2 + $0x1a0] sm:$0xff] }
 0x139   : > { %4516 = vmatpush3.bf16.msra.mxu1 %v1900_v50  ;;  %4487 = vmatprep.mubr.msk.bf16.mxu1 %vm926_vm2, %v5467_v12  ;;  %v2979_v12 = vld [vmem:[#allocation2 + $0x39] sm:$0xff]  ;;  %v2731_v24 = vpack.c.bf16 %v2715_v42, %v2714_v0 }
 0x13a   : > { %4643 = vmatprep.mubr.msk.bf16.mxu0 %vm926_vm2, %v5696_v34  ;;  %4982 = vmatprep.subr.msk.bf16.mxu1 %vm1129_vm0, %v4999_v52  ;;  %v3010_v3 = vpack.c.bf16 %v2979_v12, %v2978_v1 }
 0x140   : > { %4488 = vmatmul.mubr.msk.bf16.gmra.mrb[4].mxu1 %vm926_vm2, %v5473_v19  ;;  %4644 = vmatmul.mubr.msk.bf16.gmra.mrb[24].mxu0 %vm926_vm2, %v5706_v41  ;;  %v2980_v19 = vld [vmem:[#allocation2 + $0x49] sm:$0xff] }
 0x141   : > { %4491 = vmatprep.mubr.msk.bf16.mxu1 %vm926_vm2, %v5505_v57  ;;  %4647 = vmatprep.mubr.msk.bf16.mxu0 %vm926_vm2, %v5729_v60  ;;  %v3011_v10 = vpack.c.bf16 %v2981_v6, %v2980_v19 }
 0x148   : > { %4492 = vmatmul.mubr.msk.bf16.gmra.mrb[8].mxu1 %vm926_vm2, %v5508_v62  ;;  %4648 = vmatmul.mubr.msk.bf16.gmra.mrb[28].mxu0 %vm926_vm2, %v2731_v24 }
 0x149   : > { %4495 = vmatprep.mubr.msk.bf16.mxu1 %vm926_vm2, %v5534_v39  ;;  %4653 = vmatprep.mubr.msk.bf16.mxu0 %vm926_vm2, %v3010_v3 }
 0x150   : > { %4496 = vmatmul.mubr.msk.bf16.gmra.mrb[12].mxu1 %vm926_vm2, %v5537_v45  ;;  %4654 = vmatmul.mubr.msk.bf16.vlgmr.msra.gmra.mrb[0].mxu0 %vm926_vm2, %v3011_v10 }
 0x151   : > { %4499 = vmatprep.mubr.msk.bf16.mxu1 %vm926_vm2, %v5561_v14  ;;  %4657 = vmatprep.mubr.msk.bf16.mxu0 %vm926_vm2, %v3012_v23 }
 0x152   : > { %4686 = vmatpush3.bf16.msra.mxu0 %v3371_v32 }
 0x158   : > { %4500 = vmatmul.mubr.msk.bf16.gmra.mrb[16].mxu1 %vm926_vm2, %v5563_v17  ;;  %4658 = vmatmul.mubr.msk.bf16.gmra.mrb[4].mxu0 %vm926_vm2, %v3013_v8 }
 0x159   : > { %4503 = vmatprep.mubr.msk.bf16.mxu1 %vm926_vm2, %v5581_v49  ;;  %4661 = vmatprep.mubr.msk.bf16.mxu0 %vm926_vm2, %v3014_v40 }
 0x160   : > { %4504 = vmatmul.mubr.msk.bf16.gmra.mrb[20].mxu1 %vm926_vm2, %v5583_v55  ;;  %4662 = vmatmul.mubr.msk.bf16.gmra.mrb[8].mxu0 %vm926_vm2, %v5413_v63  ;;  %v3007_v63 = vld [vmem:[#allocation2 + $0x189] sm:$0xff] }
 0x161   : > { %4507 = vmatprep.mubr.msk.bf16.mxu1 %vm926_vm2, %v5598_v11  ;;  %4665 = vmatprep.mubr.msk.bf16.mxu0 %vm926_vm2, %v5438_v37  ;;  %v3006_v37 = vld [vmem:[#allocation2 + $0x181] sm:$0xff] }
 0x168   : > { %4508 = vmatmul.mubr.msk.bf16.gmra.mrb[24].mxu1 %vm926_vm2, %v5611_v16  ;;  %4666 = vmatmul.mubr.msk.bf16.gmra.mrb[12].mxu0 %vm926_vm2, %v5456_v54  ;;  %v5792_v54 = vpack.c.bf16 %v3007_v63, %v3006_v37 }
 0x169   : > { %4511 = vmatprep.mubr.msk.bf16.mxu1 %vm926_vm2, %v5621_v28  ;;  %4669 = vmatprep.mubr.msk.bf16.mxu0 %vm926_vm2, %v5489_v33  ;;  %v3009_v33 = vld [vmem:[#allocation2 + $0x1a1] sm:$0xff] }
 0x170   : > { %4512 = vmatmul.mubr.msk.bf16.gmra.mrb[28].mxu1 %vm926_vm2, %v5625_v30  ;;  %4670 = vmatmul.mubr.msk.bf16.gmra.mrb[16].mxu0 %vm926_vm2, %v5503_v56  ;;  %v3273_v56 = vld [vmem:[#allocation2 + $0x3a] sm:$0xff] }
 0x171   : > { %4517 = vmatprep.mubr.msk.bf16.mxu1 %vm926_vm2, %v5594_v9  ;;  %4673 = vmatprep.mubr.msk.bf16.mxu0 %vm926_vm2, %v5532_v38  ;;  %v3272_v9 = vld [vmem:[#allocation2 + $0x32] sm:$0xff] }
 0x178   : > { %4518 = vmatmul.mubr.msk.bf16.vlgmr.msra.gmra.mrb[0].mxu1 %vm926_vm2, %v5600_v13  ;;  %4674 = vmatmul.mubr.msk.bf16.gmra.mrb[20].mxu0 %vm926_vm2, %v5551_v58  ;;  %v3304_v13 = vpack.c.bf16 %v3273_v56, %v3272_v9 }
 0x179   : > { %4720 = vmatpush3.bf16.msra.mxu1 %v5110_v20  ;;  %4521 = vmatprep.mubr.msk.bf16.mxu1 %vm926_vm2, %v5619_v21  ;;  %v3008_v20 = vld [vmem:[#allocation2 + $0x199] sm:$0xff]  ;;  %v3274_v21 = vld [vmem:[#allocation2 + $0x4a] sm:$0xff] }
 0x17a   : > { %4677 = vmatprep.mubr.msk.bf16.mxu0 %vm926_vm2, %v5573_v27  ;;  %v3025_v38 = vpack.c.bf16 %v3009_v33, %v3008_v20 }
 0x180   : > { %4522 = vmatmul.mubr.msk.bf16.gmra.mrb[4].mxu1 %vm926_vm2, %v5623_v29  ;;  %4678 = vmatmul.mubr.msk.bf16.gmra.mrb[24].mxu0 %vm926_vm2, %v5579_v48  ;;  %v3275_v29 = vld [vmem:[#allocation2 + $0x52] sm:$0xff] }
 0x181   : > { %4525 = vmatprep.mubr.msk.bf16.mxu1 %vm926_vm2, %v5635_v43  ;;  %4681 = vmatprep.mubr.msk.bf16.mxu0 %vm926_vm2, %v5792_v54  ;;  %v3305_v43 = vpack.c.bf16 %v3275_v29, %v3274_v21 }
 0x188   : > { %4526 = vmatmul.mubr.msk.bf16.gmra.mrb[8].mxu1 %vm926_vm2, %v5639_v46  ;;  %4682 = vmatmul.mubr.msk.bf16.gmra.mrb[28].mxu0 %vm926_vm2, %v3025_v38  ;;  %v2113_v46 = vld [vmem:[#allocation2 + $0xf1] sm:$0xff] }
 0x189   : > { %4529 = vmatprep.mubr.msk.bf16.mxu1 %vm926_vm2, %v5649_v31  ;;  %4687 = vmatprep.mubr.msk.bf16.mxu0 %vm926_vm2, %v3304_v13 }
 0x190   : > { %4530 = vmatmul.mubr.msk.bf16.gmra.mrb[12].mxu1 %vm926_vm2, %v5651_v59  ;;  %4688 = vmatmul.mubr.msk.bf16.vlgmr.msra.gmra.mrb[0].mxu0 %vm926_vm2, %v3305_v43  ;;  %v2117_v59 = vld [vmem:[#allocation2 + $0x121] sm:$0xff] }
 0x191   : > { %4533 = vmatprep.mubr.msk.bf16.mxu1 %vm926_vm2, %v5670_v4  ;;  %4691 = vmatprep.mubr.msk.bf16.mxu0 %vm926_vm2, %v5505_v57  ;;  %v2111_v57 = vld [vmem:[#allocation2 + $0xd9] sm:$0xff] }
 0x198   : > { %4534 = vmatmul.mubr.msk.bf16.gmra.mrb[16].mxu1 %vm926_vm2, %v5672_v5  ;;  %4692 = vmatmul.mubr.msk.bf16.gmra.mrb[4].mxu0 %vm926_vm2, %v5508_v62  ;;  %v2112_v62 = vld [vmem:[#allocation2 + $0xe1] sm:$0xff] }
 0x199   : > { %4537 = vmatprep.mubr.msk.bf16.mxu1 %vm926_vm2, %v5682_v18  ;;  %4695 = vmatprep.mubr.msk.bf16.mxu0 %vm926_vm2, %v5534_v39  ;;  %v2135_v39 = vpack.c.bf16 %v2112_v62, %v2111_v57 }
 0x1a0   : > { %4538 = vmatmul.mubr.msk.bf16.gmra.mrb[20].mxu1 %vm926_vm2, %v5684_v22  ;;  %4696 = vmatmul.mubr.msk.bf16.gmra.mrb[8].mxu0 %vm926_vm2, %v5537_v45  ;;  %v2114_v45 = vld [vmem:[#allocation2 + $0xf9] sm:$0xff] }
 0x1a1   : > { %4541 = vmatprep.mubr.msk.bf16.mxu1 %vm926_vm2, %v5694_v26  ;;  %4699 = vmatprep.mubr.msk.bf16.mxu0 %vm926_vm2, %v5561_v14  ;;  %v2115_v14 = vld [vmem:[#allocation2 + $0x109] sm:$0xff]  ;;  %v2136_v31 = vpack.c.bf16 %v2114_v45, %v2113_v46 }
 0x1a8   : > { %4542 = vmatmul.mubr.msk.bf16.gmra.mrb[24].mxu1 %vm926_vm2, %v5696_v34  ;;  %4700 = vmatmul.mubr.msk.bf16.gmra.mrb[12].mxu0 %vm926_vm2, %v5563_v17  ;;  %v2116_v17 = vld [vmem:[#allocation2 + $0x111] sm:$0xff] }
 0x1a9   : > { %4545 = vmatprep.mubr.msk.bf16.mxu1 %vm926_vm2, %v5706_v41  ;;  %4703 = vmatprep.mubr.msk.bf16.mxu0 %vm926_vm2, %v5581_v49  ;;  %v2137_v49 = vpack.c.bf16 %v2116_v17, %v2115_v14 }
 0x1b0   : > { %4546 = vmatmul.mubr.msk.bf16.gmra.mrb[28].mxu1 %vm926_vm2, %v5729_v60  ;;  %4704 = vmatmul.mubr.msk.bf16.gmra.mrb[16].mxu0 %vm926_vm2, %v5583_v55  ;;  %v2118_v55 = vld [vmem:[#allocation2 + $0x129] sm:$0xff] }
 0x1b1   : > { %4567 = vmatprep.mubr.msk.bf16.mxu1 %vm926_vm2, %v2135_v39  ;;  %4707 = vmatprep.mubr.msk.bf16.mxu0 %vm926_vm2, %v5598_v11  ;;  %v2138_v61 = vpack.c.bf16 %v2118_v55, %v2117_v59  ;;  %v3302_v11 = vld [vmem:[#allocation2 + $0x19a] sm:$0xff] }
 0x1b8   : > { %4568 = vmatmul.mubr.msk.bf16.vlgmr.msra.gmra.mrb[16].mxu1 %vm926_vm2, %v2136_v31  ;;  %4708 = vmatmul.mubr.msk.bf16.gmra.mrb[20].mxu0 %vm926_vm2, %v5611_v16  ;;  %v3303_v16 = vld [vmem:[#allocation2 + $0x1a2] sm:$0xff] }
 0x1b9   : > { %4571 = vmatprep.mubr.msk.bf16.mxu1 %vm926_vm2, %v2137_v49  ;;  %4711 = vmatprep.mubr.msk.bf16.mxu0 %vm926_vm2, %v5621_v28  ;;  %v3319_v4 = vpack.c.bf16 %v3303_v16, %v3302_v11 }
 0x1c0   : > { %4572 = vmatmul.mubr.msk.bf16.gmra.mrb[20].mxu1 %vm926_vm2, %v2138_v61  ;;  %4712 = vmatmul.mubr.msk.bf16.gmra.mrb[24].mxu0 %vm926_vm2, %v5625_v30 }
 0x1c1   : > { %4575 = vmatprep.mubr.msk.bf16.mxu1 %vm926_vm2, %v5551_v58  ;;  %4715 = vmatprep.mubr.msk.bf16.mxu0 %vm926_vm2, %v5637_v44 }
 0x1c8   : > { %4576 = vmatmul.mubr.msk.bf16.gmra.mrb[24].mxu1 %vm926_vm2, %v5573_v27  ;;  %4716 = vmatmul.mubr.msk.bf16.gmra.mrb[28].mxu0 %vm926_vm2, %v3319_v4 }
 0x1c9   : > { %4579 = vmatprep.mubr.msk.bf16.mxu1 %vm926_vm2, %v5579_v48 }
 0x1d0   : > { %4580 = vmatmul.mubr.msk.bf16.gmra.mrb[28].mxu1 %vm926_vm2, %v5792_v54 }
 0x24b   : > { %v4519_v28 = vpop.f32.mrb[0].mxu1 }
 0x24c   : > { %v1936_v58 = vpop.f32.mrb[1].mxu1 }
 0x24d   : > { %v4520_v30 = vpop.f32.mrb[2].mxu1 }
 0x24e   : > { %v1939_v5 = vpop.f32.mrb[3].mxu1 }
 0x253   : > { %v4523_v44 = vpop.f32.mrb[4].mxu1 }
 0x254   : > { %v1952_v18 = vpop.f32.mrb[5].mxu1 }
 0x255   : > { %v4524_v22 = vpop.f32.mrb[6].mxu1 }
 0x256   : > { %v1955_v26 = vpop.f32.mrb[7].mxu1 }
 0x25b   : > { %v5866_v34 = vpop.f32.mrb[8].mxu1 }
 0x25c   : > { %v5868_v27 = vpop.f32.mrb[9].mxu1 }
 0x25d   : > { %v5870_v41 = vpop.f32.mrb[10].mxu1 }
 0x25e   : > { %v5872_v47 = vpop.f32.mrb[11].mxu1 }
 0x263   : > { %v5875_v48 = vpop.f32.mrb[12].mxu1  ;;  %v4689_v50 = vpop.f32.mrb[0].mxu0 }
 0x264   : > { %v4721_v52 = vadd.f32 %v4689_v50, %v4519_v28  ;;  %v5877_v15 = vpop.f32.mrb[13].mxu1  ;;  %v3407_v53 = vpop.f32.mrb[1].mxu0 }
 0x265   : > { %v4722_v60 = vadd.f32 %v3407_v53, %v1936_v58  ;;  %v5884_v42 = vpop.f32.mrb[14].mxu1  ;;  %v4690_v12 = vpop.f32.mrb[2].mxu0 }
 0x266   : > { %v4186_v0 = vpack.c.bf16 %v4721_v52, %v4721_v52  ;;  %v4723_v24 = vadd.f32 %v4690_v12, %v4520_v30  ;;  %v5886_v1 = vpop.f32.mrb[15].mxu1  ;;  %v3410_v3 = vpop.f32.mrb[3].mxu0  ;;  %v3800_v10 = vmul.f32 %v4721_v52, %v4721_v52  ;;  %v3730_v36 = vsel %vm926_vm2, %v4721_v52, 0.0 }
 0x267   : > { %v4184_v19 = vpack.c.bf16 %v4722_v60, %v4722_v60  ;;  %v3798_v6 = vmul.f32 %v4722_v60, %v4722_v60  ;;  %v4724_v7 = vadd.f32 %v3410_v3, %v1939_v5  ;;  %v3727_v23 = vsel %vm926_vm2, %v4722_v60, 0.0 }
 0x268   : > { %3697 = vst.msk [vmem:[%s5882_s30 + $0x8] sm:$0xf] %vm3694_vm3, %v4186_v0  ;;  %v4187_v51 = vpack.c.bf16 %v4723_v24, %v4723_v24  ;;  %v3801_v35 = vmul.f32 %v4723_v24, %v4723_v24  ;;  %v3833_v38 = vsel %vm926_vm2, %v3800_v10, 0.0  ;;  %v3732_v21 = vsel %vm926_vm2, %v4723_v24, 0.0 }
 0x269   : > { %3695 = vst.msk [vmem:[%s5882_s30] sm:$0xf] %vm3694_vm3, %v4184_v19  ;;  %v4185_v32 = vpack.c.bf16 %v4724_v7, %v4724_v7  ;;  %v3728_v2 = vsel %vm926_vm2, %v4724_v7, 0.0  ;;  %v3799_v25 = vmul.f32 %v4724_v7, %v4724_v7  ;;  %v3830_v40 = vsel %vm926_vm2, %v3798_v6, 0.0 }
 0x26a   : > { %3698 = vst.msk [vmem:[%s5882_s30 + $0xc] sm:$0xf] %vm3694_vm3, %v4187_v51  ;;  %v3729_v8 = vadd.f32 %v3728_v2, %v3727_v23  ;;  %v3835_v29 = vsel %vm926_vm2, %v3801_v35, 0.0 }
 0x26b   : > { %3696 = vst.msk [vmem:[%s5882_s30 + $0x4] sm:$0xf] %vm3694_vm3, %v4185_v32  ;;  %v3831_v63 = vsel %vm926_vm2, %v3799_v25, 0.0  ;;  %v4693_v37 = vpop.f32.mrb[4].mxu0 }
 0x26c   : > { %v3731_v54 = vadd.f32 %v3730_v36, %v3729_v8  ;;  %v3832_v20 = vadd.f32 %v3831_v63, %v3830_v40  ;;  %v4725_v33 = vadd.f32 %v4693_v37, %v4523_v44  ;;  %v3423_v56 = vpop.f32.mrb[5].mxu0 }
 0x26d   : > { %v4726_v9 = vadd.f32 %v3423_v56, %v1952_v18  ;;  %v4694_v13 = vpop.f32.mrb[6].mxu0 }
 0x26e   : > { %v3834_v43 = vadd.f32 %v3833_v38, %v3832_v20  ;;  %v4190_v57 = vpack.c.bf16 %v4725_v33, %v4725_v33  ;;  %v3426_v62 = vpop.f32.mrb[7].mxu0  ;;  %v3733_v45 = vadd.f32 %v3732_v21, %v3731_v54  ;;  %v4727_v31 = vadd.f32 %v4694_v13, %v4524_v22 }
 0x26f   : > { %v4188_v39 = vpack.c.bf16 %v4726_v9, %v4726_v9  ;;  %v3734_v14 = vsel %vm926_vm2, %v4726_v9, 0.0  ;;  %v3802_v17 = vmul.f32 %v4726_v9, %v4726_v9  ;;  %v4728_v49 = vadd.f32 %v3426_v62, %v1955_v26 }
 0x270   : > { %3701 = vst.msk [vmem:[%s5882_s30 + $0x18] sm:$0xf] %vm3694_vm3, %v4190_v57  ;;  %v3836_v46 = vadd.f32 %v3835_v29, %v3834_v43  ;;  %v3735_v55 = vadd.f32 %v3734_v14, %v3733_v45  ;;  %v3804_v61 = vmul.f32 %v4725_v33, %v4725_v33  ;;  %v4191_v16 = vpack.c.bf16 %v4727_v31, %v4727_v31 }
 0x271   : > { %3699 = vst.msk [vmem:[%s5882_s30 + $0x10] sm:$0xf] %vm3694_vm3, %v4188_v39  ;;  %v3837_v59 = vsel %vm926_vm2, %v3802_v17, 0.0  ;;  %v4189_v4 = vpack.c.bf16 %v4728_v49, %v4728_v49  ;;  %v3736_v28 = vsel %vm926_vm2, %v4728_v49, 0.0  ;;  %v3803_v58 = vmul.f32 %v4728_v49, %v4728_v49 }
 0x272   : > { %v3838_v11 = vadd.f32 %v3837_v59, %v3836_v46  ;;  %3702 = vst.msk [vmem:[%s5882_s30 + $0x1c] sm:$0xf] %vm3694_vm3, %v4191_v16  ;;  %v3737_v5 = vadd.f32 %v3736_v28, %v3735_v55  ;;  %v3738_v22 = vsel %vm926_vm2, %v4725_v33, 0.0  ;;  %v3805_v26 = vmul.f32 %v4727_v31, %v4727_v31 }
 0x273   : > { %v4697_v30 = vpop.f32.mrb[8].mxu0  ;;  %3700 = vst.msk [vmem:[%s5882_s30 + $0x14] sm:$0xf] %vm3694_vm3, %v4189_v4  ;;  %v3839_v50 = vsel %vm926_vm2, %v3803_v58, 0.0  ;;  %v3841_v60 = vsel %vm926_vm2, %v3804_v61, 0.0 }
 0x274   : > { %v4729_v44 = vadd.f32 %v4697_v30, %v5866_v34  ;;  %v3439_v18 = vpop.f32.mrb[9].mxu0  ;;  %v3739_v12 = vadd.f32 %v3738_v22, %v3737_v5  ;;  %v3840_v0 = vadd.f32 %v3839_v50, %v3838_v11  ;;  %v3740_v34 = vsel %vm926_vm2, %v4727_v31, 0.0 }
 0x275   : > { %v4730_v52 = vadd.f32 %v3439_v18, %v5868_v27  ;;  %v4698_v53 = vpop.f32.mrb[10].mxu0  ;;  %v3843_v32 = vsel %vm926_vm2, %v3805_v26, 0.0 }
 0x276   : > { %v4194_v24 = vpack.c.bf16 %v4729_v44, %v4729_v44  ;;  %v3442_v3 = vpop.f32.mrb[11].mxu0  ;;  %v3842_v10 = vadd.f32 %v3841_v60, %v3840_v0  ;;  %v3741_v51 = vadd.f32 %v3740_v34, %v3739_v12  ;;  %v4731_v27 = vadd.f32 %v4698_v53, %v5870_v41 }
 0x277   : > { %v4192_v19 = vpack.c.bf16 %v4730_v52, %v4730_v52  ;;  %v3742_v6 = vsel %vm926_vm2, %v4730_v52, 0.0  ;;  %v3806_v7 = vmul.f32 %v4730_v52, %v4730_v52  ;;  %v4732_v23 = vadd.f32 %v3442_v3, %v5872_v47 }
 0x278   : > { %3705 = vst.msk [vmem:[%s5882_s30 + $0x28] sm:$0xf] %vm3694_vm3, %v4194_v24  ;;  %v3808_v25 = vmul.f32 %v4729_v44, %v4729_v44  ;;  %v3743_v35 = vadd.f32 %v3742_v6, %v3741_v51  ;;  %v3844_v8 = vadd.f32 %v3843_v32, %v3842_v10  ;;  %v4195_v36 = vpack.c.bf16 %v4731_v27, %v4731_v27 }
 0x279   : > { %3703 = vst.msk [vmem:[%s5882_s30 + $0x20] sm:$0xf] %vm3694_vm3, %v4192_v19  ;;  %v3845_v2 = vsel %vm926_vm2, %v3806_v7, 0.0  ;;  %v4193_v40 = vpack.c.bf16 %v4732_v23, %v4732_v23  ;;  %v3744_v63 = vsel %vm926_vm2, %v4732_v23, 0.0  ;;  %v3807_v37 = vmul.f32 %v4732_v23, %v4732_v23 }
 0x27a   : > { %v3846_v20 = vadd.f32 %v3845_v2, %v3844_v8  ;;  %3706 = vst.msk [vmem:[%s5882_s30 + $0x2c] sm:$0xf] %vm3694_vm3, %v4195_v36  ;;  %v3745_v41 = vadd.f32 %v3744_v63, %v3743_v35  ;;  %v3746_v56 = vsel %vm926_vm2, %v4729_v44, 0.0  ;;  %v3809_v38 = vmul.f32 %v4731_v27, %v4731_v27 }
 0x27b   : > { %v4701_v54 = vpop.f32.mrb[12].mxu0  ;;  %3704 = vst.msk [vmem:[%s5882_s30 + $0x24] sm:$0xf] %vm3694_vm3, %v4193_v40  ;;  %v3847_v9 = vsel %vm926_vm2, %v3807_v37, 0.0  ;;  %v3849_v29 = vsel %vm926_vm2, %v3808_v25, 0.0 }
 0x27c   : > { %v4733_v47 = vadd.f32 %v4701_v54, %v5875_v48  ;;  %v3455_v33 = vpop.f32.mrb[13].mxu0  ;;  %v3747_v43 = vadd.f32 %v3746_v56, %v3745_v41  ;;  %v3848_v57 = vadd.f32 %v3847_v9, %v3846_v20  ;;  %v3748_v48 = vsel %vm926_vm2, %v4731_v27, 0.0 }
 0x27d   : > { %v4734_v13 = vadd.f32 %v3455_v33, %v5877_v15  ;;  %v4702_v21 = vpop.f32.mrb[14].mxu0  ;;  %v3851_v55 = vsel %vm926_vm2, %v3809_v38, 0.0 }
 0x27e   : > { %v4198_v62 = vpack.c.bf16 %v4733_v47, %v4733_v47  ;;  %v3458_v39 = vpop.f32.mrb[15].mxu0  ;;  %v3850_v46 = vadd.f32 %v3849_v29, %v3848_v57  ;;  %v3749_v31 = vadd.f32 %v3748_v48, %v3747_v43  ;;  %v4735_v15 = vadd.f32 %v4702_v21, %v5884_v42 }
 0x27f   : > { %v4196_v45 = vpack.c.bf16 %v4734_v13, %v4734_v13  ;;  %v3750_v14 = vsel %vm926_vm2, %v4734_v13, 0.0  ;;  %v3810_v17 = vmul.f32 %v4734_v13, %v4734_v13  ;;  %v4736_v49 = vadd.f32 %v3458_v39, %v5886_v1 }
 0x280   : > { %3709 = vst.msk [vmem:[%s5882_s30 + $0x38] sm:$0xf] %vm3694_vm3, %v4198_v62  ;;  %v3751_v61 = vadd.f32 %v3750_v14, %v3749_v31  ;;  %v3852_v11 = vadd.f32 %v3851_v55, %v3850_v46  ;;  %v4199_v16 = vpack.c.bf16 %v4735_v15, %v4735_v15  ;;  %v3812_v4 = vmul.f32 %v4733_v47, %v4733_v47 }
 0x281   : > { %3707 = vst.msk [vmem:[%s5882_s30 + $0x30] sm:$0xf] %vm3694_vm3, %v4196_v45  ;;  %v3853_v59 = vsel %vm926_vm2, %v3810_v17, 0.0  ;;  %v4197_v28 = vpack.c.bf16 %v4736_v49, %v4736_v49  ;;  %v3752_v58 = vsel %vm926_vm2, %v4736_v49, 0.0  ;;  %v3811_v30 = vmul.f32 %v4736_v49, %v4736_v49 }
 0x282   : > { %v3854_v44 = vadd.f32 %v3853_v59, %v3852_v11  ;;  %3710 = vst.msk [vmem:[%s5882_s30 + $0x3c] sm:$0xf] %vm3694_vm3, %v4199_v16  ;;  %v3753_v42 = vadd.f32 %v3752_v58, %v3751_v61  ;;  %v3754_v18 = vsel %vm926_vm2, %v4733_v47, 0.0  ;;  %v3813_v22 = vmul.f32 %v4735_v15, %v4735_v15 }
 0x283   : > { %v4705_v5 = vpop.f32.mrb[16].mxu0  ;;  %3708 = vst.msk [vmem:[%s5882_s30 + $0x34] sm:$0xf] %vm3694_vm3, %v4197_v28  ;;  %v3855_v26 = vsel %vm926_vm2, %v3811_v30, 0.0  ;;  %v3857_v12 = vsel %vm926_vm2, %v3812_v4, 0.0  ;;  %v3756_v0 = vsel %vm926_vm2, %v4735_v15, 0.0 }
 0x284   : > { %v3471_v1 = vpop.f32.mrb[17].mxu0  ;;  %v3755_v52 = vadd.f32 %v3754_v18, %v3753_v42  ;;  %v3856_v53 = vadd.f32 %v3855_v26, %v3854_v44  ;;  %v3859_v34 = vsel %vm926_vm2, %v3813_v22, 0.0 }
 0x285   : > { %v4706_v50 = vpop.f32.mrb[18].mxu0 }
 0x286   : > { %v3474_v60 = vpop.f32.mrb[19].mxu0  ;;  %v3858_v24 = vadd.f32 %v3857_v12, %v3856_v53  ;;  %v3757_v3 = vadd.f32 %v3756_v0, %v3755_v52 }
 0x288   : > { %v3860_v19 = vadd.f32 %v3859_v34, %v3858_v24 }
 0x28b   : > { %v4569_v6 = vpop.f32.mrb[16].mxu1  ;;  %v4709_v7 = vpop.f32.mrb[20].mxu0 }
 0x28c   : > { %v4737_v10 = vadd.f32 %v4705_v5, %v4569_v6  ;;  %v2294_v51 = vpop.f32.mrb[17].mxu1  ;;  %v3487_v27 = vpop.f32.mrb[21].mxu0 }
 0x28d   : > { %v4738_v23 = vadd.f32 %v3471_v1, %v2294_v51  ;;  %v4570_v32 = vpop.f32.mrb[18].mxu1  ;;  %v4710_v2 = vpop.f32.mrb[22].mxu0 }
 0x28e   : > { %v4202_v25 = vpack.c.bf16 %v4737_v10, %v4737_v10  ;;  %v4739_v35 = vadd.f32 %v4706_v50, %v4570_v32  ;;  %v2297_v8 = vpop.f32.mrb[19].mxu1  ;;  %v3490_v36 = vpop.f32.mrb[23].mxu0  ;;  %v3816_v38 = vmul.f32 %v4737_v10, %v4737_v10  ;;  %v3762_v29 = vsel %vm926_vm2, %v4737_v10, 0.0 }
 0x28f   : > { %v4200_v40 = vpack.c.bf16 %v4738_v23, %v4738_v23  ;;  %v3758_v63 = vsel %vm926_vm2, %v4738_v23, 0.0  ;;  %v3814_v37 = vmul.f32 %v4738_v23, %v4738_v23  ;;  %v4740_v54 = vadd.f32 %v3474_v60, %v2297_v8 }
 0x290   : > { %3713 = vst.msk [vmem:[%s5882_s30 + $0x48] sm:$0xf] %vm3694_vm3, %v4202_v25  ;;  %v3759_v20 = vadd.f32 %v3758_v63, %v3757_v3  ;;  %v4203_v41 = vpack.c.bf16 %v4739_v35, %v4739_v35  ;;  %v3817_v62 = vmul.f32 %v4739_v35, %v4739_v35  ;;  %v3764_v46 = vsel %vm926_vm2, %v4739_v35, 0.0 }
 0x291   : > { %3711 = vst.msk [vmem:[%s5882_s30 + $0x40] sm:$0xf] %vm3694_vm3, %v4200_v40  ;;  %v3861_v47 = vsel %vm926_vm2, %v3814_v37, 0.0  ;;  %v4201_v33 = vpack.c.bf16 %v4740_v54, %v4740_v54  ;;  %v3760_v56 = vsel %vm926_vm2, %v4740_v54, 0.0  ;;  %v3815_v21 = vmul.f32 %v4740_v54, %v4740_v54 }
 0x292   : > { %v3862_v9 = vadd.f32 %v3861_v47, %v3860_v19  ;;  %3714 = vst.msk [vmem:[%s5882_s30 + $0x4c] sm:$0xf] %vm3694_vm3, %v4203_v41  ;;  %v3761_v13 = vadd.f32 %v3760_v56, %v3759_v20  ;;  %v3865_v59 = vsel %vm926_vm2, %v3816_v38, 0.0  ;;  %v3867_v44 = vsel %vm926_vm2, %v3817_v62, 0.0 }
 0x293   : > { %3712 = vst.msk [vmem:[%s5882_s30 + $0x44] sm:$0xf] %vm3694_vm3, %v4201_v33  ;;  %v4573_v43 = vpop.f32.mrb[20].mxu1  ;;  %v4713_v57 = vpop.f32.mrb[24].mxu0  ;;  %v3863_v48 = vsel %vm926_vm2, %v3815_v21, 0.0 }
 0x294   : > { %v3763_v39 = vadd.f32 %v3762_v29, %v3761_v13  ;;  %v4741_v45 = vadd.f32 %v4709_v7, %v4573_v43  ;;  %v2310_v14 = vpop.f32.mrb[21].mxu1  ;;  %v3503_v17 = vpop.f32.mrb[25].mxu0  ;;  %v3864_v31 = vadd.f32 %v3863_v48, %v3862_v9 }
 0x295   : > { %v4742_v15 = vadd.f32 %v3487_v27, %v2310_v14  ;;  %v4574_v49 = vpop.f32.mrb[22].mxu1  ;;  %v4714_v55 = vpop.f32.mrb[26].mxu0 }
 0x296   : > { %v4206_v61 = vpack.c.bf16 %v4741_v45, %v4741_v45  ;;  %v3765_v11 = vadd.f32 %v3764_v46, %v3763_v39  ;;  %v2313_v16 = vpop.f32.mrb[23].mxu1  ;;  %v3506_v4 = vpop.f32.mrb[27].mxu0  ;;  %v3866_v28 = vadd.f32 %v3865_v59, %v3864_v31  ;;  %v4743_v1 = vadd.f32 %v4710_v2, %v4574_v49 }
 0x297   : > { %v4204_v58 = vpack.c.bf16 %v4742_v15, %v4742_v15  ;;  %v3766_v30 = vsel %vm926_vm2, %v4742_v15, 0.0  ;;  %v3818_v5 = vmul.f32 %v4742_v15, %v4742_v15  ;;  %v4744_v18 = vadd.f32 %v3490_v36, %v2313_v16 }
 0x298   : > { %3717 = vst.msk [vmem:[%s5882_s30 + $0x58] sm:$0xf] %vm3694_vm3, %v4206_v61  ;;  %v3767_v42 = vadd.f32 %v3766_v30, %v3765_v11  ;;  %v3868_v22 = vadd.f32 %v3867_v44, %v3866_v28  ;;  %v3820_v50 = vmul.f32 %v4741_v45, %v4741_v45  ;;  %v4207_v52 = vpack.c.bf16 %v4743_v1, %v4743_v1 }
 0x299   : > { %3715 = vst.msk [vmem:[%s5882_s30 + $0x50] sm:$0xf] %vm3694_vm3, %v4204_v58  ;;  %v3869_v26 = vsel %vm926_vm2, %v3818_v5, 0.0  ;;  %v4205_v53 = vpack.c.bf16 %v4744_v18, %v4744_v18  ;;  %v3768_v12 = vsel %vm926_vm2, %v4744_v18, 0.0  ;;  %v3819_v0 = vmul.f32 %v4744_v18, %v4744_v18 }
 0x29a   : > { %v3870_v60 = vadd.f32 %v3869_v26, %v3868_v22  ;;  %3718 = vst.msk [vmem:[%s5882_s30 + $0x5c] sm:$0xf] %vm3694_vm3, %v4207_v52  ;;  %v3769_v34 = vadd.f32 %v3768_v12, %v3767_v42  ;;  %v3770_v10 = vsel %vm926_vm2, %v4741_v45, 0.0  ;;  %v3821_v51 = vmul.f32 %v4743_v1, %v4743_v1 }
 0x29b   : > { %v4577_v24 = vpop.f32.mrb[24].mxu1  ;;  %v4717_v3 = vpop.f32.mrb[28].mxu0  ;;  %3716 = vst.msk [vmem:[%s5882_s30 + $0x54] sm:$0xf] %vm3694_vm3, %v4205_v53  ;;  %v3871_v27 = vsel %vm926_vm2, %v3819_v0, 0.0  ;;  %v3873_v25 = vsel %vm926_vm2, %v3820_v50, 0.0 }
 0x29c   : > { %v4745_v19 = vadd.f32 %v4713_v57, %v4577_v24  ;;  %v2326_v6 = vpop.f32.mrb[25].mxu1  ;;  %v3519_v7 = vpop.f32.mrb[29].mxu0  ;;  %v3771_v35 = vadd.f32 %v3770_v10, %v3769_v34  ;;  %v3872_v8 = vadd.f32 %v3871_v27, %v3870_v60  ;;  %v3772_v37 = vsel %vm926_vm2, %v4743_v1, 0.0 }
 0x29d   : > { %v4746_v23 = vadd.f32 %v3503_v17, %v2326_v6  ;;  %v4578_v32 = vpop.f32.mrb[26].mxu1  ;;  %v4718_v2 = vpop.f32.mrb[30].mxu0  ;;  %v3875_v9 = vsel %vm926_vm2, %v3821_v51, 0.0 }
 0x29e   : > { %v4210_v36 = vpack.c.bf16 %v4745_v19, %v4745_v19  ;;  %v2329_v40 = vpop.f32.mrb[27].mxu1  ;;  %v3522_v63 = vpop.f32.mrb[31].mxu0  ;;  %v3874_v47 = vadd.f32 %v3873_v25, %v3872_v8  ;;  %v3773_v33 = vadd.f32 %v3772_v37, %v3771_v35  ;;  %v4747_v56 = vadd.f32 %v4714_v55, %v4578_v32 }
 0x29f   : > { %v4208_v54 = vpack.c.bf16 %v4746_v23, %v4746_v23  ;;  %v3774_v20 = vsel %vm926_vm2, %v4746_v23, 0.0  ;;  %v3822_v41 = vmul.f32 %v4746_v23, %v4746_v23  ;;  %v4748_v38 = vadd.f32 %v3506_v4, %v2329_v40 }
 0x2a0   : > { %3721 = vst.msk [vmem:[%s5882_s30 + $0x68] sm:$0xf] %vm3694_vm3, %v4210_v36  ;;  %v3824_v21 = vmul.f32 %v4745_v19, %v4745_v19  ;;  %v3775_v29 = vadd.f32 %v3774_v20, %v3773_v33  ;;  %v3876_v43 = vadd.f32 %v3875_v9, %v3874_v47  ;;  %v4211_v57 = vpack.c.bf16 %v4747_v56, %v4747_v56 }
 0x2a1   : > { %3719 = vst.msk [vmem:[%s5882_s30 + $0x60] sm:$0xf] %vm3694_vm3, %v4208_v54  ;;  %v3877_v13 = vsel %vm926_vm2, %v3822_v41, 0.0  ;;  %v4209_v62 = vpack.c.bf16 %v4748_v38, %v4748_v38  ;;  %v3776_v39 = vsel %vm926_vm2, %v4748_v38, 0.0  ;;  %v3823_v48 = vmul.f32 %v4748_v38, %v4748_v38 }
 0x2a2   : > { %v3878_v14 = vadd.f32 %v3877_v13, %v3876_v43  ;;  %3722 = vst.msk [vmem:[%s5882_s30 + $0x6c] sm:$0xf] %vm3694_vm3, %v4211_v57  ;;  %v3777_v17 = vadd.f32 %v3776_v39, %v3775_v29  ;;  %v3778_v15 = vsel %vm926_vm2, %v4745_v19, 0.0  ;;  %v3825_v49 = vmul.f32 %v4747_v56, %v4747_v56 }
 0x2a3   : > { %v4581_v45 = vpop.f32.mrb[28].mxu1  ;;  %3720 = vst.msk [vmem:[%s5882_s30 + $0x64] sm:$0xf] %vm3694_vm3, %v4209_v62  ;;  %v3879_v55 = vsel %vm926_vm2, %v3823_v48, 0.0  ;;  %v3881_v11 = vsel %vm926_vm2, %v3824_v21, 0.0  ;;  %v3780_v30 = vsel %vm926_vm2, %v4747_v56, 0.0 }
 0x2a4   : > { %v4749_v46 = vadd.f32 %v4717_v3, %v4581_v45  ;;  %v2342_v31 = vpop.f32.mrb[29].mxu1  ;;  %v3779_v16 = vadd.f32 %v3778_v15, %v3777_v17  ;;  %v3880_v4 = vadd.f32 %v3879_v55, %v3878_v14  ;;  %v3883_v50 = vsel %vm926_vm2, %v3825_v49, 0.0 }
 0x2a5   : > { %v4750_v59 = vadd.f32 %v3519_v7, %v2342_v31  ;;  %v4582_v61 = vpop.f32.mrb[30].mxu1 }
 0x2a6   : > { %v4214_v28 = vpack.c.bf16 %v4749_v46, %v4749_v46  ;;  %v2345_v58 = vpop.f32.mrb[31].mxu1  ;;  %v3882_v1 = vadd.f32 %v3881_v11, %v3880_v4  ;;  %v3781_v18 = vadd.f32 %v3780_v30, %v3779_v16  ;;  %v4751_v22 = vadd.f32 %v4718_v2, %v4582_v61 }
 0x2a7   : > { %v4212_v5 = vpack.c.bf16 %v4750_v59, %v4750_v59  ;;  %v3782_v44 = vsel %vm926_vm2, %v4750_v59, 0.0  ;;  %v3826_v42 = vmul.f32 %v4750_v59, %v4750_v59  ;;  %v4752_v26 = vadd.f32 %v3522_v63, %v2345_v58 }
 0x2a8   : > { %3725 = vst.msk [vmem:[%s5882_s30 + $0x78] sm:$0xf] %vm3694_vm3, %v4214_v28  ;;  %v3783_v53 = vadd.f32 %v3782_v44, %v3781_v18  ;;  %v3884_v60 = vadd.f32 %v3883_v50, %v3882_v1  ;;  %v4215_v12 = vpack.c.bf16 %v4751_v22, %v4751_v22  ;;  %v3828_v0 = vmul.f32 %v4749_v46, %v4749_v46 }
 0x2a9   : > { %3723 = vst.msk [vmem:[%s5882_s30 + $0x70] sm:$0xf] %vm3694_vm3, %v4212_v5  ;;  %v3885_v52 = vsel %vm926_vm2, %v3826_v42, 0.0  ;;  %v4213_v24 = vpack.c.bf16 %v4752_v26, %v4752_v26  ;;  %v3784_v3 = vsel %vm926_vm2, %v4752_v26, 0.0  ;;  %v3827_v34 = vmul.f32 %v4752_v26, %v4752_v26 }
 0x2aa   : > { %v3886_v19 = vadd.f32 %v3885_v52, %v3884_v60  ;;  %3726 = vst.msk [vmem:[%s5882_s30 + $0x7c] sm:$0xf] %vm3694_vm3, %v4215_v12  ;;  %v3785_v6 = vadd.f32 %v3784_v3, %v3783_v53  ;;  %v3786_v7 = vsel %vm926_vm2, %v4749_v46, 0.0  ;;  %v3829_v10 = vmul.f32 %v4751_v22, %v4751_v22 }
 0x2ab   : > { %3724 = vst.msk [vmem:[%s5882_s30 + $0x74] sm:$0xf] %vm3694_vm3, %v4213_v24  ;;  %v3887_v51 = vsel %vm926_vm2, %v3827_v34, 0.0  ;;  %v3889_v32 = vsel %vm926_vm2, %v3828_v0, 0.0  ;;  %v3788_v2 = vsel %vm926_vm2, %v4751_v22, 0.0 }
 0x2ac   : > { %v3787_v27 = vadd.f32 %v3786_v7, %v3785_v6  ;;  %v3888_v23 = vadd.f32 %v3887_v51, %v3886_v19  ;;  %v3891_v8 = vsel %vm926_vm2, %v3829_v10, 0.0 }
 0x2ae   : > { %v3789_v25 = vadd.f32 %v3788_v2, %v3787_v27  ;;  %v3890_v35 = vadd.f32 %v3889_v32, %v3888_v23 }
 0x2b0   : > { %v3790_v36 = vrot.slane %v3789_v25, 4  ;;  %v3892_v40 = vadd.f32 %v3891_v8, %v3890_v35 }
 0x2b2   : > { %v3791_v63 = vadd.f32 %v3790_v36, %v3789_v25  ;;  %v3893_v37 = vrot.slane %v3892_v40, 4 }
 0x2b4   : > { %v3792_v54 = vrot.slane %v3791_v63, 2  ;;  %v3894_v20 = vadd.f32 %v3893_v37, %v3892_v40 }
 0x2b6   : > { %v3793_v41 = vadd.f32 %v3792_v54, %v3791_v63  ;;  %v3895_v47 = vrot.slane %v3894_v20, 2 }
 0x2b8   : > { %v3794_v33 = vrot.slane %v3793_v41, 1  ;;  %v3896_v56 = vadd.f32 %v3895_v47, %v3894_v20 }
 0x2ba   : > { %v3795_v38 = vadd.f32 %v3794_v33, %v3793_v41  ;;  %v3897_v9 = vrot.slane %v3896_v56, 1 }
 0x2bc   : > { %3797 = vst.msk [vmem:[%s262_s10] sm:$0x1] %vm3796_vm4, %v3795_v38  ;;  %v3898_v13 = vadd.f32 %v3897_v9, %v3896_v56 }
 0x2be   : > { %3899 = vst.msk [vmem:[%s262_s10 + $0x1] sm:$0x1] %vm3796_vm4, %v3898_v13 }
 0x2bf PF: > { %s17_s21 = sadd.s32 1, %s5006_s21  }
 0x2c0   : > { %p14_p4 = scmp.ge.s32.totalorder %s17_s21, 4  }
 0x2c2   :  { %16 = sbr.rel (!%p14_p4) target bundleno = 1 (0x1), region = 92 }

</bundles_post_ra>
